<compile_context>
chip_gen: v5e
topology: v5e:2x2
jax: 0.10.0
libtpu: 0.0.40
codegen_flags: <defaults>
</compile_context>

<pallas_src>
import functools
import math

import jax
import jax.numpy as jnp
from jax.experimental import pallas as pl
from jax.experimental.pallas import tpu as pltpu

WGT_DTYPE = jnp.bfloat16   # storage dtype of matmul weights
MM_DTYPE = jnp.bfloat16    # matmul operand dtype (f32 accumulation)


# ----------------------------- in-kernel helpers -----------------------------

def _ln(x, g, b):
    mean = jnp.mean(x, axis=-1, keepdims=True)
    c = x - mean
    var = jnp.mean(c * c, axis=-1, keepdims=True)
    return c * jax.lax.rsqrt(var + 1e-6) * g + b


def _mm(x, w_ref, b_ref):
    return (jnp.dot(x.astype(w_ref.dtype), w_ref[...],
                    preferred_element_type=jnp.float32) + b_ref[...])


def _mha_proj(q, k, v, mask, score, wo_ref, heads, scale):
    """Multi-head attention fused with its output projection.

    q: (Lq, D) f32, k/v: (Lk, D) f32, mask: (Lq, Lk) bool,
    score: (1|Lq, Lk) f32 or None, wo_ref: (D, N) weight ref.
    Returns sum_h softmax(q_h k_h^T) v_h @ Wo[h*dk:(h+1)*dk, :]  -> (Lq, N) f32.
    Heads are static lane slices; projecting per head and accumulating avoids a
    lane-concatenate relayout entirely.
    """
    d_model = q.shape[-1]
    dk = d_model // heads
    wo = wo_ref[...]
    qs = q * scale
    out = None
    for h in range(heads):
        sl = slice(h * dk, (h + 1) * dk)
        qh = qs[:, sl].astype(MM_DTYPE)
        kh = k[:, sl].astype(MM_DTYPE)
        vh = v[:, sl].astype(MM_DTYPE)
        s = jnp.einsum("qd,kd->qk", qh, kh, preferred_element_type=jnp.float32)
        s = jnp.where(mask, -1e18, s)
        s = s - jnp.max(s, axis=-1, keepdims=True)
        p = jnp.exp(s)
        p = p / jnp.sum(p, axis=-1, keepdims=True)
        if score is not None:
            # TODO(synk): MultiHeadedAttentionWithScore source not given; assumed
            # softmax attention re-weighted by the entity score then renormalized.
            p = p * score
            p = p / (jnp.sum(p, axis=-1, keepdims=True) + 1e-18)
        ctx_h = jnp.dot(p.astype(MM_DTYPE), vh, preferred_element_type=jnp.float32)
        oh = jnp.dot(ctx_h.astype(wo.dtype), wo[sl, :],
                     preferred_element_type=jnp.float32)
        out = oh if out is None else out + oh
    return out


# ----------------------------- fused layer kernel -----------------------------

def _fused_decoder_layer_kernel(
    # per-batch activation / mask blocks
    x_ref, decm_ref,
    memw_ref, maskw_ref,
    memg_ref, maskg_ref, score_ref,
    memp_ref, maskp_ref,
    # broadcast weight blocks
    ln1g_ref, ln1b_ref,
    wqkv_ref, bqkv_ref, wo_self_ref, bo_self_ref,
    ln2g_ref, ln2b_ref,
    wq3_ref, bq3_ref,
    wkvw_ref, bkvw_ref, wkvg_ref, bkvg_ref, wkvp_ref, bkvp_ref,
    wow_ref, bow_ref, wog_ref, bog_ref, wop_ref, bop_ref,
    fw_ref, fb_ref,
    ffng_ref, ffnb_ref, w1_ref, b1_ref, w2_ref, b2_ref,
    # outputs
    out_ref, allin_ref,
    *, heads, scale, d_model):
    D = d_model
    x = x_ref[0]                                            # (T, D) f32

    # --- LayerNorm1 + fused [Q|K|V] self projection + masked self-attention ---
    xn = _ln(x, ln1g_ref[...], ln1b_ref[...])
    allin_ref[0] = xn

    qkv = _mm(xn, wqkv_ref, bqkv_ref)                       # (T, 3D)
    dec_mask = jnp.broadcast_to(decm_ref[0] > 0, (x.shape[0], x.shape[0]))
    self_ctx = _mha_proj(qkv[:, :D], qkv[:, D:2 * D], qkv[:, 2 * D:],
                         dec_mask, None, wo_self_ref, heads, scale)
    query = self_ctx + bo_self_ref[...] + x                 # residual(inputs)

    # --- LayerNorm2 + fused [Qw|Qg|Qp] context-query projection ---
    qn = _ln(query, ln2g_ref[...], ln2b_ref[...])
    q3 = _mm(qn, wq3_ref, bq3_ref)                          # (T, 3D)

    def ctx_branch(mem_ref, mask_ref, wkv_ref, bkv_ref, wo_ref, bo_ref,
                   q_off, score):
        mem = mem_ref[0]                                    # (L, D)
        kv = _mm(mem, wkv_ref, bkv_ref)                     # (L, 2D)
        q = q3[:, q_off:q_off + D]
        m = jnp.broadcast_to(mask_ref[0] > 0, (q.shape[0], mem.shape[0]))
        return (_mha_proj(q, kv[:, :D], kv[:, D:], m, score, wo_ref, heads, scale)
                + bo_ref[...])

    # --- three context attentions (word / graph-with-score / phase1) ---
    word = ctx_branch(memw_ref, maskw_ref, wkvw_ref, bkvw_ref,
                      wow_ref, bow_ref, 0, None)
    graph = ctx_branch(memg_ref, maskg_ref, wkvg_ref, bkvg_ref,
                       wog_ref, bog_ref, D, score_ref[0])
    ph1 = ctx_branch(memp_ref, maskp_ref, wkvp_ref, bkvp_ref,
                     wop_ref, bop_ref, 2 * D, None)

    # --- fusion gates (VPU multiply + lane reduction) + residual(query) ---
    fw = fw_ref[...]            # (4, D): [fus1_word, fus1_graph, fus2_ctx, fus2_ph1]
    fb = fb_ref[...]            # (2, 1): [fus1_bias, fus2_bias]
    logit1 = (jnp.sum(word * fw[0:1, :], axis=-1, keepdims=True)
              + jnp.sum(graph * fw[1:2, :], axis=-1, keepdims=True) + fb[0:1, :])
    g1 = jax.nn.sigmoid(logit1)
    out_ctx = g1 * word + (1.0 - g1) * graph
    logit2 = (jnp.sum(out_ctx * fw[2:3, :], axis=-1, keepdims=True)
              + jnp.sum(ph1 * fw[3:4, :], axis=-1, keepdims=True) + fb[1:2, :])
    g2 = jax.nn.sigmoid(logit2)
    fused = g2 * out_ctx + (1.0 - g2) * ph1 + query

    # --- PositionwiseFeedForward: LN -> W1 -> ReLU -> W2 -> +residual ---
    fn = _ln(fused, ffng_ref[...], ffnb_ref[...])
    h = jnp.maximum(_mm(fn, w1_ref, b1_ref), 0.0)
    out_ref[0] = _mm(h, w2_ref, b2_ref) + fused


# ----------------------------- module forward -----------------------------

def decoder_layer_forward(params, inputs, memory_bank, src_pad_mask, tgt_pad_mask,
                          ent_context, ent_pad_mask, ent_score,
                          phase1_memory, phase1_pad_mask, *, heads):
    B, T, D = inputs.shape
    dk = D // heads
    scale = 1.0 / math.sqrt(dk)

    # dec_mask = (tgt_pad_mask + subsequent_mask[:, :t1, :t1]) > 0   (host-side, tiny)
    t1 = tgt_pad_mask.shape[1]
    sub_mask = jnp.triu(jnp.ones((1, t1, t1), jnp.int32), k=1)
    dec_mask = ((tgt_pad_mask + sub_mask) > 0).astype(jnp.int32)

    S = memory_bank.shape[1]
    E = ent_context.shape[1]
    P = phase1_memory.shape[1]
    mq_dec = dec_mask.shape[1]
    mq_src = src_pad_mask.shape[1]
    mq_ent = ent_pad_mask.shape[1]
    mq_scr = ent_score.shape[1]
    mq_ph1 = phase1_pad_mask.shape[1]
    dff = params["ffn_w1"].shape[1]

    per_b = lambda b: (b, 0, 0)
    cst = lambda b: (0, 0)

    def vec(name, n):
        return params[name].reshape(1, n)

    in_specs = [
        pl.BlockSpec((1, T, D), per_b),          # inputs
        pl.BlockSpec((1, mq_dec, T), per_b),     # dec_mask
        pl.BlockSpec((1, S, D), per_b),          # memory_bank
        pl.BlockSpec((1, mq_src, S), per_b),     # src_pad_mask
        pl.BlockSpec((1, E, D), per_b),          # ent_context
        pl.BlockSpec((1, mq_ent, E), per_b),     # ent_pad_mask
        pl.BlockSpec((1, mq_scr, E), per_b),     # ent_score
        pl.BlockSpec((1, P, D), per_b),          # phase1_memory
        pl.BlockSpec((1, mq_ph1, P), per_b),     # phase1_pad_mask
        pl.BlockSpec((1, D), cst),               # ln1_g
        pl.BlockSpec((1, D), cst),               # ln1_b
        pl.BlockSpec((D, 3 * D), cst),           # self_w_qkv
        pl.BlockSpec((1, 3 * D), cst),           # self_b_qkv
        pl.BlockSpec((D, D), cst),               # self_wo
        pl.BlockSpec((1, D), cst),               # self_bo
        pl.BlockSpec((1, D), cst),               # ln2_g
        pl.BlockSpec((1, D), cst),               # ln2_b
        pl.BlockSpec((D, 3 * D), cst),           # w_q_ctx
        pl.BlockSpec((1, 3 * D), cst),           # b_q_ctx
        pl.BlockSpec((D, 2 * D), cst),           # w_kv_word
        pl.BlockSpec((1, 2 * D), cst),           # b_kv_word
        pl.BlockSpec((D, 2 * D), cst),           # w_kv_graph
        pl.BlockSpec((1, 2 * D), cst),           # b_kv_graph
        pl.BlockSpec((D, 2 * D), cst),           # w_kv_ph1
        pl.BlockSpec((1, 2 * D), cst),           # b_kv_ph1
        pl.BlockSpec((D, D), cst),               # wo_word
        pl.BlockSpec((1, D), cst),               # bo_word
        pl.BlockSpec((D, D), cst),               # wo_graph
        pl.BlockSpec((1, D), cst),               # bo_graph
        pl.BlockSpec((D, D), cst),               # wo_ph1
        pl.BlockSpec((1, D), cst),               # bo_ph1
        pl.BlockSpec((4, D), cst),               # fusion_w
        pl.BlockSpec((2, 1), cst),               # fusion_b
        pl.BlockSpec((1, D), cst),               # ffn_ln_g
        pl.BlockSpec((1, D), cst),               # ffn_ln_b
        pl.BlockSpec((D, dff), cst),             # ffn_w1
        pl.BlockSpec((1, dff), cst),             # ffn_b1
        pl.BlockSpec((dff, D), cst),             # ffn_w2
        pl.BlockSpec((1, D), cst),               # ffn_b2
    ]

    kern = functools.partial(_fused_decoder_layer_kernel,
                             heads=heads, scale=scale, d_model=D)

    output, all_input = pl.pallas_call(
        kern,
        out_shape=(jax.ShapeDtypeStruct((B, T, D), jnp.float32),
                   jax.ShapeDtypeStruct((B, T, D), jnp.float32)),
        grid=(B,),
        in_specs=in_specs,
        out_specs=(pl.BlockSpec((1, T, D), per_b),
                   pl.BlockSpec((1, T, D), per_b)),
        compiler_params=pltpu.CompilerParams(dimension_semantics=("parallel",)),
    )(inputs, dec_mask,
      memory_bank, src_pad_mask,
      ent_context, ent_pad_mask, ent_score,
      phase1_memory, phase1_pad_mask,
      vec("ln1_g", D), vec("ln1_b", D),
      params["self_w_qkv"], vec("self_b_qkv", 3 * D),
      params["self_wo"], vec("self_bo", D),
      vec("ln2_g", D), vec("ln2_b", D),
      params["w_q_ctx"], vec("b_q_ctx", 3 * D),
      params["w_kv_word"], vec("b_kv_word", 2 * D),
      params["w_kv_graph"], vec("b_kv_graph", 2 * D),
      params["w_kv_ph1"], vec("b_kv_ph1", 2 * D),
      params["wo_word"], vec("bo_word", D),
      params["wo_graph"], vec("bo_graph", D),
      params["wo_ph1"], vec("bo_ph1", D),
      params["fusion_w"], params["fusion_b"].reshape(2, 1),
      vec("ffn_ln_g", D), vec("ffn_ln_b", D),
      params["ffn_w1"], vec("ffn_b1", dff),
      params["ffn_w2"], vec("ffn_b2", D))

    return output, all_input


# ----------------------------- parameter init -----------------------------

def init_params(key, d_model, heads, d_ff):
    assert d_model % heads == 0
    D = d_model
    ks = jax.random.split(key, 20)

    def w(k, fi, fo):
        return jax.random.normal(k, (fi, fo), jnp.float32) * 0.05

    def zeros(n):
        return jnp.zeros((n,), jnp.float32)

    c = lambda a: a.astype(WGT_DTYPE)

    w_qkv = jnp.concatenate([w(ks[0], D, D), w(ks[1], D, D), w(ks[2], D, D)], axis=1)
    w_q_ctx = jnp.concatenate([w(ks[4], D, D), w(ks[5], D, D), w(ks[6], D, D)], axis=1)
    w_kv_word = jnp.concatenate([w(ks[7], D, D), w(ks[8], D, D)], axis=1)
    w_kv_graph = jnp.concatenate([w(ks[9], D, D), w(ks[10], D, D)], axis=1)
    w_kv_ph1 = jnp.concatenate([w(ks[11], D, D), w(ks[12], D, D)], axis=1)

    return {
        "self_w_qkv": c(w_qkv), "self_b_qkv": zeros(3 * D),
        "self_wo": c(w(ks[3], D, D)), "self_bo": zeros(D),
        "w_q_ctx": c(w_q_ctx), "b_q_ctx": zeros(3 * D),
        "w_kv_word": c(w_kv_word), "b_kv_word": zeros(2 * D),
        "w_kv_graph": c(w_kv_graph), "b_kv_graph": zeros(2 * D),
        "w_kv_ph1": c(w_kv_ph1), "b_kv_ph1": zeros(2 * D),
        "wo_word": c(w(ks[13], D, D)), "bo_word": zeros(D),
        "wo_graph": c(w(ks[14], D, D)), "bo_graph": zeros(D),
        "wo_ph1": c(w(ks[15], D, D)), "bo_ph1": zeros(D),
        # fusion1 weight rows [word, graph], fusion2 weight rows [ctx, phase1]
        "fusion_w": jax.random.normal(ks[16], (4, D), jnp.float32) * 0.05,
        "fusion_b": jnp.zeros((2,), jnp.float32),
        "ln1_g": jnp.ones((D,), jnp.float32), "ln1_b": zeros(D),
        "ln2_g": jnp.ones((D,), jnp.float32), "ln2_b": zeros(D),
        "ffn_ln_g": jnp.ones((D,), jnp.float32), "ffn_ln_b": zeros(D),
        "ffn_w1": c(w(ks[17], D, d_ff)), "ffn_b1": zeros(d_ff),
        "ffn_w2": c(w(ks[18], d_ff, D)), "ffn_b2": zeros(D),
    }


# ----------------------------- main -----------------------------

if __name__ == "__main__":
    B, T, D, H, DFF = 2, 1, 32, 4, 64
    SRC, ENT, PH1 = 16, 8, 8

    root = jax.random.PRNGKey(0)
    keys = jax.random.split(root, 8)

    inputs = jax.random.normal(keys[0], (B, T, D), jnp.float32)
    memory_bank = jax.random.normal(keys[1], (B, SRC, D), jnp.float32)
    ent_context = jax.random.normal(keys[2], (B, ENT, D), jnp.float32)
    phase1_memory = jax.random.normal(keys[3], (B, PH1, D), jnp.float32)

    src_pad_mask = jnp.zeros((B, 1, SRC), jnp.int32).at[:, :, SRC - 3:].set(1)
    tgt_pad_mask = jnp.zeros((B, 1, T), jnp.int32)
    ent_pad_mask = jnp.zeros((B, 1, ENT), jnp.int32).at[1, :, ENT - 2:].set(1)
    phase1_pad_mask = jnp.zeros((B, 1, PH1), jnp.int32).at[:, :, PH1 - 1:].set(1)
    ent_score = jax.random.uniform(keys[4], (B, 1, ENT), jnp.float32,
                                   minval=0.1, maxval=1.0)

    params = init_params(keys[5], D, H, DFF)

    fwd = jax.jit(functools.partial(decoder_layer_forward, heads=H))
    output, all_input = fwd(params, inputs, memory_bank, src_pad_mask, tgt_pad_mask,
                            ent_context, ent_pad_mask, ent_score,
                            phase1_memory, phase1_pad_mask)
    jax.block_until_ready((output, all_input))
    assert output.shape == (B, T, D) and all_input.shape == (B, T, D)
    assert bool(jnp.all(jnp.isfinite(output)))
    assert bool(jnp.all(jnp.isfinite(all_input)))
    print("KERNEL_OK")
</pallas_src>

<mosaic_0001>
module attributes {stable_mosaic.version = 11 : i64} {
  func.func @_fused_decoder_layer_kernel(%arg0: i32, %arg1: memref<1x1x32xf32, #tpu.memory_space<vmem>>, %arg2: memref<1x1x1xi32, #tpu.memory_space<vmem>>, %arg3: memref<1x16x32xf32, #tpu.memory_space<vmem>>, %arg4: memref<1x1x16xi32, #tpu.memory_space<vmem>>, %arg5: memref<1x8x32xf32, #tpu.memory_space<vmem>>, %arg6: memref<1x1x8xi32, #tpu.memory_space<vmem>>, %arg7: memref<1x1x8xf32, #tpu.memory_space<vmem>>, %arg8: memref<1x8x32xf32, #tpu.memory_space<vmem>>, %arg9: memref<1x1x8xi32, #tpu.memory_space<vmem>>, %arg10: memref<1x32xf32, #tpu.memory_space<vmem>>, %arg11: memref<1x32xf32, #tpu.memory_space<vmem>>, %arg12: memref<32x96xbf16, #tpu.memory_space<vmem>>, %arg13: memref<1x96xf32, #tpu.memory_space<vmem>>, %arg14: memref<32x32xbf16, #tpu.memory_space<vmem>>, %arg15: memref<1x32xf32, #tpu.memory_space<vmem>>, %arg16: memref<1x32xf32, #tpu.memory_space<vmem>>, %arg17: memref<1x32xf32, #tpu.memory_space<vmem>>, %arg18: memref<32x96xbf16, #tpu.memory_space<vmem>>, %arg19: memref<1x96xf32, #tpu.memory_space<vmem>>, %arg20: memref<32x64xbf16, #tpu.memory_space<vmem>>, %arg21: memref<1x64xf32, #tpu.memory_space<vmem>>, %arg22: memref<32x64xbf16, #tpu.memory_space<vmem>>, %arg23: memref<1x64xf32, #tpu.memory_space<vmem>>, %arg24: memref<32x64xbf16, #tpu.memory_space<vmem>>, %arg25: memref<1x64xf32, #tpu.memory_space<vmem>>, %arg26: memref<32x32xbf16, #tpu.memory_space<vmem>>, %arg27: memref<1x32xf32, #tpu.memory_space<vmem>>, %arg28: memref<32x32xbf16, #tpu.memory_space<vmem>>, %arg29: memref<1x32xf32, #tpu.memory_space<vmem>>, %arg30: memref<32x32xbf16, #tpu.memory_space<vmem>>, %arg31: memref<1x32xf32, #tpu.memory_space<vmem>>, %arg32: memref<4x32xf32, #tpu.memory_space<vmem>>, %arg33: memref<2x1xf32, #tpu.memory_space<vmem>>, %arg34: memref<1x32xf32, #tpu.memory_space<vmem>>, %arg35: memref<1x32xf32, #tpu.memory_space<vmem>>, %arg36: memref<32x64xbf16, #tpu.memory_space<vmem>>, %arg37: memref<1x64xf32, #tpu.memory_space<vmem>>, %arg38: memref<64x32xbf16, #tpu.memory_space<vmem>>, %arg39: memref<1x32xf32, #tpu.memory_space<vmem>>, %arg40: memref<1x1x32xf32, #tpu.memory_space<vmem>>, %arg41: memref<1x1x32xf32, #tpu.memory_space<vmem>>) attributes {dimension_semantics = [#tpu.dimension_semantics<parallel>], iteration_bounds = array<i64: 2>, scalar_prefetch = 0 : i64, scratch_operands = 0 : i64, tpu.core_type = #tpu.core_type<tc>, window_params = [{transform_indices = @transform_0, window_bounds = array<i64: 1, 1, 32>}, {transform_indices = @transform_1, window_bounds = array<i64: 1, 1, 1>}, {transform_indices = @transform_2, window_bounds = array<i64: 1, 16, 32>}, {transform_indices = @transform_3, window_bounds = array<i64: 1, 1, 16>}, {transform_indices = @transform_4, window_bounds = array<i64: 1, 8, 32>}, {transform_indices = @transform_5, window_bounds = array<i64: 1, 1, 8>}, {transform_indices = @transform_6, window_bounds = array<i64: 1, 1, 8>}, {transform_indices = @transform_7, window_bounds = array<i64: 1, 8, 32>}, {transform_indices = @transform_8, window_bounds = array<i64: 1, 1, 8>}, {pipeline_mode = #tpu.pipeline_mode<synchronous>, transform_indices = @transform_9, window_bounds = array<i64: 1, 32>}, {pipeline_mode = #tpu.pipeline_mode<synchronous>, transform_indices = @transform_10, window_bounds = array<i64: 1, 32>}, {pipeline_mode = #tpu.pipeline_mode<synchronous>, transform_indices = @transform_11, window_bounds = array<i64: 32, 96>}, {pipeline_mode = #tpu.pipeline_mode<synchronous>, transform_indices = @transform_12, window_bounds = array<i64: 1, 96>}, {pipeline_mode = #tpu.pipeline_mode<synchronous>, transform_indices = @transform_13, window_bounds = array<i64: 32, 32>}, {pipeline_mode = #tpu.pipeline_mode<synchronous>, transform_indices = @transform_14, window_bounds = array<i64: 1, 32>}, {pipeline_mode = #tpu.pipeline_mode<synchronous>, transform_indices = @transform_15, window_bounds = array<i64: 1, 32>}, {pipeline_mode = #tpu.pipeline_mode<synchronous>, transform_indices = @transform_16, window_bounds = array<i64: 1, 32>}, {pipeline_mode = #tpu.pipeline_mode<synchronous>, transform_indices = @transform_17, window_bounds = array<i64: 32, 96>}, {pipeline_mode = #tpu.pipeline_mode<synchronous>, transform_indices = @transform_18, window_bounds = array<i64: 1, 96>}, {pipeline_mode = #tpu.pipeline_mode<synchronous>, transform_indices = @transform_19, window_bounds = array<i64: 32, 64>}, {pipeline_mode = #tpu.pipeline_mode<synchronous>, transform_indices = @transform_20, window_bounds = array<i64: 1, 64>}, {pipeline_mode = #tpu.pipeline_mode<synchronous>, transform_indices = @transform_21, window_bounds = array<i64: 32, 64>}, {pipeline_mode = #tpu.pipeline_mode<synchronous>, transform_indices = @transform_22, window_bounds = array<i64: 1, 64>}, {pipeline_mode = #tpu.pipeline_mode<synchronous>, transform_indices = @transform_23, window_bounds = array<i64: 32, 64>}, {pipeline_mode = #tpu.pipeline_mode<synchronous>, transform_indices = @transform_24, window_bounds = array<i64: 1, 64>}, {pipeline_mode = #tpu.pipeline_mode<synchronous>, transform_indices = @transform_25, window_bounds = array<i64: 32, 32>}, {pipeline_mode = #tpu.pipeline_mode<synchronous>, transform_indices = @transform_26, window_bounds = array<i64: 1, 32>}, {pipeline_mode = #tpu.pipeline_mode<synchronous>, transform_indices = @transform_27, window_bounds = array<i64: 32, 32>}, {pipeline_mode = #tpu.pipeline_mode<synchronous>, transform_indices = @transform_28, window_bounds = array<i64: 1, 32>}, {pipeline_mode = #tpu.pipeline_mode<synchronous>, transform_indices = @transform_29, window_bounds = array<i64: 32, 32>}, {pipeline_mode = #tpu.pipeline_mode<synchronous>, transform_indices = @transform_30, window_bounds = array<i64: 1, 32>}, {pipeline_mode = #tpu.pipeline_mode<synchronous>, transform_indices = @transform_31, window_bounds = array<i64: 4, 32>}, {pipeline_mode = #tpu.pipeline_mode<synchronous>, transform_indices = @transform_32, window_bounds = array<i64: 2, 1>}, {pipeline_mode = #tpu.pipeline_mode<synchronous>, transform_indices = @transform_33, window_bounds = array<i64: 1, 32>}, {pipeline_mode = #tpu.pipeline_mode<synchronous>, transform_indices = @transform_34, window_bounds = array<i64: 1, 32>}, {pipeline_mode = #tpu.pipeline_mode<synchronous>, transform_indices = @transform_35, window_bounds = array<i64: 32, 64>}, {pipeline_mode = #tpu.pipeline_mode<synchronous>, transform_indices = @transform_36, window_bounds = array<i64: 1, 64>}, {pipeline_mode = #tpu.pipeline_mode<synchronous>, transform_indices = @transform_37, window_bounds = array<i64: 64, 32>}, {pipeline_mode = #tpu.pipeline_mode<synchronous>, transform_indices = @transform_38, window_bounds = array<i64: 1, 32>}, {transform_indices = @transform_39, window_bounds = array<i64: 1, 1, 32>}, {transform_indices = @transform_40, window_bounds = array<i64: 1, 1, 32>}]} {
    %c0 = arith.constant 0 : index
    %c0_0 = arith.constant 0 : index
    %c0_1 = arith.constant 0 : index
    %0 = vector.load %arg1[%c0, %c0_0, %c0_1] : memref<1x1x32xf32, #tpu.memory_space<vmem>>, vector<1x1x32xf32>
    %1 = vector.shape_cast %0 : vector<1x1x32xf32> to vector<1x32xf32>
    %c0_2 = arith.constant 0 : index
    %c0_3 = arith.constant 0 : index
    %2 = vector.load %arg10[%c0_2, %c0_3] : memref<1x32xf32, #tpu.memory_space<vmem>>, vector<1x32xf32>
    %c0_4 = arith.constant 0 : index
    %c0_5 = arith.constant 0 : index
    %3 = vector.load %arg11[%c0_4, %c0_5] : memref<1x32xf32, #tpu.memory_space<vmem>>, vector<1x32xf32>
    %cst = arith.constant dense<0.000000e+00> : vector<1xf32>
    %4 = vector.multi_reduction <add>, %1, %cst [1] : vector<1x32xf32> to vector<1xf32>
    %5 = vector.shape_cast %4 : vector<1xf32> to vector<1x1xf32>
    %cst_6 = arith.constant 3.200000e+01 : f32
    %6 = vector.broadcast %cst_6 : f32 to vector<1x1xf32>
    %7 = arith.divf %5, %6 : vector<1x1xf32>
    %8 = vector.broadcast %7 : vector<1x1xf32> to vector<1x32xf32>
    %9 = arith.subf %1, %8 : vector<1x32xf32>
    %10 = arith.mulf %9, %9 : vector<1x32xf32>
    %cst_7 = arith.constant dense<0.000000e+00> : vector<1xf32>
    %11 = vector.multi_reduction <add>, %10, %cst_7 [1] : vector<1x32xf32> to vector<1xf32>
    %12 = vector.shape_cast %11 : vector<1xf32> to vector<1x1xf32>
    %cst_8 = arith.constant 3.200000e+01 : f32
    %13 = vector.broadcast %cst_8 : f32 to vector<1x1xf32>
    %14 = arith.divf %12, %13 : vector<1x1xf32>
    %cst_9 = arith.constant 9.99999997E-7 : f32
    %15 = vector.broadcast %cst_9 : f32 to vector<1x1xf32>
    %16 = arith.addf %14, %15 : vector<1x1xf32>
    %17 = math.rsqrt %16 : vector<1x1xf32>
    %18 = vector.broadcast %17 : vector<1x1xf32> to vector<1x32xf32>
    %19 = arith.mulf %9, %18 : vector<1x32xf32>
    %20 = arith.mulf %19, %2 : vector<1x32xf32>
    %21 = arith.addf %20, %3 : vector<1x32xf32>
    %c0_10 = arith.constant 0 : index
    %c0_11 = arith.constant 0 : index
    %c0_12 = arith.constant 0 : index
    %22 = vector.load %arg41[%c0_10, %c0_11, %c0_12] : memref<1x1x32xf32, #tpu.memory_space<vmem>>, vector<1x1x32xf32>
    %23 = vector.shape_cast %22 : vector<1x1x32xf32> to vector<1x32xf32>
    %24 = vector.shape_cast %21 : vector<1x32xf32> to vector<1x1x32xf32>
    tpu.vector_store %arg41[%c0_10, %c0_11, %c0_12], %24 {strides = array<i32>} : memref<1x1x32xf32, #tpu.memory_space<vmem>>, vector<1x1x32xf32>,
    %25 = arith.truncf %21 : vector<1x32xf32> to vector<1x32xbf16>
    %c0_13 = arith.constant 0 : index
    %c0_14 = arith.constant 0 : index
    %26 = vector.load %arg12[%c0_13, %c0_14] : memref<32x96xbf16, #tpu.memory_space<vmem>>, vector<32x96xbf16>
    %cst_15 = arith.constant dense<0.000000e+00> : vector<1x96xf32>
    %27 = tpu.matmul %25, %26, %cst_15 {dimension_numbers = #tpu.dot_dimension_numbers<[1], [0], [0], [1], [0, 0, 1, 1], [], []>} : vector<1x32xbf16>, vector<32x96xbf16>, vector<1x96xf32> -> vector<1x96xf32>
    %c0_16 = arith.constant 0 : index
    %c0_17 = arith.constant 0 : index
    %28 = vector.load %arg13[%c0_16, %c0_17] : memref<1x96xf32, #tpu.memory_space<vmem>>, vector<1x96xf32>
    %29 = arith.addf %27, %28 : vector<1x96xf32>
    %c0_18 = arith.constant 0 : index
    %c0_19 = arith.constant 0 : index
    %c0_20 = arith.constant 0 : index
    %30 = vector.load %arg2[%c0_18, %c0_19, %c0_20] : memref<1x1x1xi32, #tpu.memory_space<vmem>>, vector<1x1x1xi32>
    %31 = vector.shape_cast %30 : vector<1x1x1xi32> to vector<1x1xi32>
    %c0_i32 = arith.constant 0 : i32
    %32 = vector.broadcast %c0_i32 : i32 to vector<1x1xi32>
    %33 = arith.cmpi sgt, %31, %32 : vector<1x1xi32>
    %34 = vector.extract_strided_slice %29 {offsets = [0, 0], sizes = [1, 32], strides = [1, 1]} : vector<1x96xf32> to vector<1x32xf32>
    %35 = vector.extract_strided_slice %29 {offsets = [0, 32], sizes = [1, 32], strides = [1, 1]} : vector<1x96xf32> to vector<1x32xf32>
    %36 = vector.extract_strided_slice %29 {offsets = [0, 64], sizes = [1, 32], strides = [1, 1]} : vector<1x96xf32> to vector<1x32xf32>
    %c0_21 = arith.constant 0 : index
    %c0_22 = arith.constant 0 : index
    %37 = vector.load %arg14[%c0_21, %c0_22] : memref<32x32xbf16, #tpu.memory_space<vmem>>, vector<32x32xbf16>
    %cst_23 = arith.constant 0.353553385 : f32
    %38 = vector.broadcast %cst_23 : f32 to vector<1x32xf32>
    %39 = arith.mulf %34, %38 : vector<1x32xf32>
    %40 = vector.extract_strided_slice %39 {offsets = [0, 0], sizes = [1, 8], strides = [1, 1]} : vector<1x32xf32> to vector<1x8xf32>
    %41 = arith.truncf %40 : vector<1x8xf32> to vector<1x8xbf16>
    %42 = vector.extract_strided_slice %35 {offsets = [0, 0], sizes = [1, 8], strides = [1, 1]} : vector<1x32xf32> to vector<1x8xf32>
    %43 = arith.truncf %42 : vector<1x8xf32> to vector<1x8xbf16>
    %44 = vector.extract_strided_slice %36 {offsets = [0, 0], sizes = [1, 8], strides = [1, 1]} : vector<1x32xf32> to vector<1x8xf32>
    %45 = arith.truncf %44 : vector<1x8xf32> to vector<1x8xbf16>
    "tpu.trace_start"() <{level = 10 : i32, message = "qd,kd->qk"}> : () -> ()
    %46 = arith.extf %41 : vector<1x8xbf16> to vector<1x8xf32>
    %47 = arith.extf %43 : vector<1x8xbf16> to vector<1x8xf32>
    %cst_24 = arith.constant dense<0.000000e+00> : vector<1xf32>
    %48 = arith.mulf %46, %47 : vector<1x8xf32>
    %49 = vector.multi_reduction <add>, %48, %cst_24 [1] : vector<1x8xf32> to vector<1xf32>
    %50 = vector.shape_cast %49 : vector<1xf32> to vector<1x1xf32>
    %cst_25 = arith.constant -9.99999984E+17 : f32
    "tpu.trace_stop"() : () -> ()
    %51 = vector.broadcast %cst_25 : f32 to vector<1x1xf32>
    %52 = arith.select %33, %51, %50 : vector<1x1xi1>, vector<1x1xf32>
    %cst_26 = arith.constant dense<0xFF800000> : vector<1xf32>
    %53 = vector.multi_reduction <maximumf>, %52, %cst_26 [1] : vector<1x1xf32> to vector<1xf32>
    %54 = vector.shape_cast %53 : vector<1xf32> to vector<1x1xf32>
    %55 = arith.subf %52, %54 : vector<1x1xf32>
    %56 = math.exp %55 : vector<1x1xf32>
    %cst_27 = arith.constant dense<0.000000e+00> : vector<1xf32>
    %57 = vector.multi_reduction <add>, %56, %cst_27 [1] : vector<1x1xf32> to vector<1xf32>
    %58 = vector.shape_cast %57 : vector<1xf32> to vector<1x1xf32>
    %59 = arith.divf %56, %58 : vector<1x1xf32>
    %60 = arith.truncf %59 : vector<1x1xf32> to vector<1x1xbf16>
    %cst_28 = arith.constant dense<0.000000e+00> : vector<1x8xf32>
    %61 = tpu.matmul %60, %45, %cst_28 {dimension_numbers = #tpu.dot_dimension_numbers<[1], [0], [0], [1], [0, 0, 1, 1], [], []>} : vector<1x1xbf16>, vector<1x8xbf16>, vector<1x8xf32> -> vector<1x8xf32>
    %62 = arith.truncf %61 : vector<1x8xf32> to vector<1x8xbf16>
    %63 = vector.extract_strided_slice %37 {offsets = [0, 0], sizes = [8, 32], strides = [1, 1]} : vector<32x32xbf16> to vector<8x32xbf16>
    %cst_29 = arith.constant dense<0.000000e+00> : vector<1x32xf32>
    %64 = tpu.matmul %62, %63, %cst_29 {dimension_numbers = #tpu.dot_dimension_numbers<[1], [0], [0], [1], [0, 0, 1, 1], [], []>} : vector<1x8xbf16>, vector<8x32xbf16>, vector<1x32xf32> -> vector<1x32xf32>
    %65 = vector.extract_strided_slice %39 {offsets = [0, 8], sizes = [1, 8], strides = [1, 1]} : vector<1x32xf32> to vector<1x8xf32>
    %66 = arith.truncf %65 : vector<1x8xf32> to vector<1x8xbf16>
    %67 = vector.extract_strided_slice %35 {offsets = [0, 8], sizes = [1, 8], strides = [1, 1]} : vector<1x32xf32> to vector<1x8xf32>
    %68 = arith.truncf %67 : vector<1x8xf32> to vector<1x8xbf16>
    %69 = vector.extract_strided_slice %36 {offsets = [0, 8], sizes = [1, 8], strides = [1, 1]} : vector<1x32xf32> to vector<1x8xf32>
    %70 = arith.truncf %69 : vector<1x8xf32> to vector<1x8xbf16>
    "tpu.trace_start"() <{level = 10 : i32, message = "qd,kd->qk"}> : () -> ()
    %71 = arith.extf %66 : vector<1x8xbf16> to vector<1x8xf32>
    %72 = arith.extf %68 : vector<1x8xbf16> to vector<1x8xf32>
    %cst_30 = arith.constant dense<0.000000e+00> : vector<1xf32>
    %73 = arith.mulf %71, %72 : vector<1x8xf32>
    %74 = vector.multi_reduction <add>, %73, %cst_30 [1] : vector<1x8xf32> to vector<1xf32>
    %75 = vector.shape_cast %74 : vector<1xf32> to vector<1x1xf32>
    %cst_31 = arith.constant -9.99999984E+17 : f32
    "tpu.trace_stop"() : () -> ()
    %76 = vector.broadcast %cst_31 : f32 to vector<1x1xf32>
    %77 = arith.select %33, %76, %75 : vector<1x1xi1>, vector<1x1xf32>
    %cst_32 = arith.constant dense<0xFF800000> : vector<1xf32>
    %78 = vector.multi_reduction <maximumf>, %77, %cst_32 [1] : vector<1x1xf32> to vector<1xf32>
    %79 = vector.shape_cast %78 : vector<1xf32> to vector<1x1xf32>
    %80 = arith.subf %77, %79 : vector<1x1xf32>
    %81 = math.exp %80 : vector<1x1xf32>
    %cst_33 = arith.constant dense<0.000000e+00> : vector<1xf32>
    %82 = vector.multi_reduction <add>, %81, %cst_33 [1] : vector<1x1xf32> to vector<1xf32>
    %83 = vector.shape_cast %82 : vector<1xf32> to vector<1x1xf32>
    %84 = arith.divf %81, %83 : vector<1x1xf32>
    %85 = arith.truncf %84 : vector<1x1xf32> to vector<1x1xbf16>
    %cst_34 = arith.constant dense<0.000000e+00> : vector<1x8xf32>
    %86 = tpu.matmul %85, %70, %cst_34 {dimension_numbers = #tpu.dot_dimension_numbers<[1], [0], [0], [1], [0, 0, 1, 1], [], []>} : vector<1x1xbf16>, vector<1x8xbf16>, vector<1x8xf32> -> vector<1x8xf32>
    %87 = arith.truncf %86 : vector<1x8xf32> to vector<1x8xbf16>
    %88 = vector.extract_strided_slice %37 {offsets = [8, 0], sizes = [8, 32], strides = [1, 1]} : vector<32x32xbf16> to vector<8x32xbf16>
    %cst_35 = arith.constant dense<0.000000e+00> : vector<1x32xf32>
    %89 = tpu.matmul %87, %88, %cst_35 {dimension_numbers = #tpu.dot_dimension_numbers<[1], [0], [0], [1], [0, 0, 1, 1], [], []>} : vector<1x8xbf16>, vector<8x32xbf16>, vector<1x32xf32> -> vector<1x32xf32>
    %90 = arith.addf %64, %89 : vector<1x32xf32>
    %91 = vector.extract_strided_slice %39 {offsets = [0, 16], sizes = [1, 8], strides = [1, 1]} : vector<1x32xf32> to vector<1x8xf32>
    %92 = arith.truncf %91 : vector<1x8xf32> to vector<1x8xbf16>
    %93 = vector.extract_strided_slice %35 {offsets = [0, 16], sizes = [1, 8], strides = [1, 1]} : vector<1x32xf32> to vector<1x8xf32>
    %94 = arith.truncf %93 : vector<1x8xf32> to vector<1x8xbf16>
    %95 = vector.extract_strided_slice %36 {offsets = [0, 16], sizes = [1, 8], strides = [1, 1]} : vector<1x32xf32> to vector<1x8xf32>
    %96 = arith.truncf %95 : vector<1x8xf32> to vector<1x8xbf16>
    "tpu.trace_start"() <{level = 10 : i32, message = "qd,kd->qk"}> : () -> ()
    %97 = arith.extf %92 : vector<1x8xbf16> to vector<1x8xf32>
    %98 = arith.extf %94 : vector<1x8xbf16> to vector<1x8xf32>
    %cst_36 = arith.constant dense<0.000000e+00> : vector<1xf32>
    %99 = arith.mulf %97, %98 : vector<1x8xf32>
    %100 = vector.multi_reduction <add>, %99, %cst_36 [1] : vector<1x8xf32> to vector<1xf32>
    %101 = vector.shape_cast %100 : vector<1xf32> to vector<1x1xf32>
    %cst_37 = arith.constant -9.99999984E+17 : f32
    "tpu.trace_stop"() : () -> ()
    %102 = vector.broadcast %cst_37 : f32 to vector<1x1xf32>
    %103 = arith.select %33, %102, %101 : vector<1x1xi1>, vector<1x1xf32>
    %cst_38 = arith.constant dense<0xFF800000> : vector<1xf32>
    %104 = vector.multi_reduction <maximumf>, %103, %cst_38 [1] : vector<1x1xf32> to vector<1xf32>
    %105 = vector.shape_cast %104 : vector<1xf32> to vector<1x1xf32>
    %106 = arith.subf %103, %105 : vector<1x1xf32>
    %107 = math.exp %106 : vector<1x1xf32>
    %cst_39 = arith.constant dense<0.000000e+00> : vector<1xf32>
    %108 = vector.multi_reduction <add>, %107, %cst_39 [1] : vector<1x1xf32> to vector<1xf32>
    %109 = vector.shape_cast %108 : vector<1xf32> to vector<1x1xf32>
    %110 = arith.divf %107, %109 : vector<1x1xf32>
    %111 = arith.truncf %110 : vector<1x1xf32> to vector<1x1xbf16>
    %cst_40 = arith.constant dense<0.000000e+00> : vector<1x8xf32>
    %112 = tpu.matmul %111, %96, %cst_40 {dimension_numbers = #tpu.dot_dimension_numbers<[1], [0], [0], [1], [0, 0, 1, 1], [], []>} : vector<1x1xbf16>, vector<1x8xbf16>, vector<1x8xf32> -> vector<1x8xf32>
    %113 = arith.truncf %112 : vector<1x8xf32> to vector<1x8xbf16>
    %114 = vector.extract_strided_slice %37 {offsets = [16, 0], sizes = [8, 32], strides = [1, 1]} : vector<32x32xbf16> to vector<8x32xbf16>
    %cst_41 = arith.constant dense<0.000000e+00> : vector<1x32xf32>
    %115 = tpu.matmul %113, %114, %cst_41 {dimension_numbers = #tpu.dot_dimension_numbers<[1], [0], [0], [1], [0, 0, 1, 1], [], []>} : vector<1x8xbf16>, vector<8x32xbf16>, vector<1x32xf32> -> vector<1x32xf32>
    %116 = arith.addf %90, %115 : vector<1x32xf32>
    %117 = vector.extract_strided_slice %39 {offsets = [0, 24], sizes = [1, 8], strides = [1, 1]} : vector<1x32xf32> to vector<1x8xf32>
    %118 = arith.truncf %117 : vector<1x8xf32> to vector<1x8xbf16>
    %119 = vector.extract_strided_slice %35 {offsets = [0, 24], sizes = [1, 8], strides = [1, 1]} : vector<1x32xf32> to vector<1x8xf32>
    %120 = arith.truncf %119 : vector<1x8xf32> to vector<1x8xbf16>
    %121 = vector.extract_strided_slice %36 {offsets = [0, 24], sizes = [1, 8], strides = [1, 1]} : vector<1x32xf32> to vector<1x8xf32>
    %122 = arith.truncf %121 : vector<1x8xf32> to vector<1x8xbf16>
    "tpu.trace_start"() <{level = 10 : i32, message = "qd,kd->qk"}> : () -> ()
    %123 = arith.extf %118 : vector<1x8xbf16> to vector<1x8xf32>
    %124 = arith.extf %120 : vector<1x8xbf16> to vector<1x8xf32>
    %cst_42 = arith.constant dense<0.000000e+00> : vector<1xf32>
    %125 = arith.mulf %123, %124 : vector<1x8xf32>
    %126 = vector.multi_reduction <add>, %125, %cst_42 [1] : vector<1x8xf32> to vector<1xf32>
    %127 = vector.shape_cast %126 : vector<1xf32> to vector<1x1xf32>
    %cst_43 = arith.constant -9.99999984E+17 : f32
    "tpu.trace_stop"() : () -> ()
    %128 = vector.broadcast %cst_43 : f32 to vector<1x1xf32>
    %129 = arith.select %33, %128, %127 : vector<1x1xi1>, vector<1x1xf32>
    %cst_44 = arith.constant dense<0xFF800000> : vector<1xf32>
    %130 = vector.multi_reduction <maximumf>, %129, %cst_44 [1] : vector<1x1xf32> to vector<1xf32>
    %131 = vector.shape_cast %130 : vector<1xf32> to vector<1x1xf32>
    %132 = arith.subf %129, %131 : vector<1x1xf32>
    %133 = math.exp %132 : vector<1x1xf32>
    %cst_45 = arith.constant dense<0.000000e+00> : vector<1xf32>
    %134 = vector.multi_reduction <add>, %133, %cst_45 [1] : vector<1x1xf32> to vector<1xf32>
    %135 = vector.shape_cast %134 : vector<1xf32> to vector<1x1xf32>
    %136 = arith.divf %133, %135 : vector<1x1xf32>
    %137 = arith.truncf %136 : vector<1x1xf32> to vector<1x1xbf16>
    %cst_46 = arith.constant dense<0.000000e+00> : vector<1x8xf32>
    %138 = tpu.matmul %137, %122, %cst_46 {dimension_numbers = #tpu.dot_dimension_numbers<[1], [0], [0], [1], [0, 0, 1, 1], [], []>} : vector<1x1xbf16>, vector<1x8xbf16>, vector<1x8xf32> -> vector<1x8xf32>
    %139 = arith.truncf %138 : vector<1x8xf32> to vector<1x8xbf16>
    %140 = vector.extract_strided_slice %37 {offsets = [24, 0], sizes = [8, 32], strides = [1, 1]} : vector<32x32xbf16> to vector<8x32xbf16>
    %cst_47 = arith.constant dense<0.000000e+00> : vector<1x32xf32>
    %141 = tpu.matmul %139, %140, %cst_47 {dimension_numbers = #tpu.dot_dimension_numbers<[1], [0], [0], [1], [0, 0, 1, 1], [], []>} : vector<1x8xbf16>, vector<8x32xbf16>, vector<1x32xf32> -> vector<1x32xf32>
    %142 = arith.addf %116, %141 : vector<1x32xf32>
    %c0_48 = arith.constant 0 : index
    %c0_49 = arith.constant 0 : index
    %143 = vector.load %arg15[%c0_48, %c0_49] : memref<1x32xf32, #tpu.memory_space<vmem>>, vector<1x32xf32>
    %144 = arith.addf %142, %143 : vector<1x32xf32>
    %145 = arith.addf %144, %1 : vector<1x32xf32>
    %c0_50 = arith.constant 0 : index
    %c0_51 = arith.constant 0 : index
    %146 = vector.load %arg16[%c0_50, %c0_51] : memref<1x32xf32, #tpu.memory_space<vmem>>, vector<1x32xf32>
    %c0_52 = arith.constant 0 : index
    %c0_53 = arith.constant 0 : index
    %147 = vector.load %arg17[%c0_52, %c0_53] : memref<1x32xf32, #tpu.memory_space<vmem>>, vector<1x32xf32>
    %cst_54 = arith.constant dense<0.000000e+00> : vector<1xf32>
    %148 = vector.multi_reduction <add>, %145, %cst_54 [1] : vector<1x32xf32> to vector<1xf32>
    %149 = vector.shape_cast %148 : vector<1xf32> to vector<1x1xf32>
    %cst_55 = arith.constant 3.200000e+01 : f32
    %150 = vector.broadcast %cst_55 : f32 to vector<1x1xf32>
    %151 = arith.divf %149, %150 : vector<1x1xf32>
    %152 = vector.broadcast %151 : vector<1x1xf32> to vector<1x32xf32>
    %153 = arith.subf %145, %152 : vector<1x32xf32>
    %154 = arith.mulf %153, %153 : vector<1x32xf32>
    %cst_56 = arith.constant dense<0.000000e+00> : vector<1xf32>
    %155 = vector.multi_reduction <add>, %154, %cst_56 [1] : vector<1x32xf32> to vector<1xf32>
    %156 = vector.shape_cast %155 : vector<1xf32> to vector<1x1xf32>
    %cst_57 = arith.constant 3.200000e+01 : f32
    %157 = vector.broadcast %cst_57 : f32 to vector<1x1xf32>
    %158 = arith.divf %156, %157 : vector<1x1xf32>
    %cst_58 = arith.constant 9.99999997E-7 : f32
    %159 = vector.broadcast %cst_58 : f32 to vector<1x1xf32>
    %160 = arith.addf %158, %159 : vector<1x1xf32>
    %161 = math.rsqrt %160 : vector<1x1xf32>
    %162 = vector.broadcast %161 : vector<1x1xf32> to vector<1x32xf32>
    %163 = arith.mulf %153, %162 : vector<1x32xf32>
    %164 = arith.mulf %163, %146 : vector<1x32xf32>
    %165 = arith.addf %164, %147 : vector<1x32xf32>
    %166 = arith.truncf %165 : vector<1x32xf32> to vector<1x32xbf16>
    %c0_59 = arith.constant 0 : index
    %c0_60 = arith.constant 0 : index
    %167 = vector.load %arg18[%c0_59, %c0_60] : memref<32x96xbf16, #tpu.memory_space<vmem>>, vector<32x96xbf16>
    %cst_61 = arith.constant dense<0.000000e+00> : vector<1x96xf32>
    %168 = tpu.matmul %166, %167, %cst_61 {dimension_numbers = #tpu.dot_dimension_numbers<[1], [0], [0], [1], [0, 0, 1, 1], [], []>} : vector<1x32xbf16>, vector<32x96xbf16>, vector<1x96xf32> -> vector<1x96xf32>
    %c0_62 = arith.constant 0 : index
    %c0_63 = arith.constant 0 : index
    %169 = vector.load %arg19[%c0_62, %c0_63] : memref<1x96xf32, #tpu.memory_space<vmem>>, vector<1x96xf32>
    %170 = arith.addf %168, %169 : vector<1x96xf32>
    %c0_64 = arith.constant 0 : index
    %c0_65 = arith.constant 0 : index
    %c0_66 = arith.constant 0 : index
    %171 = vector.load %arg3[%c0_64, %c0_65, %c0_66] : memref<1x16x32xf32, #tpu.memory_space<vmem>>, vector<1x16x32xf32>
    %172 = vector.shape_cast %171 : vector<1x16x32xf32> to vector<16x32xf32>
    %173 = arith.truncf %172 : vector<16x32xf32> to vector<16x32xbf16>
    %c0_67 = arith.constant 0 : index
    %c0_68 = arith.constant 0 : index
    %174 = vector.load %arg20[%c0_67, %c0_68] : memref<32x64xbf16, #tpu.memory_space<vmem>>, vector<32x64xbf16>
    %cst_69 = arith.constant dense<0.000000e+00> : vector<16x64xf32>
    %175 = tpu.matmul %173, %174, %cst_69 {dimension_numbers = #tpu.dot_dimension_numbers<[1], [0], [0], [1], [0, 0, 1, 1], [], []>} : vector<16x32xbf16>, vector<32x64xbf16>, vector<16x64xf32> -> vector<16x64xf32>
    %c0_70 = arith.constant 0 : index
    %c0_71 = arith.constant 0 : index
    %176 = vector.load %arg21[%c0_70, %c0_71] : memref<1x64xf32, #tpu.memory_space<vmem>>, vector<1x64xf32>
    %177 = vector.broadcast %176 : vector<1x64xf32> to vector<16x64xf32>
    %178 = arith.addf %175, %177 : vector<16x64xf32>
    %179 = vector.extract_strided_slice %170 {offsets = [0, 0], sizes = [1, 32], strides = [1, 1]} : vector<1x96xf32> to vector<1x32xf32>
    %c0_72 = arith.constant 0 : index
    %c0_73 = arith.constant 0 : index
    %c0_74 = arith.constant 0 : index
    %180 = vector.load %arg4[%c0_72, %c0_73, %c0_74] : memref<1x1x16xi32, #tpu.memory_space<vmem>>, vector<1x1x16xi32>
    %181 = vector.shape_cast %180 : vector<1x1x16xi32> to vector<1x16xi32>
    %c0_i32_75 = arith.constant 0 : i32
    %182 = vector.broadcast %c0_i32_75 : i32 to vector<1x16xi32>
    %183 = arith.cmpi sgt, %181, %182 : vector<1x16xi32>
    %184 = vector.extract_strided_slice %178 {offsets = [0, 0], sizes = [16, 32], strides = [1, 1]} : vector<16x64xf32> to vector<16x32xf32>
    %185 = vector.extract_strided_slice %178 {offsets = [0, 32], sizes = [16, 32], strides = [1, 1]} : vector<16x64xf32> to vector<16x32xf32>
    %c0_76 = arith.constant 0 : index
    %c0_77 = arith.constant 0 : index
    %186 = vector.load %arg26[%c0_76, %c0_77] : memref<32x32xbf16, #tpu.memory_space<vmem>>, vector<32x32xbf16>
    %cst_78 = arith.constant 0.353553385 : f32
    %187 = vector.broadcast %cst_78 : f32 to vector<1x32xf32>
    %188 = arith.mulf %179, %187 : vector<1x32xf32>
    %189 = vector.extract_strided_slice %188 {offsets = [0, 0], sizes = [1, 8], strides = [1, 1]} : vector<1x32xf32> to vector<1x8xf32>
    %190 = arith.truncf %189 : vector<1x8xf32> to vector<1x8xbf16>
    %191 = vector.extract_strided_slice %184 {offsets = [0, 0], sizes = [16, 8], strides = [1, 1]} : vector<16x32xf32> to vector<16x8xf32>
    %192 = arith.truncf %191 : vector<16x8xf32> to vector<16x8xbf16>
    %193 = vector.extract_strided_slice %185 {offsets = [0, 0], sizes = [16, 8], strides = [1, 1]} : vector<16x32xf32> to vector<16x8xf32>
    %194 = arith.truncf %193 : vector<16x8xf32> to vector<16x8xbf16>
    "tpu.trace_start"() <{level = 10 : i32, message = "qd,kd->qk"}> : () -> ()
    %cst_79 = arith.constant dense<0.000000e+00> : vector<1x16xf32>
    %195 = tpu.matmul %190, %192, %cst_79 {dimension_numbers = #tpu.dot_dimension_numbers<[1], [1], [0], [0], [0, 0, 1, 0], [], []>} : vector<1x8xbf16>, vector<16x8xbf16>, vector<1x16xf32> -> vector<1x16xf32>
    %cst_80 = arith.constant -9.99999984E+17 : f32
    "tpu.trace_stop"() : () -> ()
    %196 = vector.broadcast %cst_80 : f32 to vector<1x16xf32>
    %197 = arith.select %183, %196, %195 : vector<1x16xi1>, vector<1x16xf32>
    %cst_81 = arith.constant dense<0xFF800000> : vector<1xf32>
    %198 = vector.multi_reduction <maximumf>, %197, %cst_81 [1] : vector<1x16xf32> to vector<1xf32>
    %199 = vector.shape_cast %198 : vector<1xf32> to vector<1x1xf32>
    %200 = vector.broadcast %199 : vector<1x1xf32> to vector<1x16xf32>
    %201 = arith.subf %197, %200 : vector<1x16xf32>
    %202 = math.exp %201 : vector<1x16xf32>
    %cst_82 = arith.constant dense<0.000000e+00> : vector<1xf32>
    %203 = vector.multi_reduction <add>, %202, %cst_82 [1] : vector<1x16xf32> to vector<1xf32>
    %204 = vector.shape_cast %203 : vector<1xf32> to vector<1x1xf32>
    %205 = vector.broadcast %204 : vector<1x1xf32> to vector<1x16xf32>
    %206 = arith.divf %202, %205 : vector<1x16xf32>
    %207 = arith.truncf %206 : vector<1x16xf32> to vector<1x16xbf16>
    %cst_83 = arith.constant dense<0.000000e+00> : vector<1x8xf32>
    %208 = tpu.matmul %207, %194, %cst_83 {dimension_numbers = #tpu.dot_dimension_numbers<[1], [0], [0], [1], [0, 0, 1, 1], [], []>} : vector<1x16xbf16>, vector<16x8xbf16>, vector<1x8xf32> -> vector<1x8xf32>
    %209 = arith.truncf %208 : vector<1x8xf32> to vector<1x8xbf16>
    %210 = vector.extract_strided_slice %186 {offsets = [0, 0], sizes = [8, 32], strides = [1, 1]} : vector<32x32xbf16> to vector<8x32xbf16>
    %cst_84 = arith.constant dense<0.000000e+00> : vector<1x32xf32>
    %211 = tpu.matmul %209, %210, %cst_84 {dimension_numbers = #tpu.dot_dimension_numbers<[1], [0], [0], [1], [0, 0, 1, 1], [], []>} : vector<1x8xbf16>, vector<8x32xbf16>, vector<1x32xf32> -> vector<1x32xf32>
    %212 = vector.extract_strided_slice %188 {offsets = [0, 8], sizes = [1, 8], strides = [1, 1]} : vector<1x32xf32> to vector<1x8xf32>
    %213 = arith.truncf %212 : vector<1x8xf32> to vector<1x8xbf16>
    %214 = vector.extract_strided_slice %184 {offsets = [0, 8], sizes = [16, 8], strides = [1, 1]} : vector<16x32xf32> to vector<16x8xf32>
    %215 = arith.truncf %214 : vector<16x8xf32> to vector<16x8xbf16>
    %216 = vector.extract_strided_slice %185 {offsets = [0, 8], sizes = [16, 8], strides = [1, 1]} : vector<16x32xf32> to vector<16x8xf32>
    %217 = arith.truncf %216 : vector<16x8xf32> to vector<16x8xbf16>
    "tpu.trace_start"() <{level = 10 : i32, message = "qd,kd->qk"}> : () -> ()
    %cst_85 = arith.constant dense<0.000000e+00> : vector<1x16xf32>
    %218 = tpu.matmul %213, %215, %cst_85 {dimension_numbers = #tpu.dot_dimension_numbers<[1], [1], [0], [0], [0, 0, 1, 0], [], []>} : vector<1x8xbf16>, vector<16x8xbf16>, vector<1x16xf32> -> vector<1x16xf32>
    %cst_86 = arith.constant -9.99999984E+17 : f32
    "tpu.trace_stop"() : () -> ()
    %219 = vector.broadcast %cst_86 : f32 to vector<1x16xf32>
    %220 = arith.select %183, %219, %218 : vector<1x16xi1>, vector<1x16xf32>
    %cst_87 = arith.constant dense<0xFF800000> : vector<1xf32>
    %221 = vector.multi_reduction <maximumf>, %220, %cst_87 [1] : vector<1x16xf32> to vector<1xf32>
    %222 = vector.shape_cast %221 : vector<1xf32> to vector<1x1xf32>
    %223 = vector.broadcast %222 : vector<1x1xf32> to vector<1x16xf32>
    %224 = arith.subf %220, %223 : vector<1x16xf32>
    %225 = math.exp %224 : vector<1x16xf32>
    %cst_88 = arith.constant dense<0.000000e+00> : vector<1xf32>
    %226 = vector.multi_reduction <add>, %225, %cst_88 [1] : vector<1x16xf32> to vector<1xf32>
    %227 = vector.shape_cast %226 : vector<1xf32> to vector<1x1xf32>
    %228 = vector.broadcast %227 : vector<1x1xf32> to vector<1x16xf32>
    %229 = arith.divf %225, %228 : vector<1x16xf32>
    %230 = arith.truncf %229 : vector<1x16xf32> to vector<1x16xbf16>
    %cst_89 = arith.constant dense<0.000000e+00> : vector<1x8xf32>
    %231 = tpu.matmul %230, %217, %cst_89 {dimension_numbers = #tpu.dot_dimension_numbers<[1], [0], [0], [1], [0, 0, 1, 1], [], []>} : vector<1x16xbf16>, vector<16x8xbf16>, vector<1x8xf32> -> vector<1x8xf32>
    %232 = arith.truncf %231 : vector<1x8xf32> to vector<1x8xbf16>
    %233 = vector.extract_strided_slice %186 {offsets = [8, 0], sizes = [8, 32], strides = [1, 1]} : vector<32x32xbf16> to vector<8x32xbf16>
    %cst_90 = arith.constant dense<0.000000e+00> : vector<1x32xf32>
    %234 = tpu.matmul %232, %233, %cst_90 {dimension_numbers = #tpu.dot_dimension_numbers<[1], [0], [0], [1], [0, 0, 1, 1], [], []>} : vector<1x8xbf16>, vector<8x32xbf16>, vector<1x32xf32> -> vector<1x32xf32>
    %235 = arith.addf %211, %234 : vector<1x32xf32>
    %236 = vector.extract_strided_slice %188 {offsets = [0, 16], sizes = [1, 8], strides = [1, 1]} : vector<1x32xf32> to vector<1x8xf32>
    %237 = arith.truncf %236 : vector<1x8xf32> to vector<1x8xbf16>
    %238 = vector.extract_strided_slice %184 {offsets = [0, 16], sizes = [16, 8], strides = [1, 1]} : vector<16x32xf32> to vector<16x8xf32>
    %239 = arith.truncf %238 : vector<16x8xf32> to vector<16x8xbf16>
    %240 = vector.extract_strided_slice %185 {offsets = [0, 16], sizes = [16, 8], strides = [1, 1]} : vector<16x32xf32> to vector<16x8xf32>
    %241 = arith.truncf %240 : vector<16x8xf32> to vector<16x8xbf16>
    "tpu.trace_start"() <{level = 10 : i32, message = "qd,kd->qk"}> : () -> ()
    %cst_91 = arith.constant dense<0.000000e+00> : vector<1x16xf32>
    %242 = tpu.matmul %237, %239, %cst_91 {dimension_numbers = #tpu.dot_dimension_numbers<[1], [1], [0], [0], [0, 0, 1, 0], [], []>} : vector<1x8xbf16>, vector<16x8xbf16>, vector<1x16xf32> -> vector<1x16xf32>
    %cst_92 = arith.constant -9.99999984E+17 : f32
    "tpu.trace_stop"() : () -> ()
    %243 = vector.broadcast %cst_92 : f32 to vector<1x16xf32>
    %244 = arith.select %183, %243, %242 : vector<1x16xi1>, vector<1x16xf32>
    %cst_93 = arith.constant dense<0xFF800000> : vector<1xf32>
    %245 = vector.multi_reduction <maximumf>, %244, %cst_93 [1] : vector<1x16xf32> to vector<1xf32>
    %246 = vector.shape_cast %245 : vector<1xf32> to vector<1x1xf32>
    %247 = vector.broadcast %246 : vector<1x1xf32> to vector<1x16xf32>
    %248 = arith.subf %244, %247 : vector<1x16xf32>
    %249 = math.exp %248 : vector<1x16xf32>
    %cst_94 = arith.constant dense<0.000000e+00> : vector<1xf32>
    %250 = vector.multi_reduction <add>, %249, %cst_94 [1] : vector<1x16xf32> to vector<1xf32>
    %251 = vector.shape_cast %250 : vector<1xf32> to vector<1x1xf32>
    %252 = vector.broadcast %251 : vector<1x1xf32> to vector<1x16xf32>
    %253 = arith.divf %249, %252 : vector<1x16xf32>
    %254 = arith.truncf %253 : vector<1x16xf32> to vector<1x16xbf16>
    %cst_95 = arith.constant dense<0.000000e+00> : vector<1x8xf32>
    %255 = tpu.matmul %254, %241, %cst_95 {dimension_numbers = #tpu.dot_dimension_numbers<[1], [0], [0], [1], [0, 0, 1, 1], [], []>} : vector<1x16xbf16>, vector<16x8xbf16>, vector<1x8xf32> -> vector<1x8xf32>
    %256 = arith.truncf %255 : vector<1x8xf32> to vector<1x8xbf16>
    %257 = vector.extract_strided_slice %186 {offsets = [16, 0], sizes = [8, 32], strides = [1, 1]} : vector<32x32xbf16> to vector<8x32xbf16>
    %cst_96 = arith.constant dense<0.000000e+00> : vector<1x32xf32>
    %258 = tpu.matmul %256, %257, %cst_96 {dimension_numbers = #tpu.dot_dimension_numbers<[1], [0], [0], [1], [0, 0, 1, 1], [], []>} : vector<1x8xbf16>, vector<8x32xbf16>, vector<1x32xf32> -> vector<1x32xf32>
    %259 = arith.addf %235, %258 : vector<1x32xf32>
    %260 = vector.extract_strided_slice %188 {offsets = [0, 24], sizes = [1, 8], strides = [1, 1]} : vector<1x32xf32> to vector<1x8xf32>
    %261 = arith.truncf %260 : vector<1x8xf32> to vector<1x8xbf16>
    %262 = vector.extract_strided_slice %184 {offsets = [0, 24], sizes = [16, 8], strides = [1, 1]} : vector<16x32xf32> to vector<16x8xf32>
    %263 = arith.truncf %262 : vector<16x8xf32> to vector<16x8xbf16>
    %264 = vector.extract_strided_slice %185 {offsets = [0, 24], sizes = [16, 8], strides = [1, 1]} : vector<16x32xf32> to vector<16x8xf32>
    %265 = arith.truncf %264 : vector<16x8xf32> to vector<16x8xbf16>
    "tpu.trace_start"() <{level = 10 : i32, message = "qd,kd->qk"}> : () -> ()
    %cst_97 = arith.constant dense<0.000000e+00> : vector<1x16xf32>
    %266 = tpu.matmul %261, %263, %cst_97 {dimension_numbers = #tpu.dot_dimension_numbers<[1], [1], [0], [0], [0, 0, 1, 0], [], []>} : vector<1x8xbf16>, vector<16x8xbf16>, vector<1x16xf32> -> vector<1x16xf32>
    %cst_98 = arith.constant -9.99999984E+17 : f32
    "tpu.trace_stop"() : () -> ()
    %267 = vector.broadcast %cst_98 : f32 to vector<1x16xf32>
    %268 = arith.select %183, %267, %266 : vector<1x16xi1>, vector<1x16xf32>
    %cst_99 = arith.constant dense<0xFF800000> : vector<1xf32>
    %269 = vector.multi_reduction <maximumf>, %268, %cst_99 [1] : vector<1x16xf32> to vector<1xf32>
    %270 = vector.shape_cast %269 : vector<1xf32> to vector<1x1xf32>
    %271 = vector.broadcast %270 : vector<1x1xf32> to vector<1x16xf32>
    %272 = arith.subf %268, %271 : vector<1x16xf32>
    %273 = math.exp %272 : vector<1x16xf32>
    %cst_100 = arith.constant dense<0.000000e+00> : vector<1xf32>
    %274 = vector.multi_reduction <add>, %273, %cst_100 [1] : vector<1x16xf32> to vector<1xf32>
    %275 = vector.shape_cast %274 : vector<1xf32> to vector<1x1xf32>
    %276 = vector.broadcast %275 : vector<1x1xf32> to vector<1x16xf32>
    %277 = arith.divf %273, %276 : vector<1x16xf32>
    %278 = arith.truncf %277 : vector<1x16xf32> to vector<1x16xbf16>
    %cst_101 = arith.constant dense<0.000000e+00> : vector<1x8xf32>
    %279 = tpu.matmul %278, %265, %cst_101 {dimension_numbers = #tpu.dot_dimension_numbers<[1], [0], [0], [1], [0, 0, 1, 1], [], []>} : vector<1x16xbf16>, vector<16x8xbf16>, vector<1x8xf32> -> vector<1x8xf32>
    %280 = arith.truncf %279 : vector<1x8xf32> to vector<1x8xbf16>
    %281 = vector.extract_strided_slice %186 {offsets = [24, 0], sizes = [8, 32], strides = [1, 1]} : vector<32x32xbf16> to vector<8x32xbf16>
    %cst_102 = arith.constant dense<0.000000e+00> : vector<1x32xf32>
    %282 = tpu.matmul %280, %281, %cst_102 {dimension_numbers = #tpu.dot_dimension_numbers<[1], [0], [0], [1], [0, 0, 1, 1], [], []>} : vector<1x8xbf16>, vector<8x32xbf16>, vector<1x32xf32> -> vector<1x32xf32>
    %283 = arith.addf %259, %282 : vector<1x32xf32>
    %c0_103 = arith.constant 0 : index
    %c0_104 = arith.constant 0 : index
    %284 = vector.load %arg27[%c0_103, %c0_104] : memref<1x32xf32, #tpu.memory_space<vmem>>, vector<1x32xf32>
    %285 = arith.addf %283, %284 : vector<1x32xf32>
    %c0_105 = arith.constant 0 : index
    %c0_106 = arith.constant 0 : index
    %c0_107 = arith.constant 0 : index
    %286 = vector.load %arg7[%c0_105, %c0_106, %c0_107] : memref<1x1x8xf32, #tpu.memory_space<vmem>>, vector<1x1x8xf32>
    %287 = vector.shape_cast %286 : vector<1x1x8xf32> to vector<1x8xf32>
    %c0_108 = arith.constant 0 : index
    %c0_109 = arith.constant 0 : index
    %c0_110 = arith.constant 0 : index
    %288 = vector.load %arg5[%c0_108, %c0_109, %c0_110] : memref<1x8x32xf32, #tpu.memory_space<vmem>>, vector<1x8x32xf32>
    %289 = vector.shape_cast %288 : vector<1x8x32xf32> to vector<8x32xf32>
    %290 = arith.truncf %289 : vector<8x32xf32> to vector<8x32xbf16>
    %c0_111 = arith.constant 0 : index
    %c0_112 = arith.constant 0 : index
    %291 = vector.load %arg22[%c0_111, %c0_112] : memref<32x64xbf16, #tpu.memory_space<vmem>>, vector<32x64xbf16>
    %cst_113 = arith.constant dense<0.000000e+00> : vector<8x64xf32>
    %292 = tpu.matmul %290, %291, %cst_113 {dimension_numbers = #tpu.dot_dimension_numbers<[1], [0], [0], [1], [0, 0, 1, 1], [], []>} : vector<8x32xbf16>, vector<32x64xbf16>, vector<8x64xf32> -> vector<8x64xf32>
    %c0_114 = arith.constant 0 : index
    %c0_115 = arith.constant 0 : index
    %293 = vector.load %arg23[%c0_114, %c0_115] : memref<1x64xf32, #tpu.memory_space<vmem>>, vector<1x64xf32>
    %294 = vector.broadcast %293 : vector<1x64xf32> to vector<8x64xf32>
    %295 = arith.addf %292, %294 : vector<8x64xf32>
    %296 = vector.extract_strided_slice %170 {offsets = [0, 32], sizes = [1, 32], strides = [1, 1]} : vector<1x96xf32> to vector<1x32xf32>
    %c0_116 = arith.constant 0 : index
    %c0_117 = arith.constant 0 : index
    %c0_118 = arith.constant 0 : index
    %297 = vector.load %arg6[%c0_116, %c0_117, %c0_118] : memref<1x1x8xi32, #tpu.memory_space<vmem>>, vector<1x1x8xi32>
    %298 = vector.shape_cast %297 : vector<1x1x8xi32> to vector<1x8xi32>
    %c0_i32_119 = arith.constant 0 : i32
    %299 = vector.broadcast %c0_i32_119 : i32 to vector<1x8xi32>
    %300 = arith.cmpi sgt, %298, %299 : vector<1x8xi32>
    %301 = vector.extract_strided_slice %295 {offsets = [0, 0], sizes = [8, 32], strides = [1, 1]} : vector<8x64xf32> to vector<8x32xf32>
    %302 = vector.extract_strided_slice %295 {offsets = [0, 32], sizes = [8, 32], strides = [1, 1]} : vector<8x64xf32> to vector<8x32xf32>
    %c0_120 = arith.constant 0 : index
    %c0_121 = arith.constant 0 : index
    %303 = vector.load %arg28[%c0_120, %c0_121] : memref<32x32xbf16, #tpu.memory_space<vmem>>, vector<32x32xbf16>
    %cst_122 = arith.constant 0.353553385 : f32
    %304 = vector.broadcast %cst_122 : f32 to vector<1x32xf32>
    %305 = arith.mulf %296, %304 : vector<1x32xf32>
    %306 = vector.extract_strided_slice %305 {offsets = [0, 0], sizes = [1, 8], strides = [1, 1]} : vector<1x32xf32> to vector<1x8xf32>
    %307 = arith.truncf %306 : vector<1x8xf32> to vector<1x8xbf16>
    %308 = vector.extract_strided_slice %301 {offsets = [0, 0], sizes = [8, 8], strides = [1, 1]} : vector<8x32xf32> to vector<8x8xf32>
    %309 = arith.truncf %308 : vector<8x8xf32> to vector<8x8xbf16>
    %310 = vector.extract_strided_slice %302 {offsets = [0, 0], sizes = [8, 8], strides = [1, 1]} : vector<8x32xf32> to vector<8x8xf32>
    %311 = arith.truncf %310 : vector<8x8xf32> to vector<8x8xbf16>
    "tpu.trace_start"() <{level = 10 : i32, message = "qd,kd->qk"}> : () -> ()
    %cst_123 = arith.constant dense<0.000000e+00> : vector<1x8xf32>
    %312 = tpu.matmul %307, %309, %cst_123 {dimension_numbers = #tpu.dot_dimension_numbers<[1], [1], [0], [0], [0, 0, 1, 0], [], []>} : vector<1x8xbf16>, vector<8x8xbf16>, vector<1x8xf32> -> vector<1x8xf32>
    %cst_124 = arith.constant -9.99999984E+17 : f32
    "tpu.trace_stop"() : () -> ()
    %313 = vector.broadcast %cst_124 : f32 to vector<1x8xf32>
    %314 = arith.select %300, %313, %312 : vector<1x8xi1>, vector<1x8xf32>
    %cst_125 = arith.constant dense<0xFF800000> : vector<1xf32>
    %315 = vector.multi_reduction <maximumf>, %314, %cst_125 [1] : vector<1x8xf32> to vector<1xf32>
    %316 = vector.shape_cast %315 : vector<1xf32> to vector<1x1xf32>
    %317 = vector.broadcast %316 : vector<1x1xf32> to vector<1x8xf32>
    %318 = arith.subf %314, %317 : vector<1x8xf32>
    %319 = math.exp %318 : vector<1x8xf32>
    %cst_126 = arith.constant dense<0.000000e+00> : vector<1xf32>
    %320 = vector.multi_reduction <add>, %319, %cst_126 [1] : vector<1x8xf32> to vector<1xf32>
    %321 = vector.shape_cast %320 : vector<1xf32> to vector<1x1xf32>
    %322 = vector.broadcast %321 : vector<1x1xf32> to vector<1x8xf32>
    %323 = arith.divf %319, %322 : vector<1x8xf32>
    %324 = arith.mulf %323, %287 : vector<1x8xf32>
    %cst_127 = arith.constant dense<0.000000e+00> : vector<1xf32>
    %325 = vector.multi_reduction <add>, %324, %cst_127 [1] : vector<1x8xf32> to vector<1xf32>
    %326 = vector.shape_cast %325 : vector<1xf32> to vector<1x1xf32>
    %cst_128 = arith.constant 1.000000e-18 : f32
    %327 = vector.broadcast %cst_128 : f32 to vector<1x1xf32>
    %328 = arith.addf %326, %327 : vector<1x1xf32>
    %329 = vector.broadcast %328 : vector<1x1xf32> to vector<1x8xf32>
    %330 = arith.divf %324, %329 : vector<1x8xf32>
    %331 = arith.truncf %330 : vector<1x8xf32> to vector<1x8xbf16>
    %cst_129 = arith.constant dense<0.000000e+00> : vector<1x8xf32>
    %332 = tpu.matmul %331, %311, %cst_129 {dimension_numbers = #tpu.dot_dimension_numbers<[1], [0], [0], [1], [0, 0, 1, 1], [], []>} : vector<1x8xbf16>, vector<8x8xbf16>, vector<1x8xf32> -> vector<1x8xf32>
    %333 = arith.truncf %332 : vector<1x8xf32> to vector<1x8xbf16>
    %334 = vector.extract_strided_slice %303 {offsets = [0, 0], sizes = [8, 32], strides = [1, 1]} : vector<32x32xbf16> to vector<8x32xbf16>
    %cst_130 = arith.constant dense<0.000000e+00> : vector<1x32xf32>
    %335 = tpu.matmul %333, %334, %cst_130 {dimension_numbers = #tpu.dot_dimension_numbers<[1], [0], [0], [1], [0, 0, 1, 1], [], []>} : vector<1x8xbf16>, vector<8x32xbf16>, vector<1x32xf32> -> vector<1x32xf32>
    %336 = vector.extract_strided_slice %305 {offsets = [0, 8], sizes = [1, 8], strides = [1, 1]} : vector<1x32xf32> to vector<1x8xf32>
    %337 = arith.truncf %336 : vector<1x8xf32> to vector<1x8xbf16>
    %338 = vector.extract_strided_slice %301 {offsets = [0, 8], sizes = [8, 8], strides = [1, 1]} : vector<8x32xf32> to vector<8x8xf32>
    %339 = arith.truncf %338 : vector<8x8xf32> to vector<8x8xbf16>
    %340 = vector.extract_strided_slice %302 {offsets = [0, 8], sizes = [8, 8], strides = [1, 1]} : vector<8x32xf32> to vector<8x8xf32>
    %341 = arith.truncf %340 : vector<8x8xf32> to vector<8x8xbf16>
    "tpu.trace_start"() <{level = 10 : i32, message = "qd,kd->qk"}> : () -> ()
    %cst_131 = arith.constant dense<0.000000e+00> : vector<1x8xf32>
    %342 = tpu.matmul %337, %339, %cst_131 {dimension_numbers = #tpu.dot_dimension_numbers<[1], [1], [0], [0], [0, 0, 1, 0], [], []>} : vector<1x8xbf16>, vector<8x8xbf16>, vector<1x8xf32> -> vector<1x8xf32>
    %cst_132 = arith.constant -9.99999984E+17 : f32
    "tpu.trace_stop"() : () -> ()
    %343 = vector.broadcast %cst_132 : f32 to vector<1x8xf32>
    %344 = arith.select %300, %343, %342 : vector<1x8xi1>, vector<1x8xf32>
    %cst_133 = arith.constant dense<0xFF800000> : vector<1xf32>
    %345 = vector.multi_reduction <maximumf>, %344, %cst_133 [1] : vector<1x8xf32> to vector<1xf32>
    %346 = vector.shape_cast %345 : vector<1xf32> to vector<1x1xf32>
    %347 = vector.broadcast %346 : vector<1x1xf32> to vector<1x8xf32>
    %348 = arith.subf %344, %347 : vector<1x8xf32>
    %349 = math.exp %348 : vector<1x8xf32>
    %cst_134 = arith.constant dense<0.000000e+00> : vector<1xf32>
    %350 = vector.multi_reduction <add>, %349, %cst_134 [1] : vector<1x8xf32> to vector<1xf32>
    %351 = vector.shape_cast %350 : vector<1xf32> to vector<1x1xf32>
    %352 = vector.broadcast %351 : vector<1x1xf32> to vector<1x8xf32>
    %353 = arith.divf %349, %352 : vector<1x8xf32>
    %354 = arith.mulf %353, %287 : vector<1x8xf32>
    %cst_135 = arith.constant dense<0.000000e+00> : vector<1xf32>
    %355 = vector.multi_reduction <add>, %354, %cst_135 [1] : vector<1x8xf32> to vector<1xf32>
    %356 = vector.shape_cast %355 : vector<1xf32> to vector<1x1xf32>
    %cst_136 = arith.constant 1.000000e-18 : f32
    %357 = vector.broadcast %cst_136 : f32 to vector<1x1xf32>
    %358 = arith.addf %356, %357 : vector<1x1xf32>
    %359 = vector.broadcast %358 : vector<1x1xf32> to vector<1x8xf32>
    %360 = arith.divf %354, %359 : vector<1x8xf32>
    %361 = arith.truncf %360 : vector<1x8xf32> to vector<1x8xbf16>
    %cst_137 = arith.constant dense<0.000000e+00> : vector<1x8xf32>
    %362 = tpu.matmul %361, %341, %cst_137 {dimension_numbers = #tpu.dot_dimension_numbers<[1], [0], [0], [1], [0, 0, 1, 1], [], []>} : vector<1x8xbf16>, vector<8x8xbf16>, vector<1x8xf32> -> vector<1x8xf32>
    %363 = arith.truncf %362 : vector<1x8xf32> to vector<1x8xbf16>
    %364 = vector.extract_strided_slice %303 {offsets = [8, 0], sizes = [8, 32], strides = [1, 1]} : vector<32x32xbf16> to vector<8x32xbf16>
    %cst_138 = arith.constant dense<0.000000e+00> : vector<1x32xf32>
    %365 = tpu.matmul %363, %364, %cst_138 {dimension_numbers = #tpu.dot_dimension_numbers<[1], [0], [0], [1], [0, 0, 1, 1], [], []>} : vector<1x8xbf16>, vector<8x32xbf16>, vector<1x32xf32> -> vector<1x32xf32>
    %366 = arith.addf %335, %365 : vector<1x32xf32>
    %367 = vector.extract_strided_slice %305 {offsets = [0, 16], sizes = [1, 8], strides = [1, 1]} : vector<1x32xf32> to vector<1x8xf32>
    %368 = arith.truncf %367 : vector<1x8xf32> to vector<1x8xbf16>
    %369 = vector.extract_strided_slice %301 {offsets = [0, 16], sizes = [8, 8], strides = [1, 1]} : vector<8x32xf32> to vector<8x8xf32>
    %370 = arith.truncf %369 : vector<8x8xf32> to vector<8x8xbf16>
    %371 = vector.extract_strided_slice %302 {offsets = [0, 16], sizes = [8, 8], strides = [1, 1]} : vector<8x32xf32> to vector<8x8xf32>
    %372 = arith.truncf %371 : vector<8x8xf32> to vector<8x8xbf16>
    "tpu.trace_start"() <{level = 10 : i32, message = "qd,kd->qk"}> : () -> ()
    %cst_139 = arith.constant dense<0.000000e+00> : vector<1x8xf32>
    %373 = tpu.matmul %368, %370, %cst_139 {dimension_numbers = #tpu.dot_dimension_numbers<[1], [1], [0], [0], [0, 0, 1, 0], [], []>} : vector<1x8xbf16>, vector<8x8xbf16>, vector<1x8xf32> -> vector<1x8xf32>
    %cst_140 = arith.constant -9.99999984E+17 : f32
    "tpu.trace_stop"() : () -> ()
    %374 = vector.broadcast %cst_140 : f32 to vector<1x8xf32>
    %375 = arith.select %300, %374, %373 : vector<1x8xi1>, vector<1x8xf32>
    %cst_141 = arith.constant dense<0xFF800000> : vector<1xf32>
    %376 = vector.multi_reduction <maximumf>, %375, %cst_141 [1] : vector<1x8xf32> to vector<1xf32>
    %377 = vector.shape_cast %376 : vector<1xf32> to vector<1x1xf32>
    %378 = vector.broadcast %377 : vector<1x1xf32> to vector<1x8xf32>
    %379 = arith.subf %375, %378 : vector<1x8xf32>
    %380 = math.exp %379 : vector<1x8xf32>
    %cst_142 = arith.constant dense<0.000000e+00> : vector<1xf32>
    %381 = vector.multi_reduction <add>, %380, %cst_142 [1] : vector<1x8xf32> to vector<1xf32>
    %382 = vector.shape_cast %381 : vector<1xf32> to vector<1x1xf32>
    %383 = vector.broadcast %382 : vector<1x1xf32> to vector<1x8xf32>
    %384 = arith.divf %380, %383 : vector<1x8xf32>
    %385 = arith.mulf %384, %287 : vector<1x8xf32>
    %cst_143 = arith.constant dense<0.000000e+00> : vector<1xf32>
    %386 = vector.multi_reduction <add>, %385, %cst_143 [1] : vector<1x8xf32> to vector<1xf32>
    %387 = vector.shape_cast %386 : vector<1xf32> to vector<1x1xf32>
    %cst_144 = arith.constant 1.000000e-18 : f32
    %388 = vector.broadcast %cst_144 : f32 to vector<1x1xf32>
    %389 = arith.addf %387, %388 : vector<1x1xf32>
    %390 = vector.broadcast %389 : vector<1x1xf32> to vector<1x8xf32>
    %391 = arith.divf %385, %390 : vector<1x8xf32>
    %392 = arith.truncf %391 : vector<1x8xf32> to vector<1x8xbf16>
    %cst_145 = arith.constant dense<0.000000e+00> : vector<1x8xf32>
    %393 = tpu.matmul %392, %372, %cst_145 {dimension_numbers = #tpu.dot_dimension_numbers<[1], [0], [0], [1], [0, 0, 1, 1], [], []>} : vector<1x8xbf16>, vector<8x8xbf16>, vector<1x8xf32> -> vector<1x8xf32>
    %394 = arith.truncf %393 : vector<1x8xf32> to vector<1x8xbf16>
    %395 = vector.extract_strided_slice %303 {offsets = [16, 0], sizes = [8, 32], strides = [1, 1]} : vector<32x32xbf16> to vector<8x32xbf16>
    %cst_146 = arith.constant dense<0.000000e+00> : vector<1x32xf32>
    %396 = tpu.matmul %394, %395, %cst_146 {dimension_numbers = #tpu.dot_dimension_numbers<[1], [0], [0], [1], [0, 0, 1, 1], [], []>} : vector<1x8xbf16>, vector<8x32xbf16>, vector<1x32xf32> -> vector<1x32xf32>
    %397 = arith.addf %366, %396 : vector<1x32xf32>
    %398 = vector.extract_strided_slice %305 {offsets = [0, 24], sizes = [1, 8], strides = [1, 1]} : vector<1x32xf32> to vector<1x8xf32>
    %399 = arith.truncf %398 : vector<1x8xf32> to vector<1x8xbf16>
    %400 = vector.extract_strided_slice %301 {offsets = [0, 24], sizes = [8, 8], strides = [1, 1]} : vector<8x32xf32> to vector<8x8xf32>
    %401 = arith.truncf %400 : vector<8x8xf32> to vector<8x8xbf16>
    %402 = vector.extract_strided_slice %302 {offsets = [0, 24], sizes = [8, 8], strides = [1, 1]} : vector<8x32xf32> to vector<8x8xf32>
    %403 = arith.truncf %402 : vector<8x8xf32> to vector<8x8xbf16>
    "tpu.trace_start"() <{level = 10 : i32, message = "qd,kd->qk"}> : () -> ()
    %cst_147 = arith.constant dense<0.000000e+00> : vector<1x8xf32>
    %404 = tpu.matmul %399, %401, %cst_147 {dimension_numbers = #tpu.dot_dimension_numbers<[1], [1], [0], [0], [0, 0, 1, 0], [], []>} : vector<1x8xbf16>, vector<8x8xbf16>, vector<1x8xf32> -> vector<1x8xf32>
    %cst_148 = arith.constant -9.99999984E+17 : f32
    "tpu.trace_stop"() : () -> ()
    %405 = vector.broadcast %cst_148 : f32 to vector<1x8xf32>
    %406 = arith.select %300, %405, %404 : vector<1x8xi1>, vector<1x8xf32>
    %cst_149 = arith.constant dense<0xFF800000> : vector<1xf32>
    %407 = vector.multi_reduction <maximumf>, %406, %cst_149 [1] : vector<1x8xf32> to vector<1xf32>
    %408 = vector.shape_cast %407 : vector<1xf32> to vector<1x1xf32>
    %409 = vector.broadcast %408 : vector<1x1xf32> to vector<1x8xf32>
    %410 = arith.subf %406, %409 : vector<1x8xf32>
    %411 = math.exp %410 : vector<1x8xf32>
    %cst_150 = arith.constant dense<0.000000e+00> : vector<1xf32>
    %412 = vector.multi_reduction <add>, %411, %cst_150 [1] : vector<1x8xf32> to vector<1xf32>
    %413 = vector.shape_cast %412 : vector<1xf32> to vector<1x1xf32>
    %414 = vector.broadcast %413 : vector<1x1xf32> to vector<1x8xf32>
    %415 = arith.divf %411, %414 : vector<1x8xf32>
    %416 = arith.mulf %415, %287 : vector<1x8xf32>
    %cst_151 = arith.constant dense<0.000000e+00> : vector<1xf32>
    %417 = vector.multi_reduction <add>, %416, %cst_151 [1] : vector<1x8xf32> to vector<1xf32>
    %418 = vector.shape_cast %417 : vector<1xf32> to vector<1x1xf32>
    %cst_152 = arith.constant 1.000000e-18 : f32
    %419 = vector.broadcast %cst_152 : f32 to vector<1x1xf32>
    %420 = arith.addf %418, %419 : vector<1x1xf32>
    %421 = vector.broadcast %420 : vector<1x1xf32> to vector<1x8xf32>
    %422 = arith.divf %416, %421 : vector<1x8xf32>
    %423 = arith.truncf %422 : vector<1x8xf32> to vector<1x8xbf16>
    %cst_153 = arith.constant dense<0.000000e+00> : vector<1x8xf32>
    %424 = tpu.matmul %423, %403, %cst_153 {dimension_numbers = #tpu.dot_dimension_numbers<[1], [0], [0], [1], [0, 0, 1, 1], [], []>} : vector<1x8xbf16>, vector<8x8xbf16>, vector<1x8xf32> -> vector<1x8xf32>
    %425 = arith.truncf %424 : vector<1x8xf32> to vector<1x8xbf16>
    %426 = vector.extract_strided_slice %303 {offsets = [24, 0], sizes = [8, 32], strides = [1, 1]} : vector<32x32xbf16> to vector<8x32xbf16>
    %cst_154 = arith.constant dense<0.000000e+00> : vector<1x32xf32>
    %427 = tpu.matmul %425, %426, %cst_154 {dimension_numbers = #tpu.dot_dimension_numbers<[1], [0], [0], [1], [0, 0, 1, 1], [], []>} : vector<1x8xbf16>, vector<8x32xbf16>, vector<1x32xf32> -> vector<1x32xf32>
    %428 = arith.addf %397, %427 : vector<1x32xf32>
    %c0_155 = arith.constant 0 : index
    %c0_156 = arith.constant 0 : index
    %429 = vector.load %arg29[%c0_155, %c0_156] : memref<1x32xf32, #tpu.memory_space<vmem>>, vector<1x32xf32>
    %430 = arith.addf %428, %429 : vector<1x32xf32>
    %c0_157 = arith.constant 0 : index
    %c0_158 = arith.constant 0 : index
    %c0_159 = arith.constant 0 : index
    %431 = vector.load %arg8[%c0_157, %c0_158, %c0_159] : memref<1x8x32xf32, #tpu.memory_space<vmem>>, vector<1x8x32xf32>
    %432 = vector.shape_cast %431 : vector<1x8x32xf32> to vector<8x32xf32>
    %433 = arith.truncf %432 : vector<8x32xf32> to vector<8x32xbf16>
    %c0_160 = arith.constant 0 : index
    %c0_161 = arith.constant 0 : index
    %434 = vector.load %arg24[%c0_160, %c0_161] : memref<32x64xbf16, #tpu.memory_space<vmem>>, vector<32x64xbf16>
    %cst_162 = arith.constant dense<0.000000e+00> : vector<8x64xf32>
    %435 = tpu.matmul %433, %434, %cst_162 {dimension_numbers = #tpu.dot_dimension_numbers<[1], [0], [0], [1], [0, 0, 1, 1], [], []>} : vector<8x32xbf16>, vector<32x64xbf16>, vector<8x64xf32> -> vector<8x64xf32>
    %c0_163 = arith.constant 0 : index
    %c0_164 = arith.constant 0 : index
    %436 = vector.load %arg25[%c0_163, %c0_164] : memref<1x64xf32, #tpu.memory_space<vmem>>, vector<1x64xf32>
    %437 = vector.broadcast %436 : vector<1x64xf32> to vector<8x64xf32>
    %438 = arith.addf %435, %437 : vector<8x64xf32>
    %439 = vector.extract_strided_slice %170 {offsets = [0, 64], sizes = [1, 32], strides = [1, 1]} : vector<1x96xf32> to vector<1x32xf32>
    %c0_165 = arith.constant 0 : index
    %c0_166 = arith.constant 0 : index
    %c0_167 = arith.constant 0 : index
    %440 = vector.load %arg9[%c0_165, %c0_166, %c0_167] : memref<1x1x8xi32, #tpu.memory_space<vmem>>, vector<1x1x8xi32>
    %441 = vector.shape_cast %440 : vector<1x1x8xi32> to vector<1x8xi32>
    %c0_i32_168 = arith.constant 0 : i32
    %442 = vector.broadcast %c0_i32_168 : i32 to vector<1x8xi32>
    %443 = arith.cmpi sgt, %441, %442 : vector<1x8xi32>
    %444 = vector.extract_strided_slice %438 {offsets = [0, 0], sizes = [8, 32], strides = [1, 1]} : vector<8x64xf32> to vector<8x32xf32>
    %445 = vector.extract_strided_slice %438 {offsets = [0, 32], sizes = [8, 32], strides = [1, 1]} : vector<8x64xf32> to vector<8x32xf32>
    %c0_169 = arith.constant 0 : index
    %c0_170 = arith.constant 0 : index
    %446 = vector.load %arg30[%c0_169, %c0_170] : memref<32x32xbf16, #tpu.memory_space<vmem>>, vector<32x32xbf16>
    %cst_171 = arith.constant 0.353553385 : f32
    %447 = vector.broadcast %cst_171 : f32 to vector<1x32xf32>
    %448 = arith.mulf %439, %447 : vector<1x32xf32>
    %449 = vector.extract_strided_slice %448 {offsets = [0, 0], sizes = [1, 8], strides = [1, 1]} : vector<1x32xf32> to vector<1x8xf32>
    %450 = arith.truncf %449 : vector<1x8xf32> to vector<1x8xbf16>
    %451 = vector.extract_strided_slice %444 {offsets = [0, 0], sizes = [8, 8], strides = [1, 1]} : vector<8x32xf32> to vector<8x8xf32>
    %452 = arith.truncf %451 : vector<8x8xf32> to vector<8x8xbf16>
    %453 = vector.extract_strided_slice %445 {offsets = [0, 0], sizes = [8, 8], strides = [1, 1]} : vector<8x32xf32> to vector<8x8xf32>
    %454 = arith.truncf %453 : vector<8x8xf32> to vector<8x8xbf16>
    "tpu.trace_start"() <{level = 10 : i32, message = "qd,kd->qk"}> : () -> ()
    %cst_172 = arith.constant dense<0.000000e+00> : vector<1x8xf32>
    %455 = tpu.matmul %450, %452, %cst_172 {dimension_numbers = #tpu.dot_dimension_numbers<[1], [1], [0], [0], [0, 0, 1, 0], [], []>} : vector<1x8xbf16>, vector<8x8xbf16>, vector<1x8xf32> -> vector<1x8xf32>
    %cst_173 = arith.constant -9.99999984E+17 : f32
    "tpu.trace_stop"() : () -> ()
    %456 = vector.broadcast %cst_173 : f32 to vector<1x8xf32>
    %457 = arith.select %443, %456, %455 : vector<1x8xi1>, vector<1x8xf32>
    %cst_174 = arith.constant dense<0xFF800000> : vector<1xf32>
    %458 = vector.multi_reduction <maximumf>, %457, %cst_174 [1] : vector<1x8xf32> to vector<1xf32>
    %459 = vector.shape_cast %458 : vector<1xf32> to vector<1x1xf32>
    %460 = vector.broadcast %459 : vector<1x1xf32> to vector<1x8xf32>
    %461 = arith.subf %457, %460 : vector<1x8xf32>
    %462 = math.exp %461 : vector<1x8xf32>
    %cst_175 = arith.constant dense<0.000000e+00> : vector<1xf32>
    %463 = vector.multi_reduction <add>, %462, %cst_175 [1] : vector<1x8xf32> to vector<1xf32>
    %464 = vector.shape_cast %463 : vector<1xf32> to vector<1x1xf32>
    %465 = vector.broadcast %464 : vector<1x1xf32> to vector<1x8xf32>
    %466 = arith.divf %462, %465 : vector<1x8xf32>
    %467 = arith.truncf %466 : vector<1x8xf32> to vector<1x8xbf16>
    %cst_176 = arith.constant dense<0.000000e+00> : vector<1x8xf32>
    %468 = tpu.matmul %467, %454, %cst_176 {dimension_numbers = #tpu.dot_dimension_numbers<[1], [0], [0], [1], [0, 0, 1, 1], [], []>} : vector<1x8xbf16>, vector<8x8xbf16>, vector<1x8xf32> -> vector<1x8xf32>
    %469 = arith.truncf %468 : vector<1x8xf32> to vector<1x8xbf16>
    %470 = vector.extract_strided_slice %446 {offsets = [0, 0], sizes = [8, 32], strides = [1, 1]} : vector<32x32xbf16> to vector<8x32xbf16>
    %cst_177 = arith.constant dense<0.000000e+00> : vector<1x32xf32>
    %471 = tpu.matmul %469, %470, %cst_177 {dimension_numbers = #tpu.dot_dimension_numbers<[1], [0], [0], [1], [0, 0, 1, 1], [], []>} : vector<1x8xbf16>, vector<8x32xbf16>, vector<1x32xf32> -> vector<1x32xf32>
    %472 = vector.extract_strided_slice %448 {offsets = [0, 8], sizes = [1, 8], strides = [1, 1]} : vector<1x32xf32> to vector<1x8xf32>
    %473 = arith.truncf %472 : vector<1x8xf32> to vector<1x8xbf16>
    %474 = vector.extract_strided_slice %444 {offsets = [0, 8], sizes = [8, 8], strides = [1, 1]} : vector<8x32xf32> to vector<8x8xf32>
    %475 = arith.truncf %474 : vector<8x8xf32> to vector<8x8xbf16>
    %476 = vector.extract_strided_slice %445 {offsets = [0, 8], sizes = [8, 8], strides = [1, 1]} : vector<8x32xf32> to vector<8x8xf32>
    %477 = arith.truncf %476 : vector<8x8xf32> to vector<8x8xbf16>
    "tpu.trace_start"() <{level = 10 : i32, message = "qd,kd->qk"}> : () -> ()
    %cst_178 = arith.constant dense<0.000000e+00> : vector<1x8xf32>
    %478 = tpu.matmul %473, %475, %cst_178 {dimension_numbers = #tpu.dot_dimension_numbers<[1], [1], [0], [0], [0, 0, 1, 0], [], []>} : vector<1x8xbf16>, vector<8x8xbf16>, vector<1x8xf32> -> vector<1x8xf32>
    %cst_179 = arith.constant -9.99999984E+17 : f32
    "tpu.trace_stop"() : () -> ()
    %479 = vector.broadcast %cst_179 : f32 to vector<1x8xf32>
    %480 = arith.select %443, %479, %478 : vector<1x8xi1>, vector<1x8xf32>
    %cst_180 = arith.constant dense<0xFF800000> : vector<1xf32>
    %481 = vector.multi_reduction <maximumf>, %480, %cst_180 [1] : vector<1x8xf32> to vector<1xf32>
    %482 = vector.shape_cast %481 : vector<1xf32> to vector<1x1xf32>
    %483 = vector.broadcast %482 : vector<1x1xf32> to vector<1x8xf32>
    %484 = arith.subf %480, %483 : vector<1x8xf32>
    %485 = math.exp %484 : vector<1x8xf32>
    %cst_181 = arith.constant dense<0.000000e+00> : vector<1xf32>
    %486 = vector.multi_reduction <add>, %485, %cst_181 [1] : vector<1x8xf32> to vector<1xf32>
    %487 = vector.shape_cast %486 : vector<1xf32> to vector<1x1xf32>
    %488 = vector.broadcast %487 : vector<1x1xf32> to vector<1x8xf32>
    %489 = arith.divf %485, %488 : vector<1x8xf32>
    %490 = arith.truncf %489 : vector<1x8xf32> to vector<1x8xbf16>
    %cst_182 = arith.constant dense<0.000000e+00> : vector<1x8xf32>
    %491 = tpu.matmul %490, %477, %cst_182 {dimension_numbers = #tpu.dot_dimension_numbers<[1], [0], [0], [1], [0, 0, 1, 1], [], []>} : vector<1x8xbf16>, vector<8x8xbf16>, vector<1x8xf32> -> vector<1x8xf32>
    %492 = arith.truncf %491 : vector<1x8xf32> to vector<1x8xbf16>
    %493 = vector.extract_strided_slice %446 {offsets = [8, 0], sizes = [8, 32], strides = [1, 1]} : vector<32x32xbf16> to vector<8x32xbf16>
    %cst_183 = arith.constant dense<0.000000e+00> : vector<1x32xf32>
    %494 = tpu.matmul %492, %493, %cst_183 {dimension_numbers = #tpu.dot_dimension_numbers<[1], [0], [0], [1], [0, 0, 1, 1], [], []>} : vector<1x8xbf16>, vector<8x32xbf16>, vector<1x32xf32> -> vector<1x32xf32>
    %495 = arith.addf %471, %494 : vector<1x32xf32>
    %496 = vector.extract_strided_slice %448 {offsets = [0, 16], sizes = [1, 8], strides = [1, 1]} : vector<1x32xf32> to vector<1x8xf32>
    %497 = arith.truncf %496 : vector<1x8xf32> to vector<1x8xbf16>
    %498 = vector.extract_strided_slice %444 {offsets = [0, 16], sizes = [8, 8], strides = [1, 1]} : vector<8x32xf32> to vector<8x8xf32>
    %499 = arith.truncf %498 : vector<8x8xf32> to vector<8x8xbf16>
    %500 = vector.extract_strided_slice %445 {offsets = [0, 16], sizes = [8, 8], strides = [1, 1]} : vector<8x32xf32> to vector<8x8xf32>
    %501 = arith.truncf %500 : vector<8x8xf32> to vector<8x8xbf16>
    "tpu.trace_start"() <{level = 10 : i32, message = "qd,kd->qk"}> : () -> ()
    %cst_184 = arith.constant dense<0.000000e+00> : vector<1x8xf32>
    %502 = tpu.matmul %497, %499, %cst_184 {dimension_numbers = #tpu.dot_dimension_numbers<[1], [1], [0], [0], [0, 0, 1, 0], [], []>} : vector<1x8xbf16>, vector<8x8xbf16>, vector<1x8xf32> -> vector<1x8xf32>
    %cst_185 = arith.constant -9.99999984E+17 : f32
    "tpu.trace_stop"() : () -> ()
    %503 = vector.broadcast %cst_185 : f32 to vector<1x8xf32>
    %504 = arith.select %443, %503, %502 : vector<1x8xi1>, vector<1x8xf32>
    %cst_186 = arith.constant dense<0xFF800000> : vector<1xf32>
    %505 = vector.multi_reduction <maximumf>, %504, %cst_186 [1] : vector<1x8xf32> to vector<1xf32>
    %506 = vector.shape_cast %505 : vector<1xf32> to vector<1x1xf32>
    %507 = vector.broadcast %506 : vector<1x1xf32> to vector<1x8xf32>
    %508 = arith.subf %504, %507 : vector<1x8xf32>
    %509 = math.exp %508 : vector<1x8xf32>
    %cst_187 = arith.constant dense<0.000000e+00> : vector<1xf32>
    %510 = vector.multi_reduction <add>, %509, %cst_187 [1] : vector<1x8xf32> to vector<1xf32>
    %511 = vector.shape_cast %510 : vector<1xf32> to vector<1x1xf32>
    %512 = vector.broadcast %511 : vector<1x1xf32> to vector<1x8xf32>
    %513 = arith.divf %509, %512 : vector<1x8xf32>
    %514 = arith.truncf %513 : vector<1x8xf32> to vector<1x8xbf16>
    %cst_188 = arith.constant dense<0.000000e+00> : vector<1x8xf32>
    %515 = tpu.matmul %514, %501, %cst_188 {dimension_numbers = #tpu.dot_dimension_numbers<[1], [0], [0], [1], [0, 0, 1, 1], [], []>} : vector<1x8xbf16>, vector<8x8xbf16>, vector<1x8xf32> -> vector<1x8xf32>
    %516 = arith.truncf %515 : vector<1x8xf32> to vector<1x8xbf16>
    %517 = vector.extract_strided_slice %446 {offsets = [16, 0], sizes = [8, 32], strides = [1, 1]} : vector<32x32xbf16> to vector<8x32xbf16>
    %cst_189 = arith.constant dense<0.000000e+00> : vector<1x32xf32>
    %518 = tpu.matmul %516, %517, %cst_189 {dimension_numbers = #tpu.dot_dimension_numbers<[1], [0], [0], [1], [0, 0, 1, 1], [], []>} : vector<1x8xbf16>, vector<8x32xbf16>, vector<1x32xf32> -> vector<1x32xf32>
    %519 = arith.addf %495, %518 : vector<1x32xf32>
    %520 = vector.extract_strided_slice %448 {offsets = [0, 24], sizes = [1, 8], strides = [1, 1]} : vector<1x32xf32> to vector<1x8xf32>
    %521 = arith.truncf %520 : vector<1x8xf32> to vector<1x8xbf16>
    %522 = vector.extract_strided_slice %444 {offsets = [0, 24], sizes = [8, 8], strides = [1, 1]} : vector<8x32xf32> to vector<8x8xf32>
    %523 = arith.truncf %522 : vector<8x8xf32> to vector<8x8xbf16>
    %524 = vector.extract_strided_slice %445 {offsets = [0, 24], sizes = [8, 8], strides = [1, 1]} : vector<8x32xf32> to vector<8x8xf32>
    %525 = arith.truncf %524 : vector<8x8xf32> to vector<8x8xbf16>
    "tpu.trace_start"() <{level = 10 : i32, message = "qd,kd->qk"}> : () -> ()
    %cst_190 = arith.constant dense<0.000000e+00> : vector<1x8xf32>
    %526 = tpu.matmul %521, %523, %cst_190 {dimension_numbers = #tpu.dot_dimension_numbers<[1], [1], [0], [0], [0, 0, 1, 0], [], []>} : vector<1x8xbf16>, vector<8x8xbf16>, vector<1x8xf32> -> vector<1x8xf32>
    %cst_191 = arith.constant -9.99999984E+17 : f32
    "tpu.trace_stop"() : () -> ()
    %527 = vector.broadcast %cst_191 : f32 to vector<1x8xf32>
    %528 = arith.select %443, %527, %526 : vector<1x8xi1>, vector<1x8xf32>
    %cst_192 = arith.constant dense<0xFF800000> : vector<1xf32>
    %529 = vector.multi_reduction <maximumf>, %528, %cst_192 [1] : vector<1x8xf32> to vector<1xf32>
    %530 = vector.shape_cast %529 : vector<1xf32> to vector<1x1xf32>
    %531 = vector.broadcast %530 : vector<1x1xf32> to vector<1x8xf32>
    %532 = arith.subf %528, %531 : vector<1x8xf32>
    %533 = math.exp %532 : vector<1x8xf32>
    %cst_193 = arith.constant dense<0.000000e+00> : vector<1xf32>
    %534 = vector.multi_reduction <add>, %533, %cst_193 [1] : vector<1x8xf32> to vector<1xf32>
    %535 = vector.shape_cast %534 : vector<1xf32> to vector<1x1xf32>
    %536 = vector.broadcast %535 : vector<1x1xf32> to vector<1x8xf32>
    %537 = arith.divf %533, %536 : vector<1x8xf32>
    %538 = arith.truncf %537 : vector<1x8xf32> to vector<1x8xbf16>
    %cst_194 = arith.constant dense<0.000000e+00> : vector<1x8xf32>
    %539 = tpu.matmul %538, %525, %cst_194 {dimension_numbers = #tpu.dot_dimension_numbers<[1], [0], [0], [1], [0, 0, 1, 1], [], []>} : vector<1x8xbf16>, vector<8x8xbf16>, vector<1x8xf32> -> vector<1x8xf32>
    %540 = arith.truncf %539 : vector<1x8xf32> to vector<1x8xbf16>
    %541 = vector.extract_strided_slice %446 {offsets = [24, 0], sizes = [8, 32], strides = [1, 1]} : vector<32x32xbf16> to vector<8x32xbf16>
    %cst_195 = arith.constant dense<0.000000e+00> : vector<1x32xf32>
    %542 = tpu.matmul %540, %541, %cst_195 {dimension_numbers = #tpu.dot_dimension_numbers<[1], [0], [0], [1], [0, 0, 1, 1], [], []>} : vector<1x8xbf16>, vector<8x32xbf16>, vector<1x32xf32> -> vector<1x32xf32>
    %543 = arith.addf %519, %542 : vector<1x32xf32>
    %c0_196 = arith.constant 0 : index
    %c0_197 = arith.constant 0 : index
    %544 = vector.load %arg31[%c0_196, %c0_197] : memref<1x32xf32, #tpu.memory_space<vmem>>, vector<1x32xf32>
    %545 = arith.addf %543, %544 : vector<1x32xf32>
    %c0_198 = arith.constant 0 : index
    %c0_199 = arith.constant 0 : index
    %546 = vector.load %arg32[%c0_198, %c0_199] : memref<4x32xf32, #tpu.memory_space<vmem>>, vector<4x32xf32>
    %c0_200 = arith.constant 0 : index
    %c0_201 = arith.constant 0 : index
    %547 = vector.load %arg33[%c0_200, %c0_201] : memref<2x1xf32, #tpu.memory_space<vmem>>, vector<2x1xf32>
    %548 = vector.extract_strided_slice %546 {offsets = [0, 0], sizes = [1, 32], strides = [1, 1]} : vector<4x32xf32> to vector<1x32xf32>
    %549 = arith.mulf %285, %548 : vector<1x32xf32>
    %cst_202 = arith.constant dense<0.000000e+00> : vector<1xf32>
    %550 = vector.multi_reduction <add>, %549, %cst_202 [1] : vector<1x32xf32> to vector<1xf32>
    %551 = vector.shape_cast %550 : vector<1xf32> to vector<1x1xf32>
    %552 = vector.extract_strided_slice %546 {offsets = [1, 0], sizes = [1, 32], strides = [1, 1]} : vector<4x32xf32> to vector<1x32xf32>
    %553 = arith.mulf %430, %552 : vector<1x32xf32>
    %cst_203 = arith.constant dense<0.000000e+00> : vector<1xf32>
    %554 = vector.multi_reduction <add>, %553, %cst_203 [1] : vector<1x32xf32> to vector<1xf32>
    %555 = vector.shape_cast %554 : vector<1xf32> to vector<1x1xf32>
    %556 = arith.addf %551, %555 : vector<1x1xf32>
    %557 = vector.extract_strided_slice %547 {offsets = [0, 0], sizes = [1, 1], strides = [1, 1]} : vector<2x1xf32> to vector<1x1xf32>
    %558 = arith.addf %556, %557 : vector<1x1xf32>
    %559 = arith.negf %558 : vector<1x1xf32>
    %560 = math.exp %559 : vector<1x1xf32>
    %cst_204 = arith.constant 1.000000e+00 : f32
    %561 = vector.broadcast %cst_204 : f32 to vector<1x1xf32>
    %562 = arith.addf %561, %560 : vector<1x1xf32>
    %563 = arith.divf %561, %562 : vector<1x1xf32>
    %564 = vector.broadcast %563 : vector<1x1xf32> to vector<1x32xf32>
    %565 = arith.mulf %564, %285 : vector<1x32xf32>
    %cst_205 = arith.constant 1.000000e+00 : f32
    %566 = vector.broadcast %cst_205 : f32 to vector<1x1xf32>
    %567 = arith.subf %566, %563 : vector<1x1xf32>
    %568 = vector.broadcast %567 : vector<1x1xf32> to vector<1x32xf32>
    %569 = arith.mulf %568, %430 : vector<1x32xf32>
    %570 = arith.addf %565, %569 : vector<1x32xf32>
    %571 = vector.extract_strided_slice %546 {offsets = [2, 0], sizes = [1, 32], strides = [1, 1]} : vector<4x32xf32> to vector<1x32xf32>
    %572 = arith.mulf %570, %571 : vector<1x32xf32>
    %cst_206 = arith.constant dense<0.000000e+00> : vector<1xf32>
    %573 = vector.multi_reduction <add>, %572, %cst_206 [1] : vector<1x32xf32> to vector<1xf32>
    %574 = vector.shape_cast %573 : vector<1xf32> to vector<1x1xf32>
    %575 = vector.extract_strided_slice %546 {offsets = [3, 0], sizes = [1, 32], strides = [1, 1]} : vector<4x32xf32> to vector<1x32xf32>
    %576 = arith.mulf %545, %575 : vector<1x32xf32>
    %cst_207 = arith.constant dense<0.000000e+00> : vector<1xf32>
    %577 = vector.multi_reduction <add>, %576, %cst_207 [1] : vector<1x32xf32> to vector<1xf32>
    %578 = vector.shape_cast %577 : vector<1xf32> to vector<1x1xf32>
    %579 = arith.addf %574, %578 : vector<1x1xf32>
    %580 = vector.extract_strided_slice %547 {offsets = [1, 0], sizes = [1, 1], strides = [1, 1]} : vector<2x1xf32> to vector<1x1xf32>
    %581 = arith.addf %579, %580 : vector<1x1xf32>
    %582 = arith.negf %581 : vector<1x1xf32>
    %583 = math.exp %582 : vector<1x1xf32>
    %cst_208 = arith.constant 1.000000e+00 : f32
    %584 = vector.broadcast %cst_208 : f32 to vector<1x1xf32>
    %585 = arith.addf %584, %583 : vector<1x1xf32>
    %586 = arith.divf %584, %585 : vector<1x1xf32>
    %587 = vector.broadcast %586 : vector<1x1xf32> to vector<1x32xf32>
    %588 = arith.mulf %587, %570 : vector<1x32xf32>
    %cst_209 = arith.constant 1.000000e+00 : f32
    %589 = vector.broadcast %cst_209 : f32 to vector<1x1xf32>
    %590 = arith.subf %589, %586 : vector<1x1xf32>
    %591 = vector.broadcast %590 : vector<1x1xf32> to vector<1x32xf32>
    %592 = arith.mulf %591, %545 : vector<1x32xf32>
    %593 = arith.addf %588, %592 : vector<1x32xf32>
    %594 = arith.addf %593, %145 : vector<1x32xf32>
    %c0_210 = arith.constant 0 : index
    %c0_211 = arith.constant 0 : index
    %595 = vector.load %arg34[%c0_210, %c0_211] : memref<1x32xf32, #tpu.memory_space<vmem>>, vector<1x32xf32>
    %c0_212 = arith.constant 0 : index
    %c0_213 = arith.constant 0 : index
    %596 = vector.load %arg35[%c0_212, %c0_213] : memref<1x32xf32, #tpu.memory_space<vmem>>, vector<1x32xf32>
    %cst_214 = arith.constant dense<0.000000e+00> : vector<1xf32>
    %597 = vector.multi_reduction <add>, %594, %cst_214 [1] : vector<1x32xf32> to vector<1xf32>
    %598 = vector.shape_cast %597 : vector<1xf32> to vector<1x1xf32>
    %cst_215 = arith.constant 3.200000e+01 : f32
    %599 = vector.broadcast %cst_215 : f32 to vector<1x1xf32>
    %600 = arith.divf %598, %599 : vector<1x1xf32>
    %601 = vector.broadcast %600 : vector<1x1xf32> to vector<1x32xf32>
    %602 = arith.subf %594, %601 : vector<1x32xf32>
    %603 = arith.mulf %602, %602 : vector<1x32xf32>
    %cst_216 = arith.constant dense<0.000000e+00> : vector<1xf32>
    %604 = vector.multi_reduction <add>, %603, %cst_216 [1] : vector<1x32xf32> to vector<1xf32>
    %605 = vector.shape_cast %604 : vector<1xf32> to vector<1x1xf32>
    %cst_217 = arith.constant 3.200000e+01 : f32
    %606 = vector.broadcast %cst_217 : f32 to vector<1x1xf32>
    %607 = arith.divf %605, %606 : vector<1x1xf32>
    %cst_218 = arith.constant 9.99999997E-7 : f32
    %608 = vector.broadcast %cst_218 : f32 to vector<1x1xf32>
    %609 = arith.addf %607, %608 : vector<1x1xf32>
    %610 = math.rsqrt %609 : vector<1x1xf32>
    %611 = vector.broadcast %610 : vector<1x1xf32> to vector<1x32xf32>
    %612 = arith.mulf %602, %611 : vector<1x32xf32>
    %613 = arith.mulf %612, %595 : vector<1x32xf32>
    %614 = arith.addf %613, %596 : vector<1x32xf32>
    %615 = arith.truncf %614 : vector<1x32xf32> to vector<1x32xbf16>
    %c0_219 = arith.constant 0 : index
    %c0_220 = arith.constant 0 : index
    %616 = vector.load %arg36[%c0_219, %c0_220] : memref<32x64xbf16, #tpu.memory_space<vmem>>, vector<32x64xbf16>
    %cst_221 = arith.constant dense<0.000000e+00> : vector<1x64xf32>
    %617 = tpu.matmul %615, %616, %cst_221 {dimension_numbers = #tpu.dot_dimension_numbers<[1], [0], [0], [1], [0, 0, 1, 1], [], []>} : vector<1x32xbf16>, vector<32x64xbf16>, vector<1x64xf32> -> vector<1x64xf32>
    %c0_222 = arith.constant 0 : index
    %c0_223 = arith.constant 0 : index
    %618 = vector.load %arg37[%c0_222, %c0_223] : memref<1x64xf32, #tpu.memory_space<vmem>>, vector<1x64xf32>
    %619 = arith.addf %617, %618 : vector<1x64xf32>
    %cst_224 = arith.constant 0.000000e+00 : f32
    %620 = vector.broadcast %cst_224 : f32 to vector<1x64xf32>
    %621 = arith.maximumf %619, %620 : vector<1x64xf32>
    %622 = arith.truncf %621 : vector<1x64xf32> to vector<1x64xbf16>
    %c0_225 = arith.constant 0 : index
    %c0_226 = arith.constant 0 : index
    %623 = vector.load %arg38[%c0_225, %c0_226] : memref<64x32xbf16, #tpu.memory_space<vmem>>, vector<64x32xbf16>
    %cst_227 = arith.constant dense<0.000000e+00> : vector<1x32xf32>
    %624 = tpu.matmul %622, %623, %cst_227 {dimension_numbers = #tpu.dot_dimension_numbers<[1], [0], [0], [1], [0, 0, 1, 1], [], []>} : vector<1x64xbf16>, vector<64x32xbf16>, vector<1x32xf32> -> vector<1x32xf32>
    %c0_228 = arith.constant 0 : index
    %c0_229 = arith.constant 0 : index
    %625 = vector.load %arg39[%c0_228, %c0_229] : memref<1x32xf32, #tpu.memory_space<vmem>>, vector<1x32xf32>
    %626 = arith.addf %624, %625 : vector<1x32xf32>
    %627 = arith.addf %626, %594 : vector<1x32xf32>
    %c0_230 = arith.constant 0 : index
    %c0_231 = arith.constant 0 : index
    %c0_232 = arith.constant 0 : index
    %628 = vector.load %arg40[%c0_230, %c0_231, %c0_232] : memref<1x1x32xf32, #tpu.memory_space<vmem>>, vector<1x1x32xf32>
    %629 = vector.shape_cast %628 : vector<1x1x32xf32> to vector<1x32xf32>
    %630 = vector.shape_cast %627 : vector<1x32xf32> to vector<1x1x32xf32>
    tpu.vector_store %arg40[%c0_230, %c0_231, %c0_232], %630 {strides = array<i32>} : memref<1x1x32xf32, #tpu.memory_space<vmem>>, vector<1x1x32xf32>,
    return
  }
  func.func @transform_0(%arg0: i32) -> (i32, i32, i32) {
    %c0_i32 = arith.constant 0 : i32
    %c0_i32_0 = arith.constant 0 : i32
    %c0_i32_1 = arith.constant 0 : i32
    return %arg0, %c0_i32, %c0_i32_0 : i32, i32, i32
  }
  func.func @transform_1(%arg0: i32) -> (i32, i32, i32) {
    %c0_i32 = arith.constant 0 : i32
    %c0_i32_0 = arith.constant 0 : i32
    %c0_i32_1 = arith.constant 0 : i32
    return %arg0, %c0_i32, %c0_i32_0 : i32, i32, i32
  }
  func.func @transform_2(%arg0: i32) -> (i32, i32, i32) {
    %c0_i32 = arith.constant 0 : i32
    %c0_i32_0 = arith.constant 0 : i32
    %c0_i32_1 = arith.constant 0 : i32
    return %arg0, %c0_i32, %c0_i32_0 : i32, i32, i32
  }
  func.func @transform_3(%arg0: i32) -> (i32, i32, i32) {
    %c0_i32 = arith.constant 0 : i32
    %c0_i32_0 = arith.constant 0 : i32
    %c0_i32_1 = arith.constant 0 : i32
    return %arg0, %c0_i32, %c0_i32_0 : i32, i32, i32
  }
  func.func @transform_4(%arg0: i32) -> (i32, i32, i32) {
    %c0_i32 = arith.constant 0 : i32
    %c0_i32_0 = arith.constant 0 : i32
    %c0_i32_1 = arith.constant 0 : i32
    return %arg0, %c0_i32, %c0_i32_0 : i32, i32, i32
  }
  func.func @transform_5(%arg0: i32) -> (i32, i32, i32) {
    %c0_i32 = arith.constant 0 : i32
    %c0_i32_0 = arith.constant 0 : i32
    %c0_i32_1 = arith.constant 0 : i32
    return %arg0, %c0_i32, %c0_i32_0 : i32, i32, i32
  }
  func.func @transform_6(%arg0: i32) -> (i32, i32, i32) {
    %c0_i32 = arith.constant 0 : i32
    %c0_i32_0 = arith.constant 0 : i32
    %c0_i32_1 = arith.constant 0 : i32
    return %arg0, %c0_i32, %c0_i32_0 : i32, i32, i32
  }
  func.func @transform_7(%arg0: i32) -> (i32, i32, i32) {
    %c0_i32 = arith.constant 0 : i32
    %c0_i32_0 = arith.constant 0 : i32
    %c0_i32_1 = arith.constant 0 : i32
    return %arg0, %c0_i32, %c0_i32_0 : i32, i32, i32
  }
  func.func @transform_8(%arg0: i32) -> (i32, i32, i32) {
    %c0_i32 = arith.constant 0 : i32
    %c0_i32_0 = arith.constant 0 : i32
    %c0_i32_1 = arith.constant 0 : i32
    return %arg0, %c0_i32, %c0_i32_0 : i32, i32, i32
  }
  func.func @transform_9(%arg0: i32) -> (i32, i32) {
    %c0_i32 = arith.constant 0 : i32
    %c0_i32_0 = arith.constant 0 : i32
    %c0_i32_1 = arith.constant 0 : i32
    return %c0_i32, %c0_i32_0 : i32, i32
  }
  func.func @transform_10(%arg0: i32) -> (i32, i32) {
    %c0_i32 = arith.constant 0 : i32
    %c0_i32_0 = arith.constant 0 : i32
    %c0_i32_1 = arith.constant 0 : i32
    return %c0_i32, %c0_i32_0 : i32, i32
  }
  func.func @transform_11(%arg0: i32) -> (i32, i32) {
    %c0_i32 = arith.constant 0 : i32
    %c0_i32_0 = arith.constant 0 : i32
    %c0_i32_1 = arith.constant 0 : i32
    return %c0_i32, %c0_i32_0 : i32, i32
  }
  func.func @transform_12(%arg0: i32) -> (i32, i32) {
    %c0_i32 = arith.constant 0 : i32
    %c0_i32_0 = arith.constant 0 : i32
    %c0_i32_1 = arith.constant 0 : i32
    return %c0_i32, %c0_i32_0 : i32, i32
  }
  func.func @transform_13(%arg0: i32) -> (i32, i32) {
    %c0_i32 = arith.constant 0 : i32
    %c0_i32_0 = arith.constant 0 : i32
    %c0_i32_1 = arith.constant 0 : i32
    return %c0_i32, %c0_i32_0 : i32, i32
  }
  func.func @transform_14(%arg0: i32) -> (i32, i32) {
    %c0_i32 = arith.constant 0 : i32
    %c0_i32_0 = arith.constant 0 : i32
    %c0_i32_1 = arith.constant 0 : i32
    return %c0_i32, %c0_i32_0 : i32, i32
  }
  func.func @transform_15(%arg0: i32) -> (i32, i32) {
    %c0_i32 = arith.constant 0 : i32
    %c0_i32_0 = arith.constant 0 : i32
    %c0_i32_1 = arith.constant 0 : i32
    return %c0_i32, %c0_i32_0 : i32, i32
  }
  func.func @transform_16(%arg0: i32) -> (i32, i32) {
    %c0_i32 = arith.constant 0 : i32
    %c0_i32_0 = arith.constant 0 : i32
    %c0_i32_1 = arith.constant 0 : i32
    return %c0_i32, %c0_i32_0 : i32, i32
  }
  func.func @transform_17(%arg0: i32) -> (i32, i32) {
    %c0_i32 = arith.constant 0 : i32
    %c0_i32_0 = arith.constant 0 : i32
    %c0_i32_1 = arith.constant 0 : i32
    return %c0_i32, %c0_i32_0 : i32, i32
  }
  func.func @transform_18(%arg0: i32) -> (i32, i32) {
    %c0_i32 = arith.constant 0 : i32
    %c0_i32_0 = arith.constant 0 : i32
    %c0_i32_1 = arith.constant 0 : i32
    return %c0_i32, %c0_i32_0 : i32, i32
  }
  func.func @transform_19(%arg0: i32) -> (i32, i32) {
    %c0_i32 = arith.constant 0 : i32
    %c0_i32_0 = arith.constant 0 : i32
    %c0_i32_1 = arith.constant 0 : i32
    return %c0_i32, %c0_i32_0 : i32, i32
  }
  func.func @transform_20(%arg0: i32) -> (i32, i32) {
    %c0_i32 = arith.constant 0 : i32
    %c0_i32_0 = arith.constant 0 : i32
    %c0_i32_1 = arith.constant 0 : i32
    return %c0_i32, %c0_i32_0 : i32, i32
  }
  func.func @transform_21(%arg0: i32) -> (i32, i32) {
    %c0_i32 = arith.constant 0 : i32
    %c0_i32_0 = arith.constant 0 : i32
    %c0_i32_1 = arith.constant 0 : i32
    return %c0_i32, %c0_i32_0 : i32, i32
  }
  func.func @transform_22(%arg0: i32) -> (i32, i32) {
    %c0_i32 = arith.constant 0 : i32
    %c0_i32_0 = arith.constant 0 : i32
    %c0_i32_1 = arith.constant 0 : i32
    return %c0_i32, %c0_i32_0 : i32, i32
  }
  func.func @transform_23(%arg0: i32) -> (i32, i32) {
    %c0_i32 = arith.constant 0 : i32
    %c0_i32_0 = arith.constant 0 : i32
    %c0_i32_1 = arith.constant 0 : i32
    return %c0_i32, %c0_i32_0 : i32, i32
  }
  func.func @transform_24(%arg0: i32) -> (i32, i32) {
    %c0_i32 = arith.constant 0 : i32
    %c0_i32_0 = arith.constant 0 : i32
    %c0_i32_1 = arith.constant 0 : i32
    return %c0_i32, %c0_i32_0 : i32, i32
  }
  func.func @transform_25(%arg0: i32) -> (i32, i32) {
    %c0_i32 = arith.constant 0 : i32
    %c0_i32_0 = arith.constant 0 : i32
    %c0_i32_1 = arith.constant 0 : i32
    return %c0_i32, %c0_i32_0 : i32, i32
  }
  func.func @transform_26(%arg0: i32) -> (i32, i32) {
    %c0_i32 = arith.constant 0 : i32
    %c0_i32_0 = arith.constant 0 : i32
    %c0_i32_1 = arith.constant 0 : i32
    return %c0_i32, %c0_i32_0 : i32, i32
  }
  func.func @transform_27(%arg0: i32) -> (i32, i32) {
    %c0_i32 = arith.constant 0 : i32
    %c0_i32_0 = arith.constant 0 : i32
    %c0_i32_1 = arith.constant 0 : i32
    return %c0_i32, %c0_i32_0 : i32, i32
  }
  func.func @transform_28(%arg0: i32) -> (i32, i32) {
    %c0_i32 = arith.constant 0 : i32
    %c0_i32_0 = arith.constant 0 : i32
    %c0_i32_1 = arith.constant 0 : i32
    return %c0_i32, %c0_i32_0 : i32, i32
  }
  func.func @transform_29(%arg0: i32) -> (i32, i32) {
    %c0_i32 = arith.constant 0 : i32
    %c0_i32_0 = arith.constant 0 : i32
    %c0_i32_1 = arith.constant 0 : i32
    return %c0_i32, %c0_i32_0 : i32, i32
  }
  func.func @transform_30(%arg0: i32) -> (i32, i32) {
    %c0_i32 = arith.constant 0 : i32
    %c0_i32_0 = arith.constant 0 : i32
    %c0_i32_1 = arith.constant 0 : i32
    return %c0_i32, %c0_i32_0 : i32, i32
  }
  func.func @transform_31(%arg0: i32) -> (i32, i32) {
    %c0_i32 = arith.constant 0 : i32
    %c0_i32_0 = arith.constant 0 : i32
    %c0_i32_1 = arith.constant 0 : i32
    return %c0_i32, %c0_i32_0 : i32, i32
  }
  func.func @transform_32(%arg0: i32) -> (i32, i32) {
    %c0_i32 = arith.constant 0 : i32
    %c0_i32_0 = arith.constant 0 : i32
    %c0_i32_1 = arith.constant 0 : i32
    return %c0_i32, %c0_i32_0 : i32, i32
  }
  func.func @transform_33(%arg0: i32) -> (i32, i32) {
    %c0_i32 = arith.constant 0 : i32
    %c0_i32_0 = arith.constant 0 : i32
    %c0_i32_1 = arith.constant 0 : i32
    return %c0_i32, %c0_i32_0 : i32, i32
  }
  func.func @transform_34(%arg0: i32) -> (i32, i32) {
    %c0_i32 = arith.constant 0 : i32
    %c0_i32_0 = arith.constant 0 : i32
    %c0_i32_1 = arith.constant 0 : i32
    return %c0_i32, %c0_i32_0 : i32, i32
  }
  func.func @transform_35(%arg0: i32) -> (i32, i32) {
    %c0_i32 = arith.constant 0 : i32
    %c0_i32_0 = arith.constant 0 : i32
    %c0_i32_1 = arith.constant 0 : i32
    return %c0_i32, %c0_i32_0 : i32, i32
  }
  func.func @transform_36(%arg0: i32) -> (i32, i32) {
    %c0_i32 = arith.constant 0 : i32
    %c0_i32_0 = arith.constant 0 : i32
    %c0_i32_1 = arith.constant 0 : i32
    return %c0_i32, %c0_i32_0 : i32, i32
  }
  func.func @transform_37(%arg0: i32) -> (i32, i32) {
    %c0_i32 = arith.constant 0 : i32
    %c0_i32_0 = arith.constant 0 : i32
    %c0_i32_1 = arith.constant 0 : i32
    return %c0_i32, %c0_i32_0 : i32, i32
  }
  func.func @transform_38(%arg0: i32) -> (i32, i32) {
    %c0_i32 = arith.constant 0 : i32
    %c0_i32_0 = arith.constant 0 : i32
    %c0_i32_1 = arith.constant 0 : i32
    return %c0_i32, %c0_i32_0 : i32, i32
  }
  func.func @transform_39(%arg0: i32) -> (i32, i32, i32) {
    %c0_i32 = arith.constant 0 : i32
    %c0_i32_0 = arith.constant 0 : i32
    %c0_i32_1 = arith.constant 0 : i32
    return %arg0, %c0_i32, %c0_i32_0 : i32, i32, i32
  }
  func.func @transform_40(%arg0: i32) -> (i32, i32, i32) {
    %c0_i32 = arith.constant 0 : i32
    %c0_i32_0 = arith.constant 0 : i32
    %c0_i32_1 = arith.constant 0 : i32
    return %arg0, %c0_i32, %c0_i32_0 : i32, i32, i32
  }
}

</mosaic_0001>

<bundles_post_ra>
// kernel: decoder_layer_forward.1
= control target key start
LH: loop header
LB: loop body
LE: loop exit
PB: predicated region body
PF: predicated region fallthrough
CT: control target
= control target key end

     0   :  { %s5546_s6 = smov 1   ;;  %s5547_s10 = smov 2   ;;  %s6640_s0 = inlined_call_operand.smem [shape: u32[41], index: -1, kind: input, shape index: {}] }
   0x1   :  { %s5634_s5 = sld [smem:[%s6640_s0]]   ;;  %s5548_s14 = smov 3  }
   0x2   :  { %s5639_s9 = sld [smem:[%s6640_s0 + %s5546_s6]]   ;;  %s5549_s18 = smov 4  }
   0x3   :  { %s5644_s13 = sld [smem:[%s6640_s0 + %s5547_s10]]   ;;  %s5550_s22 = smov 5  }
   0x4   :  { %s5649_s17 = sld [smem:[%s6640_s0 + %s5548_s14]]   ;;  %s5551_s26 = smov 6  }
   0x5   :  { %s5654_s21 = sld [smem:[%s6640_s0 + %s5549_s18]]   ;;  %s5552_s30 = smov 7  }
   0x6   :  { %s5659_s25 = sld [smem:[%s6640_s0 + %s5550_s22]]   ;;  %s5553_s4 = smov 8  }
   0x7   :  { %6675 = sst [smem:[#allocation59_spill]] %s5634_s5  ;;  %s5554_s10 = smov 9  }
   0x8   :  { %6676 = sst [smem:[#allocation60_spill]] %s5639_s9  ;;  %s5555_s15 = smov 10  }
   0x9   :  { %6677 = sst [smem:[#allocation61_spill]] %s5644_s13  ;;  %s5556_s20 = smov 11  }
   0xa   :  { %6678 = sst [smem:[#allocation62_spill]] %s5649_s17  ;;  %s5558_s1 = smov 13  }
   0xb   :  { %6679 = sst [smem:[#allocation63_spill]] %s5654_s21  ;;  %s5559_s7 = smov 14  }
   0xc   :  { %6680 = sst [smem:[#allocation64_spill]] %s5659_s25  ;;  %s5561_s22 = smov 16  }
   0xd   :  { %s5664_s29 = sld [smem:[%s6640_s0 + %s5551_s26]]   ;;  %s5557_s26 = smov 12  }
   0xe   :  { %s5669_s3 = sld [smem:[%s6640_s0 + %s5552_s30]]   ;;  %s5562_s28 = smov 17  }
   0xf   :  { %s5674_s8 = sld [smem:[%s6640_s0 + %s5553_s4]]  }
  0x10   :  { %s5679_s14 = sld [smem:[%s6640_s0 + %s5554_s10]]  }
  0x11   :  { %s5684_s19 = sld [smem:[%s6640_s0 + %s5555_s15]]   ;;  %s5560_s15 = smov 15  }
  0x12   :  { %s5689_s24 = sld [smem:[%s6640_s0 + %s5556_s20]]  }
  0x13   :  { %6681 = sst [smem:[#allocation65_spill]] %s5664_s29 }
  0x14   :  { %6682 = sst [smem:[#allocation66_spill]] %s5669_s3 }
  0x15   :  { %6683 = sst [smem:[#allocation67_spill]] %s5674_s8 }
  0x16   :  { %6684 = sst [smem:[#allocation68_spill]] %s5679_s14 }
  0x17   :  { %6685 = sst [smem:[#allocation69_spill]] %s5684_s19 }
  0x18   :  { %s5694_s30 = sld [smem:[%s6640_s0 + %s5557_s26]]  }
  0x19   :  { %s5699_s6 = sld [smem:[%s6640_s0 + %s5558_s1]]  }
  0x1a   :  { %s5704_s12 = sld [smem:[%s6640_s0 + %s5559_s7]]   ;;  %s5563_s7 = smov 18  }
  0x1b   :  { %s5709_s20 = sld [smem:[%s6640_s0 + %s5560_s15]]   ;;  %s5564_s15 = smov 19  }
  0x1c   :  { %s5714_s27 = sld [smem:[%s6640_s0 + %s5561_s22]]   ;;  %s5565_s22 = smov 20  }
  0x1d   :  { %s5719_s4 = sld [smem:[%s6640_s0 + %s5562_s28]]   ;;  %s5566_s28 = smov 21  }
  0x1e   :  { %s5724_s8 = sld [smem:[%s6640_s0 + %s5563_s7]]   ;;  %s5567_s7 = smov 22  }
  0x1f   :  { %6686 = sst [smem:[#allocation70_spill]] %s5699_s6 }
  0x20   :  { %6687 = sst [smem:[#allocation71_spill]] %s5704_s12 }
  0x21   :  { %6688 = sst [smem:[#allocation72_spill]] %s5709_s20 }
  0x22   :  { %s5729_s3 = sld [smem:[%s6640_s0 + %s5564_s15]]   ;;  %s5568_s15 = smov 23  }
  0x23   :  { %6689 = sst [smem:[#allocation73_spill]] %s5719_s4 }
  0x24   :  { %6690 = sst [smem:[#allocation74_spill]] %s5724_s8 }
  0x25   :  { %s5734_s29 = sld [smem:[%s6640_s0 + %s5565_s22]]   ;;  %s5569_s22 = smov 24  }
  0x26   :  { %s5739_s25 = sld [smem:[%s6640_s0 + %s5566_s28]]   ;;  %s5570_s28 = smov 25  }
  0x27   :  { %s5744_s21 = sld [smem:[%s6640_s0 + %s5567_s7]]   ;;  %s5571_s7 = smov 26  }
  0x28   :  { %6691 = sst [smem:[#allocation75_spill]] %s5729_s3 }
  0x29   :  { %s5749_s17 = sld [smem:[%s6640_s0 + %s5568_s15]]   ;;  %s5572_s15 = smov 27  }
  0x2a   :  { %s5754_s13 = sld [smem:[%s6640_s0 + %s5569_s22]]   ;;  %s5573_s22 = smov 28  }
  0x2b   :  { %s5759_s9 = sld [smem:[%s6640_s0 + %s5570_s28]]   ;;  %s5574_s28 = smov 29  }
  0x2c   :  { %6692 = sst [smem:[#allocation76_spill]] %s5739_s25 }
  0x2d   :  { %s5764_s19 = sld [smem:[%s6640_s0 + %s5571_s7]]   ;;  %s5575_s7 = smov 30  }
  0x2e   :  { %s5769_s14 = sld [smem:[%s6640_s0 + %s5572_s15]]   ;;  %s5576_s15 = smov 31  }
  0x2f   :  { %6693 = sst [smem:[#allocation77_spill]] %s5749_s17 }
  0x30   :  { %6694 = sst [smem:[#allocation78_spill]] %s5754_s13 }
  0x31   :  { %6695 = sst [smem:[#allocation79_spill]] %s5759_s9 }
  0x32   :  { %s5774_s5 = sld [smem:[%s6640_s0 + %s5573_s22]]   ;;  %s5577_s22 = smov 32  }
  0x33   :  { %s5779_s9 = sld [smem:[%s6640_s0 + %s5574_s28]]   ;;  %s5578_s28 = smov 33  }
  0x34   :  { %6696 = sst [smem:[#allocation80_spill]] %s5769_s14 }
  0x35   :  { %s5784_s17 = sld [smem:[%s6640_s0 + %s5575_s7]]   ;;  %s5579_s7 = smov 34  }
  0x36   :  { %s5789_s14 = sld [smem:[%s6640_s0 + %s5576_s15]]   ;;  %s5580_s15 = smov 35  }
  0x37   :  { %s5794_s25 = sld [smem:[%s6640_s0 + %s5577_s22]]   ;;  %s5581_s22 = smov 36  }
  0x38   :  { %6697 = sst [smem:[#allocation81_spill]] %s5774_s5 }
  0x39   :  { %6698 = sst [smem:[#allocation82_spill]] %s5779_s9 }
  0x3a   :  { %s5799_s9 = sld [smem:[%s6640_s0 + %s5578_s28]]   ;;  %s5582_s28 = smov 37  }
  0x3b   :  { %s5804_s3 = sld [smem:[%s6640_s0 + %s5579_s7]]   ;;  %s5583_s7 = smov 38  }
  0x3c   :  { %6699 = sst [smem:[#allocation83_spill]] %s5789_s14 }
  0x3d   :  { %6700 = sst [smem:[#allocation84_spill]] %s5794_s25 }
  0x3e   :  { %s5809_s14 = sld [smem:[%s6640_s0 + %s5580_s15]]   ;;  %s5584_s15 = smov 39  }
  0x3f   :  { %s5814_s25 = sld [smem:[%s6640_s0 + %s5581_s22]]   ;;  %s5585_s22 = smov 40  }
  0x40   :  { %6701 = sst [smem:[#allocation85_spill]] %s5799_s9 }
  0x41   :  { %6702 = sst [smem:[#allocation86_spill]] %s5804_s3 }
  0x42   :  { %s5819_s9 = sld [smem:[%s6640_s0 + %s5582_s28]]  }
  0x43   :  { %s5824_s4 = sld [smem:[%s6640_s0 + %s5583_s7]]  }
  0x44   :  { %6703 = sst [smem:[#allocation87_spill]] %s5809_s14 }
  0x45   :  { %s5829_s14 = sld [smem:[%s6640_s0 + %s5584_s15]]  }
  0x46   :  { %s5834_s20 = sld [smem:[%s6640_s0 + %s5585_s22]]  }
  0x4b   :  { %6704 = sst [smem:[#allocation88_spill]] %s5829_s14 }
  0x4c   :  { %87 = vsyncpa [#allocation3], 0 }
  0x4d   :  { %88 = vsyncpa [#allocation6], 0 }
  0x4e   :  { %89 = vsyncpa [#allocation9], 0 }
  0x4f   :  { %90 = vsyncpa [#allocation12], 0 }
  0x50   :  { %91 = vsyncpa [#allocation15], 0 }
  0x51   :  { %92 = vsyncpa [#allocation18], 0 }
  0x52   :  { %93 = vsyncpa [#allocation21], 0 }
  0x53   :  { %94 = vsyncpa [#allocation24], 0 }
  0x54   :  { %95 = vsyncpa [#allocation27], 0 }
  0x55   :  { %96 = vsyncpa [#allocation30], 0 }
  0x56   :  { %97 = vsyncpa [#allocation33], 0 }
  0x57   :  { %98 = vsyncpa [#allocation36], 0 }
  0x58   :  { %99 = vsyncpa [#allocation39], 0 }
  0x59   :  { %100 = vsyncpa [#allocation4], 0 }
  0x5a   :  { %102 = vsyncpa [#allocation4 + $0x1], 0 }
  0x5b   :  { %103 = vsyncpa [#allocation43], 0 }
  0x5c   :  { %105 = vsyncpa [#allocation43 + $0x1], 0  ;;  %s5836_s28 = smov 0   ;;  %s5838_s0 = smov 0  }
  0x5d   :  { %s5840_s1 = smov 0   ;;  %s5842_s2 = smov 0  }
  0x5e LB: > { %s6705_s13 = sld [smem:[#allocation78_spill]]  ;;  %s5857_s7 = sadd.s32 4294967295, %s5544_s2   ;;  %s5536_s0 = sphi %s5838_s0, %s6760_s0   ;;  %s5532_s28 = sphi %s5836_s28, %s6759_s28   ;;  %s5544_s2 = sphi %s5842_s2, %s6756_s2   ;;  %s5540_s1 = sphi %s5840_s1, %s6758_s1  }
  0x5f   : > { %s6706_s6 = sld [smem:[#allocation70_spill]]  ;;  %s4136_s10 = sadd.s32 4294967294, %s5544_s2  }
  0x60   : > { %s6707_s12 = sld [smem:[#allocation71_spill]]  ;;  %s5861_s11 = sadd.s32 1, %s5544_s2  }
  0x61   : > { %s6708_s8 = sld [smem:[#allocation74_spill]]  ;;  %s982_s15 = sadd.s32 1, %s5540_s1 }
  0x62   : > { %s6709_s5 = sld [smem:[#allocation81_spill]]  ;;  %s979_s16 = ssub.s32 %s5544_s2, %s5861_s11 }
  0x63   : > { %s6710_s3 = sld [smem:[#allocation86_spill]]  ;;  %p992_p0 = scmp.ne.s32.totalorder %s5540_s1, %s5536_s0 }
  0x64   : > { %6711 = sst [smem:[#allocation89_spill]] %s5532_s28  ;;  %p980_p1 = scmp.eq.s32.totalorder %s979_s16, 0 }
  0x65   : > { %6712 = sst [smem:[#allocation90_spill]] %s5540_s1  ;;  %p993_p2 = scmp.eq.s32.totalorder %s5857_s7, 1 }
  0x66   : > { %6713 = sst [smem:[#allocation91_spill]] %s5544_s2  ;;  %p998_p3 = scmp.ne.s32.totalorder %s5536_s0, %s5532_s28 }
  0x67   : > { %6714 = sst [smem:[#allocation92_spill]] %s5861_s11  ;;  %p999_p4 = scmp.eq.s32.totalorder %s4136_s10, 1 }
  0x68   : > { %s5872_s18 = scalar_select %p980_p1, %s5540_s1, %s982_s15  }
  0x69   : > { %p5874_p5 = por %p993_p2, %p992_p0  ;;  %p5878_p6 = por %p999_p4, %p998_p3 }
  0x6a   : > { %6715 = sst [smem:[#allocation93_spill]] %s5872_s18  ;;  %p4137_p7 = scmp.ge.s32.totalorder %s5544_s2, 1 }
  0x6b   : > { %s6717_s23 = scalar_select %p5878_p6, 1, 0 }
  0x6c   : > { %p1032_p8 = scmp.lt.s32.totalorder %s5544_s2, 3 }
  0x6d   : > { %6718 = sst [smem:[#allocation94_spill]] %s6717_s23 }
  0x6e   : > { %p5884_p9 = pnand %p4137_p7, %p1032_p8 }
  0x6f   : > { %p4441_p10 = scmp.eq.s32.totalorder (!%p5884_p9), %s5857_s7, 0  ;;  %s1064_s10 = sshll.u32 (!%p5884_p9), %s5694_s30, 4  ;;  %s1065_s10 = int_to_ptr.hbm [resolvable:$true] %s1064_s10 }
  0x70   : > { %1036 = sbr.rel (%p5884_p9) target bundleno = 441 (0x1b9), region = 12  ;;  %s5586_s15 = smov (!%p5884_p9), [#allocation5]  }
  0x71   : > { %s1066_s16 = sshll.u32 (!%p5884_p9), %s5586_s15, 4  ;;  %s1090_s18 = sshll.u32 (!%p5884_p9), %s6707_s12, 4  ;;  %s1067_s16 = int_to_ptr.vmem [resolvable:$true] %s1066_s16  ;;  %s5893_s18 = int_to_ptr.hbm [resolvable:$true] %s1090_s18 }
  0x72   : > { %s4698_s1 = sshra.s32 (!%p5884_p9), %s1065_s10, 4  ;;  %s4704_s23 = scalar_lea.hbm (!%p5884_p9), %s5694_s30, 1  ;;  %s4699_s1 = int_to_ptr.hbm [resolvable:$true] %s4698_s1 }
  0x73   : > { %s4700_s11 = scalar_lea.hbm (!%p5884_p9), %s4699_s1, 1  ;;  %p4705_p0 = scmp.lt.s32.totalorder (!%p5884_p9), %s4699_s1, %s5694_s30 }
  0x74   : > { %p4701_p11 = scmp.ne.s32.totalorder (!%p5884_p9), %s4699_s1, %s4700_s11  ;;  %p4706_p1 = scmp.lt.s32.totalorder (!%p5884_p9), %s4704_s23, %s4700_s11 }
  0x76   : > { %p4702_p12 = pnand %p4701_p11, %p4441_p10  ;;  %p4707_p2 = por %p4706_p1, %p4705_p0 }
  0x78   : > { %p4703_p13 = pneg %p4702_p12 }
  0x7a   : > { %p4708_p3 = pnand %p4707_p2, %p4703_p13 }
  0x7c   : > { %4711 = shalt.err (!%p4708_p3)
}
  0x7d   : > { %4333 = dma.hbm_to_vmem [thread:$0]  (%p4441_p10), %s1065_s10, 16, %s1067_s16, [#allocation6]  }
  0x7e   : > { %s1114_s15 = sshll.u32 %s5714_s27, 4  ;;  %s5587_s28 = smov [#allocation8]   ;;  %s5902_s15 = int_to_ptr.hbm [resolvable:$true] %s1114_s15 }
  0x7f   : > { %s1092_s2 = sshll.u32 %s5587_s28, 4  ;;  %s4726_s14 = sshra.s32 %s5893_s18, 4  ;;  %s1093_s2 = int_to_ptr.vmem [resolvable:$true] %s1092_s2  ;;  %s4727_s14 = int_to_ptr.hbm [resolvable:$true] %s4726_s14 }
  0x80   : > { %s4728_s1 = scalar_lea.hbm %s4727_s14, 1  ;;  %s4732_s11 = scalar_lea.hbm %s6707_s12, 1 }
  0x81   : > { %p4729_p4 = scmp.ne.s32.totalorder %s4727_s14, %s4728_s1  ;;  %p4733_p11 = scmp.lt.s32.totalorder %s4727_s14, %s6707_s12 }
  0x82   : > { %p4734_p12 = scmp.lt.s32.totalorder %s4732_s11, %s4728_s1 }
  0x83   : > { %p4730_p7 = pnand %p4729_p4, %p4441_p10 }
  0x84   : > { %p4735_p13 = por %p4734_p12, %p4733_p11 }
  0x85   : > { %p4731_p8 = pneg %p4730_p7 }
  0x87   : > { %p4736_p0 = pnand %p4735_p13, %p4731_p8 }
  0x89   : > { %4739 = shalt.err (!%p4736_p0)
}
  0x8a   : > { %4337 = dma.hbm_to_vmem [thread:$0]  (%p4441_p10), %s5893_s18, 16, %s1093_s2, [#allocation9]  }
  0x8b   : > { %s5588_s28 = smov [#allocation11]   ;;  %s1140_s10 = sshll.u32 %s6708_s8, 4  ;;  %s5913_s10 = int_to_ptr.hbm [resolvable:$true] %s1140_s10 }
  0x8c   : > { %s1116_s23 = sshll.u32 %s5588_s28, 4  ;;  %s4754_s14 = sshra.s32 %s5902_s15, 4  ;;  %s1117_s23 = int_to_ptr.vmem [resolvable:$true] %s1116_s23  ;;  %s4755_s14 = int_to_ptr.hbm [resolvable:$true] %s4754_s14 }
  0x8d   : > { %s4756_s16 = scalar_lea.hbm %s4755_s14, 1  ;;  %s4760_s1 = scalar_lea.hbm %s5714_s27, 1 }
  0x8e   : > { %p4757_p1 = scmp.ne.s32.totalorder %s4755_s14, %s4756_s16  ;;  %p4761_p4 = scmp.lt.s32.totalorder %s4755_s14, %s5714_s27 }
  0x8f   : > { %p4762_p7 = scmp.lt.s32.totalorder %s4760_s1, %s4756_s16 }
  0x90   : > { %p4758_p2 = pnand %p4757_p1, %p4441_p10 }
  0x91   : > { %p4763_p8 = por %p4762_p7, %p4761_p4 }
  0x92   : > { %p4759_p3 = pneg %p4758_p2 }
  0x94   : > { %p4764_p11 = pnand %p4763_p8, %p4759_p3 }
  0x96   : > { %4767 = shalt.err (!%p4764_p11)
}
  0x97   : > { %4341 = dma.hbm_to_vmem [thread:$0]  (%p4441_p10), %s5902_s15, 16, %s1117_s23, [#allocation12]  }
  0x98   : > { %s1166_s2 = sshll.u32 %s5734_s29, 4  ;;  %s5589_s18 = smov [#allocation14]   ;;  %s5924_s2 = int_to_ptr.hbm [resolvable:$true] %s1166_s2 }
  0x99   : > { %s1142_s11 = sshll.u32 %s5589_s18, 4  ;;  %s4782_s28 = sshra.s32 %s5913_s10, 4  ;;  %s1143_s11 = int_to_ptr.vmem [resolvable:$true] %s1142_s11  ;;  %s4783_s28 = int_to_ptr.hbm [resolvable:$true] %s4782_s28 }
  0x9a   : > { %s4784_s14 = scalar_lea.hbm %s4783_s28, 1  ;;  %s4788_s16 = scalar_lea.hbm %s6708_s8, 1 }
  0x9b   : > { %p4785_p12 = scmp.ne.s32.totalorder %s4783_s28, %s4784_s14  ;;  %p4789_p1 = scmp.lt.s32.totalorder %s4783_s28, %s6708_s8 }
  0x9c   : > { %p4790_p2 = scmp.lt.s32.totalorder %s4788_s16, %s4784_s14 }
  0x9d   : > { %p4786_p13 = pnand %p4785_p12, %p4441_p10 }
  0x9e   : > { %p4791_p3 = por %p4790_p2, %p4789_p1 }
  0x9f   : > { %p4787_p0 = pneg %p4786_p13 }
  0xa1   : > { %p4792_p4 = pnand %p4791_p3, %p4787_p0 }
  0xa3   : > { %4795 = shalt.err (!%p4792_p4)
}
  0xa4   : > { %4345 = dma.hbm_to_vmem [thread:$0]  (%p4441_p10), %s5913_s10, 16, %s1143_s11, [#allocation15]  }
  0xa5   : > { %s5590_s15 = smov [#allocation17]   ;;  %s1192_s1 = sshll.u32 %s5744_s21, 4  ;;  %s5935_s1 = int_to_ptr.hbm [resolvable:$true] %s1192_s1 }
  0xa6   : > { %s1168_s23 = sshll.u32 %s5590_s15, 4  ;;  %s4810_s18 = sshra.s32 %s5924_s2, 4  ;;  %s1169_s23 = int_to_ptr.vmem [resolvable:$true] %s1168_s23  ;;  %s4811_s18 = int_to_ptr.hbm [resolvable:$true] %s4810_s18 }
  0xa7   : > { %s4812_s28 = scalar_lea.hbm %s4811_s18, 1  ;;  %s4816_s14 = scalar_lea.hbm %s5734_s29, 1 }
  0xa8   : > { %p4813_p7 = scmp.ne.s32.totalorder %s4811_s18, %s4812_s28  ;;  %p4817_p12 = scmp.lt.s32.totalorder %s4811_s18, %s5734_s29 }
  0xa9   : > { %p4818_p13 = scmp.lt.s32.totalorder %s4816_s14, %s4812_s28 }
  0xaa   : > { %p4814_p8 = pnand %p4813_p7, %p4441_p10 }
  0xab   : > { %p4819_p0 = por %p4818_p13, %p4817_p12 }
  0xac   : > { %p4815_p11 = pneg %p4814_p8 }
  0xae   : > { %p4820_p1 = pnand %p4819_p0, %p4815_p11 }
  0xb0   : > { %4823 = shalt.err (!%p4820_p1)
}
  0xb1   : > { %4349 = dma.hbm_to_vmem [thread:$0]  (%p4441_p10), %s5924_s2, 16, %s1169_s23, [#allocation18]  }
  0xb2   : > { %s1218_s10 = sshll.u32 %s6705_s13, 4  ;;  %s5591_s11 = smov [#allocation20]   ;;  %s5946_s10 = int_to_ptr.hbm [resolvable:$true] %s1218_s10 }
  0xb3   : > { %s1194_s16 = sshll.u32 %s5591_s11, 4  ;;  %s4838_s15 = sshra.s32 %s5935_s1, 4  ;;  %s1195_s16 = int_to_ptr.vmem [resolvable:$true] %s1194_s16  ;;  %s4839_s15 = int_to_ptr.hbm [resolvable:$true] %s4838_s15 }
  0xb4   : > { %s4840_s18 = scalar_lea.hbm %s4839_s15, 1  ;;  %s4844_s28 = scalar_lea.hbm %s5744_s21, 1 }
  0xb5   : > { %p4841_p2 = scmp.ne.s32.totalorder %s4839_s15, %s4840_s18  ;;  %p4845_p7 = scmp.lt.s32.totalorder %s4839_s15, %s5744_s21 }
  0xb6   : > { %p4846_p8 = scmp.lt.s32.totalorder %s4844_s28, %s4840_s18 }
  0xb7   : > { %p4842_p3 = pnand %p4841_p2, %p4441_p10 }
  0xb8   : > { %p4847_p11 = por %p4846_p8, %p4845_p7 }
  0xb9   : > { %p4843_p4 = pneg %p4842_p3 }
  0xbb   : > { %p4848_p12 = pnand %p4847_p11, %p4843_p4 }
  0xbd   : > { %4851 = shalt.err (!%p4848_p12)
}
  0xbe   : > { %4353 = dma.hbm_to_vmem [thread:$0]  (%p4441_p10), %s5935_s1, 16, %s1195_s16, [#allocation21]  }
  0xbf   : > { %s5592_s2 = smov [#allocation23]   ;;  %s1244_s14 = sshll.u32 %s5764_s19, 4  ;;  %s5957_s14 = int_to_ptr.hbm [resolvable:$true] %s1244_s14 }
  0xc0   : > { %s1220_s23 = sshll.u32 %s5592_s2, 4  ;;  %s4866_s11 = sshra.s32 %s5946_s10, 4  ;;  %s1221_s23 = int_to_ptr.vmem [resolvable:$true] %s1220_s23  ;;  %s4867_s11 = int_to_ptr.hbm [resolvable:$true] %s4866_s11 }
  0xc1   : > { %s4868_s15 = scalar_lea.hbm %s4867_s11, 1  ;;  %s4872_s18 = scalar_lea.hbm %s6705_s13, 1 }
  0xc2   : > { %p4869_p13 = scmp.ne.s32.totalorder %s4867_s11, %s4868_s15  ;;  %p4873_p2 = scmp.lt.s32.totalorder %s4867_s11, %s6705_s13 }
  0xc3   : > { %p4874_p3 = scmp.lt.s32.totalorder %s4872_s18, %s4868_s15 }
  0xc4   : > { %p4870_p0 = pnand %p4869_p13, %p4441_p10 }
  0xc5   : > { %p4875_p4 = por %p4874_p3, %p4873_p2 }
  0xc6   : > { %p4871_p1 = pneg %p4870_p0 }
  0xc8   : > { %p4876_p7 = pnand %p4875_p4, %p4871_p1 }
  0xca   : > { %4879 = shalt.err (!%p4876_p7)
}
  0xcb   : > { %4357 = dma.hbm_to_vmem [thread:$0]  (%p4441_p10), %s5946_s10, 16, %s1221_s23, [#allocation24]  }
  0xcc   : > { %s1270_s1 = sshll.u32 %s6709_s5, 4  ;;  %s5593_s16 = smov [#allocation26]   ;;  %s5968_s1 = int_to_ptr.hbm [resolvable:$true] %s1270_s1 }
  0xcd   : > { %s1246_s28 = sshll.u32 %s5593_s16, 4  ;;  %s4894_s2 = sshra.s32 %s5957_s14, 4  ;;  %s1247_s28 = int_to_ptr.vmem [resolvable:$true] %s1246_s28  ;;  %s4895_s2 = int_to_ptr.hbm [resolvable:$true] %s4894_s2 }
  0xce   : > { %s4896_s11 = scalar_lea.hbm %s4895_s2, 1  ;;  %s4900_s15 = scalar_lea.hbm %s5764_s19, 1 }
  0xcf   : > { %p4897_p8 = scmp.ne.s32.totalorder %s4895_s2, %s4896_s11  ;;  %p4901_p13 = scmp.lt.s32.totalorder %s4895_s2, %s5764_s19 }
  0xd0   : > { %p4902_p0 = scmp.lt.s32.totalorder %s4900_s15, %s4896_s11 }
  0xd1   : > { %p4898_p11 = pnand %p4897_p8, %p4441_p10 }
  0xd2   : > { %p4903_p1 = por %p4902_p0, %p4901_p13 }
  0xd3   : > { %p4899_p12 = pneg %p4898_p11 }
  0xd5   : > { %p4904_p2 = pnand %p4903_p1, %p4899_p12 }
  0xd7   : > { %4907 = shalt.err (!%p4904_p2)
}
  0xd8   : > { %4361 = dma.hbm_to_vmem [thread:$0]  (%p4441_p10), %s5957_s14, 16, %s1247_s28, [#allocation27]  }
  0xd9   : > { %s5594_s10 = smov [#allocation29]   ;;  %s1296_s18 = sshll.u32 %s5784_s17, 4  ;;  %s5979_s18 = int_to_ptr.hbm [resolvable:$true] %s1296_s18 }
  0xda   : > { %s1272_s23 = sshll.u32 %s5594_s10, 4  ;;  %s4922_s16 = sshra.s32 %s5968_s1, 4  ;;  %s1273_s23 = int_to_ptr.vmem [resolvable:$true] %s1272_s23  ;;  %s4923_s16 = int_to_ptr.hbm [resolvable:$true] %s4922_s16 }
  0xdb   : > { %s4924_s2 = scalar_lea.hbm %s4923_s16, 1  ;;  %s4928_s11 = scalar_lea.hbm %s6709_s5, 1 }
  0xdc   : > { %p4925_p3 = scmp.ne.s32.totalorder %s4923_s16, %s4924_s2  ;;  %p4929_p8 = scmp.lt.s32.totalorder %s4923_s16, %s6709_s5 }
  0xdd   : > { %p4930_p11 = scmp.lt.s32.totalorder %s4928_s11, %s4924_s2 }
  0xde   : > { %p4926_p4 = pnand %p4925_p3, %p4441_p10 }
  0xdf   : > { %p4931_p12 = por %p4930_p11, %p4929_p8 }
  0xe0   : > { %p4927_p7 = pneg %p4926_p4 }
  0xe2   : > { %p4932_p13 = pnand %p4931_p12, %p4927_p7 }
  0xe4   : > { %4935 = shalt.err (!%p4932_p13)
}
  0xe5   : > { %4365 = dma.hbm_to_vmem [thread:$0]  (%p4441_p10), %s5968_s1, 16, %s1273_s23, [#allocation30]  }
  0xe6   : > { %s1326_s14 = sshll.u32 %s6710_s3, 4  ;;  %s5595_s28 = smov [#allocation32]   ;;  %s5990_s14 = int_to_ptr.hbm [resolvable:$true] %s1326_s14 }
  0xe7   : > { %s1298_s15 = sshll.u32 %s5595_s28, 4  ;;  %s4950_s10 = sshra.s32 %s5979_s18, 4  ;;  %s1299_s15 = int_to_ptr.vmem [resolvable:$true] %s1298_s15  ;;  %s4951_s10 = int_to_ptr.hbm [resolvable:$true] %s4950_s10 }
  0xe8   : > { %s4952_s16 = scalar_lea.hbm %s4951_s10, 1  ;;  %s4956_s2 = scalar_lea.hbm %s5784_s17, 1 }
  0xe9   : > { %p4953_p0 = scmp.ne.s32.totalorder %s4951_s10, %s4952_s16  ;;  %p4957_p3 = scmp.lt.s32.totalorder %s4951_s10, %s5784_s17 }
  0xea   : > { %p4958_p4 = scmp.lt.s32.totalorder %s4956_s2, %s4952_s16 }
  0xeb   : > { %p4954_p1 = pnand %p4953_p0, %p4441_p10 }
  0xec   : > { %p4959_p7 = por %p4958_p4, %p4957_p3 }
  0xed   : > { %p4955_p2 = pneg %p4954_p1 }
  0xef   : > { %p4960_p8 = pnand %p4959_p7, %p4955_p2 }
  0xf1   : > { %4963 = shalt.err (!%p4960_p8)
}
  0xf2   : > { %4369 = dma.hbm_to_vmem [thread:$0]  (%p4441_p10), %s5979_s18, 16, %s1299_s15, [#allocation33]  }
  0xf3   : > { %s5596_s1 = smov [#allocation35]   ;;  %s1352_s11 = sshll.u32 %s5814_s25, 4  ;;  %s6001_s11 = int_to_ptr.hbm [resolvable:$true] %s1352_s11 }
  0xf4   : > { %s1328_s23 = sshll.u32 %s5596_s1, 4  ;;  %s4978_s28 = sshra.s32 %s5990_s14, 4  ;;  %s1329_s23 = int_to_ptr.vmem [resolvable:$true] %s1328_s23  ;;  %s4979_s28 = int_to_ptr.hbm [resolvable:$true] %s4978_s28 }
  0xf5   : > { %s4980_s10 = scalar_lea.hbm %s4979_s28, 1  ;;  %s4984_s16 = scalar_lea.hbm %s6710_s3, 1 }
  0xf6   : > { %p4981_p11 = scmp.ne.s32.totalorder %s4979_s28, %s4980_s10  ;;  %p4985_p0 = scmp.lt.s32.totalorder %s4979_s28, %s6710_s3 }
  0xf7   : > { %p4986_p1 = scmp.lt.s32.totalorder %s4984_s16, %s4980_s10 }
  0xf8   : > { %p4982_p12 = pnand %p4981_p11, %p4441_p10 }
  0xf9   : > { %p4987_p2 = por %p4986_p1, %p4985_p0 }
  0xfa   : > { %p4983_p13 = pneg %p4982_p12 }
  0xfc   : > { %p4988_p3 = pnand %p4987_p2, %p4983_p13 }
  0xfe   : > { %4991 = shalt.err (!%p4988_p3)
}
  0xff   : > { %4373 = dma.hbm_to_vmem [thread:$0]  (%p4441_p10), %s5990_s14, 16, %s1329_s23, [#allocation36]  }
 0x100   : > { %s5597_s18 = smov [#allocation38]   ;;  %s1049_s2 = sshll.u32 %s5689_s24, 4  ;;  %s6012_s2 = int_to_ptr.hbm [resolvable:$true] %s1049_s2 }
 0x101   : > { %s1354_s15 = sshll.u32 %s5597_s18, 4  ;;  %s5006_s1 = sshra.s32 %s6001_s11, 4  ;;  %s1355_s15 = int_to_ptr.vmem [resolvable:$true] %s1354_s15  ;;  %s5007_s1 = int_to_ptr.hbm [resolvable:$true] %s5006_s1 }
 0x102   : > { %s5008_s28 = scalar_lea.hbm %s5007_s1, 1  ;;  %s5012_s10 = scalar_lea.hbm %s5814_s25, 1 }
 0x103   : > { %p5009_p4 = scmp.ne.s32.totalorder %s5007_s1, %s5008_s28  ;;  %p5013_p11 = scmp.lt.s32.totalorder %s5007_s1, %s5814_s25 }
 0x104   : > { %p5014_p12 = scmp.lt.s32.totalorder %s5012_s10, %s5008_s28 }
 0x105   : > { %p5010_p7 = pnand %p5009_p4, %p4441_p10 }
 0x106   : > { %p5015_p13 = por %p5014_p12, %p5013_p11 }
 0x107   : > { %p5011_p8 = pneg %p5010_p7 }
 0x109   : > { %p5016_p0 = pnand %p5015_p13, %p5011_p8 }
 0x10b   : > { %5019 = shalt.err (!%p5016_p0)
}
 0x10c   : > { %4377 = dma.hbm_to_vmem [thread:$0]  (%p4441_p10), %s6001_s11, 16, %s1355_s15, [#allocation39]  }
 0x10d   : > { %s5598_s14 = smov [#allocation2]   ;;  %s1075_s16 = sshll.u32 %s6706_s6, 4  ;;  %s1076_s16 = int_to_ptr.hbm [resolvable:$true] %s1075_s16 }
 0x10e   : > { %s1051_s23 = sshll.u32 %s5598_s14, 4  ;;  %s5034_s18 = sshra.s32 %s6012_s2, 4  ;;  %s1052_s23 = int_to_ptr.vmem [resolvable:$true] %s1051_s23  ;;  %s5035_s18 = int_to_ptr.hbm [resolvable:$true] %s5034_s18 }
 0x10f   : > { %s5036_s1 = scalar_lea.hbm %s5035_s18, 16  ;;  %s5040_s28 = scalar_lea.hbm %s5689_s24, 16 }
 0x110   : > { %p5037_p1 = scmp.ne.s32.totalorder %s5035_s18, %s5036_s1  ;;  %p5041_p4 = scmp.lt.s32.totalorder %s5035_s18, %s5689_s24 }
 0x111   : > { %p5042_p7 = scmp.lt.s32.totalorder %s5040_s28, %s5036_s1 }
 0x112   : > { %p5038_p2 = pnand %p5037_p1, %p4441_p10 }
 0x113   : > { %p5043_p8 = por %p5042_p7, %p5041_p4 }
 0x114   : > { %p5039_p3 = pneg %p5038_p2 }
 0x116   : > { %p5044_p11 = pnand %p5043_p8, %p5039_p3 }
 0x118   : > { %5047 = shalt.err (!%p5044_p11)
}
 0x119   : > { %s6669_s10 = smov 64   ;;  %s6720_s11 = sld [smem:[#allocation72_spill]] }
 0x11a   : > { %s5600_s15 = smov 4   ;;  %s5601_s14 = smov [#allocation7]  }
 0x11b   : > { %4331 = dma.hbm_to_vmem [thread:$0]  (%p4441_p10), %s6012_s2, 256, %s1052_s23, [#allocation3], %s6669_s10, %s6669_s10, %s5600_s15  }
 0x11c   : > { %s1077_s18 = sshll.u32 %s5601_s14, 4  ;;  %s5062_s28 = sshra.s32 %s1076_s16, 4  ;;  %s1078_s18 = int_to_ptr.vmem [resolvable:$true] %s1077_s18  ;;  %s5063_s28 = int_to_ptr.hbm [resolvable:$true] %s5062_s28 }
 0x11d   : > { %s5064_s3 = scalar_lea.hbm %s5063_s28, 16  ;;  %s5068_s5 = scalar_lea.hbm %s6706_s6, 16 }
 0x11e   : > { %p5065_p12 = scmp.ne.s32.totalorder %s5063_s28, %s5064_s3  ;;  %p5069_p1 = scmp.lt.s32.totalorder %s5063_s28, %s6706_s6 }
 0x11f   : > { %s1102_s1 = sshll.u32 %s6720_s11, 4  ;;  %p5070_p2 = scmp.lt.s32.totalorder %s5068_s5, %s5064_s3  ;;  %s6035_s1 = int_to_ptr.hbm [resolvable:$true] %s1102_s1 }
 0x120   : > { %p5066_p13 = pnand %p5065_p12, %p4441_p10 }
 0x121   : > { %p5071_p3 = por %p5070_p2, %p5069_p1 }
 0x122   : > { %p5067_p0 = pneg %p5066_p13 }
 0x124   : > { %p5072_p4 = pnand %p5071_p3, %p5067_p0 }
 0x126   : > { %5075 = shalt.err (!%p5072_p4)
}
 0x127   : > { %s6721_s2 = sld [smem:[#allocation73_spill]]  ;;  %s5602_s8 = smov [#allocation10]  }
 0x128   : > { %4335 = dma.hbm_to_vmem [thread:$0]  (%p4441_p10), %s1076_s16, 256, %s1078_s18, [#allocation6], %s6669_s10, %s6669_s10, %s5600_s15  }
 0x129   : > { %s1104_s12 = sshll.u32 %s5602_s8, 4  ;;  %s5090_s5 = sshra.s32 %s6035_s1, 4  ;;  %s1105_s12 = int_to_ptr.vmem [resolvable:$true] %s1104_s12  ;;  %s5091_s5 = int_to_ptr.hbm [resolvable:$true] %s5090_s5 }
 0x12a   : > { %s5092_s3 = scalar_lea.hbm %s5091_s5, 1  ;;  %s5096_s28 = scalar_lea.hbm %s6720_s11, 1 }
 0x12b   : > { %p5093_p7 = scmp.ne.s32.totalorder %s5091_s5, %s5092_s3  ;;  %p5097_p12 = scmp.lt.s32.totalorder %s5091_s5, %s6720_s11 }
 0x12c   : > { %p5098_p13 = scmp.lt.s32.totalorder %s5096_s28, %s5092_s3 }
 0x12d   : > { %s6722_s23 = smov %s6721_s2  ;;  %s1125_s14 = sshll.u32 %s6721_s2, 4  ;;  %s6047_s14 = int_to_ptr.hbm [resolvable:$true] %s1125_s14 }
 0x12e   : > { %p5094_p8 = pnand %p5093_p7, %p4441_p10  ;;  %p5099_p0 = por %p5098_p13, %p5097_p12 }
 0x130   : > { %p5095_p11 = pneg %p5094_p8 }
 0x132   : > { %p5100_p1 = pnand %p5099_p0, %p5095_p11 }
 0x134   : > { %5103 = shalt.err (!%p5100_p1)
}
 0x135   : > { %s6723_s8 = sld [smem:[#allocation75_spill]]  ;;  %s5603_s16 = smov [#allocation13]  }
 0x136   : > { %4339 = dma.hbm_to_vmem [thread:$0]  (%p4441_p10), %s6035_s1, 16, %s1105_s12, [#allocation9]  }
 0x137   : > { %s1127_s18 = sshll.u32 %s5603_s16, 4  ;;  %s5118_s5 = sshra.s32 %s6047_s14, 4  ;;  %s1128_s18 = int_to_ptr.vmem [resolvable:$true] %s1127_s18  ;;  %s5119_s5 = int_to_ptr.hbm [resolvable:$true] %s5118_s5 }
 0x138   : > { %s5120_s3 = scalar_lea.hbm %s5119_s5, 16  ;;  %s5124_s28 = scalar_lea.hbm %s6722_s23, 16 }
 0x139   : > { %p5121_p2 = scmp.ne.s32.totalorder %s5119_s5, %s5120_s3  ;;  %p5125_p7 = scmp.lt.s32.totalorder %s5119_s5, %s6722_s23 }
 0x13a   : > { %p5126_p8 = scmp.lt.s32.totalorder %s5124_s28, %s5120_s3 }
 0x13b   : > { %s1151_s2 = sshll.u32 %s6723_s8, 4  ;;  %p5122_p3 = pnand %p5121_p2, %p4441_p10  ;;  %s6058_s2 = int_to_ptr.hbm [resolvable:$true] %s1151_s2 }
 0x13c   : > { %p5127_p11 = por %p5126_p8, %p5125_p7 }
 0x13d   : > { %p5123_p4 = pneg %p5122_p3 }
 0x13f   : > { %p5128_p12 = pnand %p5127_p11, %p5123_p4 }
 0x141   : > { %5131 = shalt.err (!%p5128_p12)
}
 0x142   : > { %s6724_s12 = sld [smem:[#allocation76_spill]]  ;;  %s5604_s16 = smov [#allocation16]  }
 0x143   : > { %4343 = dma.hbm_to_vmem [thread:$0]  (%p4441_p10), %s6047_s14, 256, %s1128_s18, [#allocation12], %s6669_s10, %s6669_s10, %s5600_s15  }
 0x144   : > { %s1153_s6 = sshll.u32 %s5604_s16, 4  ;;  %s5146_s5 = sshra.s32 %s6058_s2, 4  ;;  %s1154_s6 = int_to_ptr.vmem [resolvable:$true] %s1153_s6  ;;  %s5147_s5 = int_to_ptr.hbm [resolvable:$true] %s5146_s5 }
 0x145   : > { %s5148_s3 = scalar_lea.hbm %s5147_s5, 16  ;;  %s5152_s28 = scalar_lea.hbm %s6723_s8, 16 }
 0x146   : > { %p5149_p13 = scmp.ne.s32.totalorder %s5147_s5, %s5148_s3  ;;  %p5153_p2 = scmp.lt.s32.totalorder %s5147_s5, %s6723_s8 }
 0x147   : > { %p5154_p3 = scmp.lt.s32.totalorder %s5152_s28, %s5148_s3 }
 0x148   : > { %s1177_s1 = sshll.u32 %s6724_s12, 4  ;;  %p5150_p0 = pnand %p5149_p13, %p4441_p10  ;;  %s6072_s1 = int_to_ptr.hbm [resolvable:$true] %s1177_s1 }
 0x149   : > { %p5155_p4 = por %p5154_p3, %p5153_p2 }
 0x14a   : > { %p5151_p1 = pneg %p5150_p0 }
 0x14c   : > { %p5156_p7 = pnand %p5155_p4, %p5151_p1 }
 0x14e   : > { %5159 = shalt.err (!%p5156_p7)
}
 0x14f   : > { %s6725_s14 = sld [smem:[#allocation77_spill]]  ;;  %s5605_s18 = smov [#allocation19]  }
 0x150   : > { %4347 = dma.hbm_to_vmem [thread:$0]  (%p4441_p10), %s6058_s2, 256, %s1154_s6, [#allocation15], %s6669_s10, %s6669_s10, %s5600_s15  }
 0x151   : > { %s1179_s16 = sshll.u32 %s5605_s18, 4  ;;  %s5174_s5 = sshra.s32 %s6072_s1, 4  ;;  %s1180_s16 = int_to_ptr.vmem [resolvable:$true] %s1179_s16  ;;  %s5175_s5 = int_to_ptr.hbm [resolvable:$true] %s5174_s5 }
 0x152   : > { %s5176_s3 = scalar_lea.hbm %s5175_s5, 16  ;;  %s5180_s28 = scalar_lea.hbm %s6724_s12, 16 }
 0x153   : > { %p5177_p8 = scmp.ne.s32.totalorder %s5175_s5, %s5176_s3  ;;  %p5181_p13 = scmp.lt.s32.totalorder %s5175_s5, %s6724_s12 }
 0x154   : > { %p5182_p0 = scmp.lt.s32.totalorder %s5180_s28, %s5176_s3 }
 0x155   : > { %s1203_s11 = sshll.u32 %s6725_s14, 4  ;;  %p5178_p11 = pnand %p5177_p8, %p4441_p10  ;;  %s6086_s11 = int_to_ptr.hbm [resolvable:$true] %s1203_s11 }
 0x156   : > { %p5183_p1 = por %p5182_p0, %p5181_p13 }
 0x157   : > { %p5179_p12 = pneg %p5178_p11 }
 0x159   : > { %p5184_p2 = pnand %p5183_p1, %p5179_p12 }
 0x15b   : > { %5187 = shalt.err (!%p5184_p2)
}
 0x15c   : > { %s6726_s6 = sld [smem:[#allocation79_spill]]  ;;  %s5606_s18 = smov [#allocation22]  }
 0x15d   : > { %4351 = dma.hbm_to_vmem [thread:$0]  (%p4441_p10), %s6072_s1, 256, %s1180_s16, [#allocation18], %s6669_s10, %s6669_s10, %s5600_s15  }
 0x15e   : > { %s1205_s8 = sshll.u32 %s5606_s18, 4  ;;  %s5202_s5 = sshra.s32 %s6086_s11, 4  ;;  %s1206_s8 = int_to_ptr.vmem [resolvable:$true] %s1205_s8  ;;  %s5203_s5 = int_to_ptr.hbm [resolvable:$true] %s5202_s5 }
 0x15f   : > { %s5204_s3 = scalar_lea.hbm %s5203_s5, 16  ;;  %s5208_s28 = scalar_lea.hbm %s6725_s14, 16 }
 0x160   : > { %p5205_p3 = scmp.ne.s32.totalorder %s5203_s5, %s5204_s3  ;;  %p5209_p8 = scmp.lt.s32.totalorder %s5203_s5, %s6725_s14 }
 0x161   : > { %p5210_p11 = scmp.lt.s32.totalorder %s5208_s28, %s5204_s3 }
 0x162   : > { %s1229_s2 = sshll.u32 %s6726_s6, 4  ;;  %p5206_p4 = pnand %p5205_p3, %p4441_p10  ;;  %s6100_s2 = int_to_ptr.hbm [resolvable:$true] %s1229_s2 }
 0x163   : > { %p5211_p12 = por %p5210_p11, %p5209_p8 }
 0x164   : > { %p5207_p7 = pneg %p5206_p4 }
 0x166   : > { %p5212_p13 = pnand %p5211_p12, %p5207_p7 }
 0x168   : > { %5215 = shalt.err (!%p5212_p13)
}
 0x169   : > { %s6727_s1 = sld [smem:[#allocation80_spill]]  ;;  %s5607_s18 = smov [#allocation25]  }
 0x16a   : > { %4355 = dma.hbm_to_vmem [thread:$0]  (%p4441_p10), %s6086_s11, 256, %s1206_s8, [#allocation21], %s6669_s10, %s6669_s10, %s5600_s15  }
 0x16b   : > { %s1231_s12 = sshll.u32 %s5607_s18, 4  ;;  %s5230_s5 = sshra.s32 %s6100_s2, 4  ;;  %s1232_s12 = int_to_ptr.vmem [resolvable:$true] %s1231_s12  ;;  %s5231_s5 = int_to_ptr.hbm [resolvable:$true] %s5230_s5 }
 0x16c   : > { %s5232_s3 = scalar_lea.hbm %s5231_s5, 16  ;;  %s5236_s28 = scalar_lea.hbm %s6726_s6, 16 }
 0x16d   : > { %p5233_p0 = scmp.ne.s32.totalorder %s5231_s5, %s5232_s3  ;;  %p5237_p3 = scmp.lt.s32.totalorder %s5231_s5, %s6726_s6 }
 0x16e   : > { %p5238_p4 = scmp.lt.s32.totalorder %s5236_s28, %s5232_s3 }
 0x16f   : > { %s6728_s16 = smov %s6727_s1  ;;  %s1255_s13 = sshll.u32 %s6727_s1, 4  ;;  %s6114_s13 = int_to_ptr.hbm [resolvable:$true] %s1255_s13 }
 0x170   : > { %p5234_p1 = pnand %p5233_p0, %p4441_p10  ;;  %p5239_p7 = por %p5238_p4, %p5237_p3 }
 0x172   : > { %p5235_p2 = pneg %p5234_p1 }
 0x174   : > { %p5240_p8 = pnand %p5239_p7, %p5235_p2 }
 0x176   : > { %5243 = shalt.err (!%p5240_p8)
}
 0x177   : > { %s6729_s11 = sld [smem:[#allocation82_spill]]  ;;  %s5608_s1 = smov [#allocation28]  }
 0x178   : > { %4359 = dma.hbm_to_vmem [thread:$0]  (%p4441_p10), %s6100_s2, 256, %s1232_s12, [#allocation24], %s6669_s10, %s6669_s10, %s5600_s15  }
 0x179   : > { %s1257_s18 = sshll.u32 %s5608_s1, 4  ;;  %s5258_s5 = sshra.s32 %s6114_s13, 4  ;;  %s1258_s18 = int_to_ptr.vmem [resolvable:$true] %s1257_s18  ;;  %s5259_s5 = int_to_ptr.hbm [resolvable:$true] %s5258_s5 }
 0x17a   : > { %s5260_s3 = scalar_lea.hbm %s5259_s5, 16  ;;  %s5264_s28 = scalar_lea.hbm %s6728_s16, 16 }
 0x17b   : > { %p5261_p11 = scmp.ne.s32.totalorder %s5259_s5, %s5260_s3  ;;  %p5265_p0 = scmp.lt.s32.totalorder %s5259_s5, %s6728_s16 }
 0x17c   : > { %p5266_p1 = scmp.lt.s32.totalorder %s5264_s28, %s5260_s3 }
 0x17d   : > { %s1281_s8 = sshll.u32 %s6729_s11, 4  ;;  %p5262_p12 = pnand %p5261_p11, %p4441_p10  ;;  %s6128_s8 = int_to_ptr.hbm [resolvable:$true] %s1281_s8 }
 0x17e   : > { %p5267_p2 = por %p5266_p1, %p5265_p0 }
 0x17f   : > { %p5263_p13 = pneg %p5262_p12 }
 0x181   : > { %p5268_p3 = pnand %p5267_p2, %p5263_p13 }
 0x183   : > { %5271 = shalt.err (!%p5268_p3)
}
 0x184   : > { %s6730_s12 = sld [smem:[#allocation85_spill]]  ;;  %s5609_s2 = smov [#allocation31]  }
 0x185   : > { %4363 = dma.hbm_to_vmem [thread:$0]  (%p4441_p10), %s6114_s13, 256, %s1258_s18, [#allocation27], %s6669_s10, %s6669_s10, %s5600_s15  }
 0x186   : > { %s1283_s1 = sshll.u32 %s5609_s2, 4  ;;  %s5286_s5 = sshra.s32 %s6128_s8, 4  ;;  %s1284_s1 = int_to_ptr.vmem [resolvable:$true] %s1283_s1  ;;  %s5287_s5 = int_to_ptr.hbm [resolvable:$true] %s5286_s5 }
 0x187   : > { %s5288_s3 = scalar_lea.hbm %s5287_s5, 16  ;;  %s5292_s28 = scalar_lea.hbm %s6729_s11, 16 }
 0x188   : > { %p5289_p4 = scmp.ne.s32.totalorder %s5287_s5, %s5288_s3  ;;  %p5293_p11 = scmp.lt.s32.totalorder %s5287_s5, %s6729_s11 }
 0x189   : > { %p5294_p12 = scmp.lt.s32.totalorder %s5292_s28, %s5288_s3 }
 0x18a   : > { %s1314_s6 = sshll.u32 %s6730_s12, 4  ;;  %p5290_p7 = pnand %p5289_p4, %p4441_p10  ;;  %s6142_s6 = int_to_ptr.hbm [resolvable:$true] %s1314_s6 }
 0x18b   : > { %p5295_p13 = por %p5294_p12, %p5293_p11 }
 0x18c   : > { %p5291_p8 = pneg %p5290_p7 }
 0x18e   : > { %p5296_p0 = pnand %p5295_p13, %p5291_p8 }
 0x190   : > { %5299 = shalt.err (!%p5296_p0)
}
 0x191   : > { %s6731_s13 = sld [smem:[#allocation87_spill]]  ;;  %s5610_s2 = smov [#allocation34]  }
 0x192   : > { %4367 = dma.hbm_to_vmem [thread:$0]  (%p4441_p10), %s6128_s8, 256, %s1284_s1, [#allocation30], %s6669_s10, %s6669_s10, %s5600_s15  }
 0x193   : > { %s1316_s14 = sshll.u32 %s5610_s2, 4  ;;  %s5314_s5 = sshra.s32 %s6142_s6, 4  ;;  %s1317_s14 = int_to_ptr.vmem [resolvable:$true] %s1316_s14  ;;  %s5315_s5 = int_to_ptr.hbm [resolvable:$true] %s5314_s5 }
 0x194   : > { %s5316_s3 = scalar_lea.hbm %s5315_s5, 1  ;;  %s5320_s28 = scalar_lea.hbm %s6730_s12, 1 }
 0x195   : > { %p5317_p1 = scmp.ne.s32.totalorder %s5315_s5, %s5316_s3  ;;  %p5321_p4 = scmp.lt.s32.totalorder %s5315_s5, %s6730_s12 }
 0x196   : > { %p5322_p7 = scmp.lt.s32.totalorder %s5320_s28, %s5316_s3 }
 0x197   : > { %s1337_s18 = sshll.u32 %s6731_s13, 4  ;;  %p5318_p2 = pnand %p5317_p1, %p4441_p10  ;;  %s6156_s18 = int_to_ptr.hbm [resolvable:$true] %s1337_s18 }
 0x198   : > { %p5323_p8 = por %p5322_p7, %p5321_p4 }
 0x199   : > { %p5319_p3 = pneg %p5318_p2 }
 0x19b   : > { %p5324_p11 = pnand %p5323_p8, %p5319_p3 }
 0x19d   : > { %5327 = shalt.err (!%p5324_p11)
}
 0x19e   : > { %4371 = dma.hbm_to_vmem [thread:$0]  (%p4441_p10), %s6142_s6, 16, %s1317_s14, [#allocation33]  }
 0x19f   : > { %s5611_s8 = smov [#allocation37]   ;;  %s1367_s2 = sshll.u32 %s5824_s4, 4  ;;  %s1368_s2 = int_to_ptr.hbm [resolvable:$true] %s1367_s2 }
 0x1a0   : > { %s1339_s1 = sshll.u32 %s5611_s8, 4  ;;  %s5342_s10 = sshra.s32 %s6156_s18, 4  ;;  %s1340_s1 = int_to_ptr.vmem [resolvable:$true] %s1339_s1  ;;  %s5343_s10 = int_to_ptr.hbm [resolvable:$true] %s5342_s10 }
 0x1a1   : > { %s5344_s5 = scalar_lea.hbm %s5343_s10, 16  ;;  %s5348_s3 = scalar_lea.hbm %s6731_s13, 16 }
 0x1a2   : > { %p5345_p12 = scmp.ne.s32.totalorder %s5343_s10, %s5344_s5  ;;  %p5349_p1 = scmp.lt.s32.totalorder %s5343_s10, %s6731_s13 }
 0x1a3   : > { %p5350_p2 = scmp.lt.s32.totalorder %s5348_s3, %s5344_s5 }
 0x1a4   : > { %p5346_p13 = pnand %p5345_p12, %p4441_p10 }
 0x1a5   : > { %p5351_p3 = por %p5350_p2, %p5349_p1 }
 0x1a6   : > { %p5347_p0 = pneg %p5346_p13 }
 0x1a8   : > { %p5352_p4 = pnand %p5351_p3, %p5347_p0 }
 0x1aa   : > { %5355 = shalt.err (!%p5352_p4)
}
 0x1ab   : > { %s6732_s14 = smov 64   ;;  %s5612_s6 = smov [#allocation40]  }
 0x1ac   : > { %4375 = dma.hbm_to_vmem [thread:$0]  (%p4441_p10), %s6156_s18, 256, %s1340_s1, [#allocation36], %s6732_s14, %s6732_s14, %s5600_s15  }
 0x1ad   : > { %s1369_s28 = sshll.u32 %s5612_s6, 4  ;;  %s5370_s8 = sshra.s32 %s1368_s2, 4  ;;  %s1370_s28 = int_to_ptr.vmem [resolvable:$true] %s1369_s28  ;;  %s5371_s8 = int_to_ptr.hbm [resolvable:$true] %s5370_s8 }
 0x1ae   : > { %s5372_s10 = scalar_lea.hbm %s5371_s8, 1  ;;  %s5376_s5 = scalar_lea.hbm %s5824_s4, 1 }
 0x1af   : > { %p5373_p7 = scmp.ne.s32.totalorder %s5371_s8, %s5372_s10  ;;  %p5377_p12 = scmp.lt.s32.totalorder %s5371_s8, %s5824_s4 }
 0x1b0   : > { %p5378_p13 = scmp.lt.s32.totalorder %s5376_s5, %s5372_s10 }
 0x1b1   : > { %p5374_p8 = pnand %p5373_p7, %p4441_p10 }
 0x1b2   : > { %p5379_p0 = por %p5378_p13, %p5377_p12 }
 0x1b3   : > { %p5375_p11 = pneg %p5374_p8 }
 0x1b5   : > { %p5380_p1 = pnand %p5379_p0, %p5375_p11 }
 0x1b7   : > { %5383 = shalt.err (!%p5380_p1)
}
 0x1b8   : > { %4379 = dma.hbm_to_vmem [thread:$0]  (%p4441_p10), %s1368_s2, 16, %s1370_s28, [#allocation39]  }
 0x1b9 PF: > { %1440 = sbr.rel (%p5884_p9) target bundleno = 6098 (0x17d2), region = 176  ;;  %p4466_p2 = scmp.eq.s32.totalorder (!%p5884_p9), %s5857_s7, 0 }
 0x1be   : > { %5471 = dma.done.wait (%p4466_p2), [#allocation3], 256  }
 0x1bf   : > { %5473 = vsyncadd (%p4466_p2), [#allocation3], 4294967040 }
 0x1c0   : > { %5475 = dma.done.wait (%p4466_p2), [#allocation6], 272  }
 0x1c1   : > { %5477 = vsyncadd (%p4466_p2), [#allocation6], 4294967024 }
 0x1c2   : > { %5479 = dma.done.wait (%p4466_p2), [#allocation9], 32  }
 0x1c3   : > { %5481 = vsyncadd (%p4466_p2), [#allocation9], 4294967264 }
 0x1c4   : > { %5483 = dma.done.wait (%p4466_p2), [#allocation12], 272  }
 0x1c5   : > { %5485 = vsyncadd (%p4466_p2), [#allocation12], 4294967024 }
 0x1c6   : > { %5487 = dma.done.wait (%p4466_p2), [#allocation15], 272  }
 0x1c7   : > { %5489 = vsyncadd (%p4466_p2), [#allocation15], 4294967024 }
 0x1c8   : > { %5491 = dma.done.wait (%p4466_p2), [#allocation18], 272  }
 0x1c9   : > { %5493 = vsyncadd (%p4466_p2), [#allocation18], 4294967024 }
 0x1ca   : > { %5495 = dma.done.wait (%p4466_p2), [#allocation21], 272  }
 0x1cb   : > { %5497 = vsyncadd (%p4466_p2), [#allocation21], 4294967024 }
 0x1cc   : > { %5499 = dma.done.wait (%p4466_p2), [#allocation24], 272  }
 0x1cd   : > { %5501 = vsyncadd (%p4466_p2), [#allocation24], 4294967024 }
 0x1ce   : > { %5503 = dma.done.wait (%p4466_p2), [#allocation27], 272  }
 0x1cf   : > { %5505 = vsyncadd (%p4466_p2), [#allocation27], 4294967024 }
 0x1d0   : > { %5507 = dma.done.wait (%p4466_p2), [#allocation30], 272  }
 0x1d1   : > { %5509 = vsyncadd (%p4466_p2), [#allocation30], 4294967024 }
 0x1d2   : > { %5511 = dma.done.wait (%p4466_p2), [#allocation33], 32  }
 0x1d3   : > { %5513 = vsyncadd (%p4466_p2), [#allocation33], 4294967264 }
 0x1d4   : > { %5515 = dma.done.wait (%p4466_p2), [#allocation36], 272  }
 0x1d5   : > { %5517 = vsyncadd (%p4466_p2), [#allocation36], 4294967024 }
 0x1d6   : > { %5519 = dma.done.wait (%p4466_p2), [#allocation39], 32  }
 0x1d7   : > { %5521 = vsyncadd (%p4466_p2), [#allocation39], 4294967264  ;;  %s6733_s26 = sld [smem:[#allocation59_spill]]  ;;  %p1688_p9 = scmp.lt.s32.totalorder %s5857_s7, 1  ;;  %vm1723_vm0 = vcmask 253952   ;;  %v5613_v2 = vmov 32.0  }
 0x1d8   : > { %4610 = vrcp.f32 %v5613_v2  ;;  %v4315_v14 = vld [vmem:[#allocation2 + $0x8] sm:$0xff]  ;;  %v4314_v15 = vld [vmem:[#allocation2] sm:$0xff]  ;;  %s6734_s1 = sld [smem:[#allocation68_spill]]  ;;  %s6257_s3 = sand.u32 1, %s5536_s0   ;;  %vm1774_vm5 = vcmask 261120   ;;  %vm1807_vm6 = vcmask 57344  }
 0x1d9   : > { %s6241_s15 = scalar_select %p1688_p9, %s5857_s7, 1  ;;  %1784 = vmatpush.bf16.msra.mxu0 %v4315_v14  ;;  %v1761_v32 = vld [vmem:[#allocation5] sm:$0x1]  ;;  %v5622_v48 = vmov 0   ;;  %vm1839_vm12 = vcmask 1040384   ;;  %vm1835_vm13 = vcmask 7168  }
 0x1da   : > { %s6735_s2 = sld [smem:[#allocation69_spill]]  ;;  %s6670_s14 = scalar_lea.vmem [#allocation42], %s6257_s3  ;;  %4604 = vset.pattern.permute.xlu1 %v5622_v48  ;;  %4605 = vset.pattern.permute.xlu0 %v5622_v48 }
 0x1db   : > { %s5614_s6 = smov 96   ;;  %s5615_s28 = smov 112   ;;  %4606 = vset.pattern.permute.xlu2 %v5622_v48 }
 0x1dc   : > { %s5616_s8 = smov 120   ;;  %s5617_s10 = smov 104  }
 0x1dd   : > { %s1690_s18 = scalar_lea.vmem %s6733_s26, %s6241_s15  ;;  %1785 = vmatpush.bf16.msra.mxu0 %v4314_v15  ;;  %s6672_s5 = smov 48  }
 0x1de   : > { %v6245_v0 = vld [vmem:[%s1690_s18] sm:$0x1]  ;;  %v4611_v3 = vpop.eup %4610  ;;  %s6736_s26 = sld [smem:[#allocation60_spill]]  ;;  %s6674_s18 = smov 64  }
 0x1df   : > { %v1724_v1 = vsel %vm1723_vm0, %v6245_v0, 0.0  ;;  %v1728_v4 = vmul.f32 32.0, %v4611_v3  ;;  %vm1732_vm1 = vweird.f32 %v4611_v3  ;;  %v1721_v26 = vld [vmem:[%s6734_s1] sm:$0x1]  ;;  %s6671_s1 = smov 40  }
 0x1e0   : > { %1725 = vadd.xlane.f32.xlu0 %v1724_v1  ;;  %v1722_v28 = vld [vmem:[%s6735_s2] sm:$0x1]  ;;  %s6673_s2 = smov 56  }
 0x1e1   : > { %v1729_v5 = vsub.f32 1.0, %v1728_v4 }
 0x1e3   : > { %v1730_v6 = vmul.f32 %v4611_v3, %v1729_v5  ;;  %v1841_v5 = vsel %vm1839_vm12, 65535, %v5622_v48 }
 0x1e5   : > { %v1731_v7 = vadd.f32 %v4611_v3, %v1730_v6 }
 0x1e7   : > { %v6249_v8 = vsel %vm1732_vm1, %v4611_v3, %v1731_v7 }
 0x253   : > { %v1726_v9 = vpop.xlane.xlu0 %1725 }
 0x254   : > { %v1734_v10 = vmul.f32 %v6249_v8, %v1726_v9 }
 0x256   : > { %v1735_v11 = vsub.f32 %v6245_v0, %v1734_v10 }
 0x258   : > { %v1736_v12 = vmul.f32 %v1735_v11, %v1735_v11 }
 0x25a   : > { %v1737_v13 = vsel %vm1723_vm0, %v1736_v12, 0.0 }
 0x25b   : > { %1738 = vadd.xlane.f32.xlu0 %v1737_v13 }
 0x2ce   : > { %v1739_v16 = vpop.xlane.xlu0 %1738 }
 0x2cf   : > { %v1740_v17 = vmul.f32 %v1739_v16, %v6249_v8 }
 0x2d1   : > { %v1741_v18 = vadd.f32 1e-06, %v1740_v17 }
 0x2d3   : > { %4612 = vrsqrt.f32 %v1741_v18  ;;  %vm1748_vm3 = vweird.f32 %v1741_v18 }
 0x2d9   : > { %v4613_v19 = vpop.eup %4612 }
 0x2da   : > { %v1743_v20 = vmul.f32 %v4613_v19, %v1741_v18  ;;  %vm1749_vm2 = vweird.f32 %v4613_v19 }
 0x2db   : > { %vm1750_vm4 = vmor %vm1748_vm3, %vm1749_vm2 }
 0x2dc   : > { %v1744_v21 = vmul.f32 %v4613_v19, %v1743_v20 }
 0x2de   : > { %v1745_v22 = vmul.f32 0.5, %v1744_v21 }
 0x2e0   : > { %v1746_v23 = vsub.f32 1.5, %v1745_v22 }
 0x2e2   : > { %v1747_v24 = vmul.f32 %v4613_v19, %v1746_v23 }
 0x2e4   : > { %v1751_v25 = vsel %vm1750_vm4, %v4613_v19, %v1747_v24 }
 0x2e5   : > { %v1752_v27 = vmul.f32 %v1751_v25, %v1735_v11 }
 0x2e7   : > { %v1753_v29 = vmul.f32 %v1752_v27, %v1721_v26 }
 0x2e9   : > { %v1754_v30 = vadd.f32 %v1753_v29, %v1722_v28 }
 0x2eb   : > { %v1756_v31 = vpack.c.bf16 %v1754_v30, %v1754_v30  ;;  %1755 = vst.msk [vmem:[%s6670_s14] sm:$0x1] %vm1723_vm0, %v1754_v30  ;;  %s1693_s14 = scalar_lea.vmem %s6736_s26, %s6241_s15  ;;  %s4313_s26 = sshll.u32 %s6241_s15, 4 }
 0x2ec   : > { %v6278_v49 = vld [vmem:[%s1693_s14] sm:$0x1]  ;;  %s6737_s14 = sld [smem:[#allocation61_spill]] }
 0x2ed   : > { %4202 = vmatmul.msk.bf16.vlgmr.msra.gmra.mxu0 %vm1774_vm5, %v1756_v31  ;;  %vm1792_vm7 = vcmp.gt.s32.totalorder %v6278_v49, 0 }
 0x36a   : > { %v1787_v33 = vpop.f32.mrf.mxu0 }
 0x36b   : > { %v1788_v34 = vadd.f32 %v1787_v33, %v1761_v32 }
 0x36d   : > { %v1799_v35 = vpack.c.bf16 %v1788_v34, %v1788_v34  ;;  %v1797_v38 = vmul.f32 0.35355338, %v1788_v34 }
 0x36f   : > { %v1801_v36 = vunpack.c.l.bf16 %v1799_v35  ;;  %v1798_v39 = vpack.c.bf16 %v1797_v38, %v1797_v38 }
 0x371   : > { %1803 = vrot.lane.b32.xlu1 %v1801_v36, %s5614_s6  ;;  %v1800_v40 = vunpack.c.l.bf16 %v1798_v39 }
 0x372   : > { %v1789_v37 = vpop.f32.mrf.mxu0 }
 0x3e3   : > { %v1804_v41 = vpop.permute.xlu1 %1803 }
 0x3e4   : > { %v1806_v42 = vmul.f32 %v1804_v41, %v1800_v40 }
 0x3e6   : > { %1949 = vrot.lane.b32.xlu2 %v1806_v42, %s5615_s28  ;;  %1860 = vrot.lane.b32.xlu1 %v1806_v42, %s5616_s8  ;;  %v1808_v43 = vsel %vm1807_vm6, %v1806_v42, 0.0 }
 0x3ee   : > { %2018 = vrot.lane.b32.xlu2 %v1806_v42, %s5617_s10 }
 0x410   : > { %1809 = vadd.xlane.f32.xlu1 %v1808_v43 }
 0x429   : > { %1976 = vrot.lane.b32.xlu1 %v1799_v35, %s6672_s5  ;;  %s4192_s5 = sshll.u32 %s6241_s15, 3 }
 0x440   : > { %v1950_v44 = vpop.permute.xlu2 %1949 }
 0x441   : > { %v1952_v45 = vsel %vm1807_vm6, %v1950_v44, 0.0 }
 0x442   : > { %1953 = vadd.xlane.f32.xlu2 %v1952_v45 }
 0x448   : > { %v2019_v54 = vpop.permute.xlu2 %2018 }
 0x449   : > { %v2021_v55 = vsel %vm1807_vm6, %v2019_v54, 0.0 }
 0x458   : > { %v1861_v46 = vpop.permute.xlu1 %1860 }
 0x459   : > { %v1863_v47 = vsel %vm1807_vm6, %v1861_v46, 0.0 }
 0x45a   : > { %1833 = vrot.lane.b32.xlu2 %v1799_v35, %s6674_s18  ;;  %1864 = vadd.xlane.f32.xlu0 %v1863_v47  ;;  %s5625_s18 = smov 72  }
 0x462   : > { %2045 = vrot.lane.b32.xlu2 %v1799_v35, %s6671_s1  ;;  %s1698_s1 = scalar_lea.vmem %s6737_s14, %s4313_s26  ;;  %s5623_s26 = smov 88  }
 0x46e   : > { %1887 = vrot.lane.b32.xlu0 %v1799_v35, %s6673_s2 }
 0x483   : > { %v1810_v50 = vpop.xlane.xlu1 %1809 }
 0x484   : > { %v1811_v51 = vsel %vm1792_vm7, -1e+18, %v1810_v50 }
 0x485   : > { %v1812_v52 = vsub.f32 %v1811_v51, %v1811_v51 }
 0x487   : > { %v1813_v53 = vmul.f32 1.442695, %v1812_v52 }
 0x489   : > { %4614 = vpow2.f32 %v1813_v53 }
 0x48f   : > { %v4615_v56 = vpop.eup %4614 }
 0x490   : > { %4616 = vrcp.f32 %v4615_v56  ;;  %v1827_v62 = vand.u32 2147483648, %v4615_v56  ;;  %vm1821_vm9 = vweird.f32 %v4615_v56  ;;  %v1825_v1 = vand.u32 2147483647, %v4615_v56 }
 0x492   : > { %v1828_v3 = vor.u32 1.1754944e-38, %v1827_v62  ;;  %vm1826_vm11 = vcmp.eq.f32.partialorder %v1825_v1, 8.507059e+37 }
 0x496   : > { %v4617_v57 = vpop.eup %4616 }
 0x497   : > { %v1817_v58 = vmul.f32 %v4617_v57, %v4615_v56  ;;  %vm1822_vm8 = vweird.f32 %v4617_v57 }
 0x498   : > { %2022 = vadd.xlane.f32.xlu0 %v2021_v55  ;;  %vm1823_vm10 = vmor %vm1821_vm9, %vm1822_vm8 }
 0x499   : > { %v1818_v59 = vsub.f32 1.0, %v1817_v58 }
 0x49b   : > { %v1819_v60 = vmul.f32 %v4617_v57, %v1818_v59  ;;  %v1977_v23 = vpop.permute.xlu1 %1976 }
 0x49c   : > { %v1982_v28 = vand.u32 %v1977_v23, %v1841_v5 }
 0x49d   : > { %v1820_v61 = vadd.f32 %v4617_v57, %v1819_v60 }
 0x49f   : > { %v1824_v2 = vsel %vm1823_vm10, %v4617_v57, %v1820_v61  ;;  %v1793_v57 = vld [vmem:[#allocation7] sm:$0xf]  ;;  %vm1913_vm10 = vcmask 1043456  }
 0x4a0   : > { %v1829_v4 = vsel %vm1826_vm11, %v1828_v3, %v1824_v2  ;;  %v1934_v59 = vsel %vm1913_vm10, %v1793_v57, 0 }
 0x4a1   : > { %v1830_v7 = vmul.f32 %v4615_v56, %v1829_v4 }
 0x4a3   : > { %v1831_v10 = vpack.c.bf16 %v1830_v7, %v1830_v7 }
 0x4b5   : > { %v1954_v63 = vpop.xlane.xlu2 %1953 }
 0x4b6   : > { %v1955_v11 = vsel %vm1792_vm7, -1e+18, %v1954_v63 }
 0x4b7   : > { %v1956_v14 = vsub.f32 %v1955_v11, %v1955_v11 }
 0x4b9   : > { %v1957_v15 = vmul.f32 1.442695, %v1956_v14 }
 0x4bb   : > { %4618 = vpow2.f32 %v1957_v15 }
 0x4bd   : > { %v1834_v6 = vpop.permute.xlu2 %1833 }
 0x4be   : > { %v1843_v9 = vand.u32 %v1841_v5, %v1834_v6 }
 0x4c0   : > { %1852 = vmatpush.bf16.msra.mxu1 %v1843_v9 }
 0x4c1   : > { %v4619_v20 = vpop.eup %4618 }
 0x4c2   : > { %v1971_v43 = vand.u32 2147483648, %v4619_v20  ;;  %vm1965_vm4 = vweird.f32 %v4619_v20  ;;  %v1969_v44 = vand.u32 2147483647, %v4619_v20 }
 0x4c3   : > { %4203 = vmatmul.msk.bf16.vlgmr.msra.gmra.mxu1 %vm1835_vm13, %v1831_v10  ;;  %v1794_v10 = vld [vmem:[#allocation7 + $0x4] sm:$0xf] }
 0x4c4   : > { %v1972_v46 = vor.u32 1.1754944e-38, %v1971_v43  ;;  %vm1970_vm9 = vcmp.eq.f32.partialorder %v1969_v44, 8.507059e+37  ;;  %1943 = vmatpush.bf16.msrb.mxu1 %v1934_v59  ;;  %v1915_v11 = vsel %vm1913_vm10, %v1794_v10, 0 }
 0x4c5   : > { %v2046_v12 = vpop.permute.xlu2 %2045  ;;  %1924 = vmatpush.bf16.msra.mxu3 %v1915_v11 }
 0x4c6   : > { %v2051_v13 = vand.u32 %v2046_v12, %v1841_v5  ;;  %v1795_v12 = vld [vmem:[#allocation7 + $0x8] sm:$0xf] }
 0x4c8   : > { %2060 = vmatpush.bf16.msrb.mxu0 %v2051_v13  ;;  %v2002_v13 = vsel %vm1913_vm10, %v1795_v12, 0  ;;  %v2121_v12 = vld [vmem:[#allocation14] sm:$0x1] }
 0x4c9   : > { %2011 = vmatpush.bf16.msrb.mxu3 %v2002_v13 }
 0x4cd   : > { %v1865_v16 = vpop.xlane.xlu0 %1864 }
 0x4ce   : > { %v1866_v17 = vsel %vm1792_vm7, -1e+18, %v1865_v16 }
 0x4cf   : > { %v1867_v18 = vsub.f32 %v1866_v17, %v1866_v17 }
 0x4d1   : > { %v1868_v19 = vmul.f32 1.442695, %v1867_v18 }
 0x4d3   : > { %4620 = vpow2.f32 %v1868_v19  ;;  %v1796_v19 = vld [vmem:[#allocation7 + $0xc] sm:$0xf] }
 0x4d4   : > { %4622 = vrcp.f32 %v4619_v20 }
 0x4d9   : > { %v4621_v21 = vpop.eup %4620 }
 0x4da   : > { %4624 = vrcp.f32 %v4621_v21  ;;  %v4623_v22 = vpop.eup %4622  ;;  %v1882_v31 = vand.u32 2147483648, %v4621_v21  ;;  %v1880_v33 = vand.u32 2147483647, %v4621_v21  ;;  %vm1876_vm15 = vweird.f32 %v4621_v21 }
 0x4db   : > { %v1961_v30 = vmul.f32 %v4623_v22, %v4619_v20  ;;  %vm1966_vm3 = vweird.f32 %v4623_v22 }
 0x4dc   : > { %v1883_v36 = vor.u32 1.1754944e-38, %v1882_v31  ;;  %vm1881_vm2 = vcmp.eq.f32.partialorder %v1880_v33, 8.507059e+37  ;;  %vm1967_vm8 = vmor %vm1965_vm4, %vm1966_vm3  ;;  %vm2219_vm4 = vcmask 122880  }
 0x4dd   : > { %v1962_v35 = vsub.f32 1.0, %v1961_v30 }
 0x4df   : > { %v1963_v40 = vmul.f32 %v4623_v22, %v1962_v35 }
 0x4e0   : > { %v4625_v24 = vpop.eup %4624  ;;  %v1888_v25 = vpop.permute.xlu0 %1887 }
 0x4e1   : > { %v1893_v26 = vand.u32 %v1888_v25, %v1841_v5  ;;  %v1872_v27 = vmul.f32 %v4625_v24, %v4621_v21  ;;  %vm1877_vm14 = vweird.f32 %v4625_v24  ;;  %v1964_v42 = vadd.f32 %v4623_v22, %v1963_v40 }
 0x4e2   : > { %vm1878_vm1 = vmor %vm1876_vm15, %vm1877_vm14  ;;  %vm1909_vm15 = vcmask 64512  }
 0x4e3   : > { %1902 = vmatpush.bf16.msra.mxu2 %v1893_v26  ;;  %v1873_v29 = vsub.f32 1.0, %v1872_v27  ;;  %v1968_v45 = vsel %vm1967_vm8, %v4623_v22, %v1964_v42 }
 0x4e4   : > { %v1973_v47 = vsel %vm1970_vm9, %v1972_v46, %v1968_v45  ;;  %v4319_v45 = vld [vmem:[#allocation16 + $0x8] sm:$0xff] }
 0x4e5   : > { %v1874_v32 = vmul.f32 %v4625_v24, %v1873_v29  ;;  %v1974_v48 = vmul.f32 %v4619_v20, %v1973_v47  ;;  %v2071_v20 = vsel %vm1913_vm10, %v1796_v19, 0  ;;  %v2150_v46 = vld [vmem:[%s1698_s1] sm:$0xff]  ;;  %v2151_v47 = vld [vmem:[%s1698_s1 + $0x8] sm:$0xff]  ;;  %s6738_s1 = sld [smem:[#allocation62_spill]] }
 0x4e6   : > { %2080 = vmatpush.bf16.msra.mxu1 %v2071_v20 }
 0x4e7   : > { %1991 = vmatpush.bf16.msrb.mxu2 %v1982_v28  ;;  %v1875_v34 = vadd.f32 %v4625_v24, %v1874_v32  ;;  %v1975_v50 = vpack.c.bf16 %v1974_v48, %v1974_v48  ;;  %v2152_v48 = vpack.c.bf16 %v2151_v47, %v2150_v46 }
 0x4e9   : > { %v1879_v37 = vsel %vm1878_vm1, %v4625_v24, %v1875_v34  ;;  %v2087_v34 = vld [vmem:[#allocation8] sm:$0x1] }
 0x4ea   : > { %v1884_v38 = vsel %vm1881_vm2, %v1883_v36, %v1879_v37 }
 0x4eb   : > { %v1885_v39 = vmul.f32 %v4621_v21, %v1884_v38  ;;  %s1701_s14 = scalar_lea.vmem %s6738_s1, %s6241_s15  ;;  %s5624_s1 = smov 80  }
 0x4ed   : > { %v1886_v41 = vpack.c.bf16 %v1885_v39, %v1885_v39 }
 0x4ef   : > { %4204 = vmatmul.msk.bf16.vlgmr.msra.gmra.mxu2 %vm1835_vm13, %v1886_v41 }
 0x4ff   : > { %4207 = vmatmul.msk.bf16.vlgmr.msrb.gmra.mxu2 %vm1835_vm13, %v1975_v50  ;;  %v4317_v50 = vld [vmem:[#allocation13 + $0x8] sm:$0xff] }
 0x500   : > { %2143 = vmatpush.bf16.msra.mxu2 %v4317_v50 }
 0x50b   : > { %v2023_v51 = vpop.xlane.xlu0 %2022 }
 0x50c   : > { %v2024_v52 = vsel %vm1792_vm7, -1e+18, %v2023_v51  ;;  %v4316_v51 = vld [vmem:[#allocation13] sm:$0xff] }
 0x50d   : > { %v2025_v53 = vsub.f32 %v2024_v52, %v2024_v52  ;;  %2144 = vmatpush.bf16.msra.mxu2 %v4316_v51 }
 0x50f   : > { %v2026_v54 = vmul.f32 1.442695, %v2025_v53 }
 0x511   : > { %4626 = vpow2.f32 %v2026_v54 }
 0x517   : > { %v4627_v55 = vpop.eup %4626 }
 0x518   : > { %4628 = vrcp.f32 %v4627_v55  ;;  %v2040_v61 = vand.u32 2147483648, %v4627_v55  ;;  %v2038_v63 = vand.u32 2147483647, %v4627_v55  ;;  %vm2034_vm12 = vweird.f32 %v4627_v55 }
 0x51a   : > { %v2041_v49 = vor.u32 1.1754944e-38, %v2040_v61  ;;  %vm2039_vm14 = vcmp.eq.f32.partialorder %v2038_v63, 8.507059e+37  ;;  %v2090_v61 = vld [vmem:[#allocation10] sm:$0x1] }
 0x51e   : > { %v4629_v56 = vpop.eup %4628 }
 0x51f   : > { %v2030_v58 = vmul.f32 %v4629_v56, %v4627_v55  ;;  %vm2035_vm11 = vweird.f32 %v4629_v56 }
 0x520   : > { %vm2036_vm7 = vmor %vm2034_vm12, %vm2035_vm11 }
 0x521   : > { %v2031_v60 = vsub.f32 1.0, %v2030_v58 }
 0x523   : > { %v2032_v62 = vmul.f32 %v4629_v56, %v2031_v60 }
 0x525   : > { %v2033_v1 = vadd.f32 %v4629_v56, %v2032_v62 }
 0x527   : > { %v2037_v2 = vsel %vm2036_vm7, %v4629_v56, %v2033_v1  ;;  %v2091_v1 = vld [vmem:[#allocation11] sm:$0x1]  ;;  %vm2249_vm7 = vcmask 130048  }
 0x528   : > { %v2042_v3 = vsel %vm2039_vm14, %v2041_v49, %v2037_v2 }
 0x529   : > { %v2043_v4 = vmul.f32 %v4627_v55, %v2042_v3 }
 0x52b   : > { %v2044_v5 = vpack.c.bf16 %v2043_v4, %v2043_v4 }
 0x52d   : > { %4209 = vmatmul.msk.bf16.vlgmr.msrb.gmra.mxu0 %vm1835_vm13, %v2044_v5  ;;  %v4607_v5 = vld [vmem:[#allocation17] ss:$0 sm:$0xff] }
 0x540   : > { %v1854_v6 = vpop.f32.mrf.mxu1 }
 0x541   : > { %v1858_v7 = vpack.c.bf16 %v1854_v6, %v1854_v6 }
 0x543   : > { %4206 = vmatmul.msk.bf16.vlgmr.msrb.gmra.mxu1 %vm1909_vm15, %v1858_v7 }
 0x548   : > { %v1856_v9 = vpop.f32.mrf.mxu1 }
 0x572   : > { %v1904_v14 = vpop.f32.mrf.mxu2 }
 0x573   : > { %v1908_v15 = vpack.c.bf16 %v1904_v14, %v1904_v14 }
 0x575   : > { %4205 = vmatmul.msk.bf16.vlgmr.msra.gmra.mxu3 %vm1909_vm15, %v1908_v15 }
 0x576   : > { %2182 = vmatpush.bf16.msra.mxu3 %v4319_v45 }
 0x57a   : > { %v1906_v16 = vpop.f32.mrf.mxu2 }
 0x582   : > { %v1993_v17 = vpop.f32.mrf.mxu2 }
 0x583   : > { %v1997_v18 = vpack.c.bf16 %v1993_v17, %v1993_v17 }
 0x585   : > { %4208 = vmatmul.msk.bf16.vlgmr.msrb.gmra.mxu3 %vm1909_vm15, %v1997_v18 }
 0x58a   : > { %v1995_v21 = vpop.f32.mrf.mxu2 }
 0x58b   : > { %v6335_v21 = vld [vmem:[%s1701_s14] sm:$0x1]  ;;  %s6739_s14 = sld [smem:[#allocation63_spill]] }
 0x58c   : > { %vm2191_vm3 = vcmp.gt.s32.totalorder %v6335_v21, 0 }
 0x591   : > { %s1705_s2 = scalar_lea.vmem %s6739_s14, %s4192_s5 }
 0x5aa   : > { %v2062_v22 = vpop.f32.mrf.mxu0 }
 0x5ab   : > { %v2066_v23 = vpack.c.bf16 %v2062_v22, %v2062_v22 }
 0x5ad   : > { %4210 = vmatmul.msk.bf16.vlgmr.msra.gmra.mxu1 %vm1909_vm15, %v2066_v23 }
 0x5b2   : > { %v2064_v24 = vpop.f32.mrf.mxu0 }
 0x5c0   : > { %v1945_v25 = vpop.f32.mrf.mxu1 }
 0x5c8   : > { %v1947_v26 = vpop.f32.mrf.mxu1 }
 0x5f8   : > { %v1926_v27 = vpop.f32.mrf.mxu3 }
 0x5f9   : > { %v1946_v31 = vadd.f32 %v1945_v25, %v1926_v27 }
 0x600   : > { %v1928_v28 = vpop.f32.mrf.mxu3 }
 0x608   : > { %v2013_v29 = vpop.f32.mrf.mxu3 }
 0x609   : > { %v2017_v32 = vadd.f32 %v2013_v29, %v1946_v31 }
 0x610   : > { %v2015_v30 = vpop.f32.mrf.mxu3 }
 0x62a   : > { %v2082_v33 = vpop.f32.mrf.mxu1 }
 0x62b   : > { %v2086_v35 = vadd.f32 %v2082_v33, %v2017_v32 }
 0x62d   : > { %v2088_v36 = vadd.f32 %v2087_v34, %v2086_v35 }
 0x62f   : > { %v6303_v37 = vadd.f32 %v2088_v36, %v6245_v0  ;;  %v4318_v0 = vld [vmem:[#allocation16] sm:$0xff] }
 0x630   : > { %2183 = vmatpush.bf16.msra.mxu3 %v4318_v0 }
 0x631   : > { %v2092_v38 = vsel %vm1723_vm0, %v6303_v37, 0.0 }
 0x632   : > { %v2084_v39 = vpop.f32.mrf.mxu1  ;;  %2093 = vadd.xlane.f32.xlu1 %v2092_v38 }
 0x633   : > { %4228 = vmatmul.msk.bf16.vlgmr.msra.gmra.mxu3 %vm1774_vm5, %v2152_v48 }
 0x6a5   : > { %v2094_v40 = vpop.xlane.xlu1 %2093 }
 0x6a6   : > { %v2095_v41 = vmul.f32 %v2094_v40, %v6249_v8 }
 0x6a8   : > { %v2096_v42 = vsub.f32 %v6303_v37, %v2095_v41 }
 0x6aa   : > { %v2097_v43 = vmul.f32 %v2096_v42, %v2096_v42 }
 0x6ac   : > { %v2098_v44 = vsel %vm1723_vm0, %v2097_v43, 0.0 }
 0x6ad   : > { %2099 = vadd.xlane.f32.xlu0 %v2098_v44  ;;  %v2192_v44 = vld [vmem:[#allocation25] sm:$0xf] }
 0x6ae   : > { %v2360_v45 = vsel %vm1913_vm10, %v2192_v44, 0  ;;  %v2193_v44 = vld [vmem:[#allocation25 + $0x4] sm:$0xf] }
 0x6b6   : > { %v2185_v4 = vpop.f32.mrf.mxu3 }
 0x6b7   : > { %v2186_v6 = vadd.f32 %v4607_v5, %v2185_v4 }
 0x6be   : > { %v2187_v7 = vpop.f32.mrf.mxu3 }
 0x6bf   : > { %v2188_v9 = vadd.f32 %v4607_v5, %v2187_v7 }
 0x6c1   : > { %v6315_v10 = vpack.c.bf16 %v2188_v9, %v2186_v6 }
 0x6c3   : > { %2270 = vrot.lane.b32.xlu0 %v6315_v10, %s5616_s8  ;;  %v2203_v11 = vsel %vm1909_vm15, %v6315_v10, 0 }
 0x6c4   : > { %2212 = vmatpush.bf16.xpose.msra.mxu0 %v2203_v11 }
 0x720   : > { %v2100_v52 = vpop.xlane.xlu0 %2099 }
 0x721   : > { %v2101_v53 = vmul.f32 %v2100_v52, %v6249_v8 }
 0x723   : > { %v2102_v54 = vadd.f32 1e-06, %v2101_v53 }
 0x725   : > { %4630 = vrsqrt.f32 %v2102_v54  ;;  %vm2109_vm1 = vweird.f32 %v2102_v54 }
 0x72b   : > { %v4631_v55 = vpop.eup %4630 }
 0x72c   : > { %v2104_v56 = vmul.f32 %v4631_v55, %v2102_v54  ;;  %vm2110_vm13 = vweird.f32 %v4631_v55 }
 0x72d   : > { %vm2111_vm2 = vmor %vm2109_vm1, %vm2110_vm13 }
 0x72e   : > { %v2105_v57 = vmul.f32 %v4631_v55, %v2104_v56 }
 0x730   : > { %v2106_v58 = vmul.f32 0.5, %v2105_v57 }
 0x732   : > { %v2107_v59 = vsub.f32 1.5, %v2106_v58 }
 0x734   : > { %v2108_v60 = vmul.f32 %v4631_v55, %v2107_v59 }
 0x735   : > { %v2271_v18 = vpop.permute.xlu0 %2270 }
 0x736   : > { %v2112_v62 = vsel %vm2111_vm2, %v4631_v55, %v2108_v60  ;;  %v2276_v19 = vsel %vm1909_vm15, %v2271_v18, 0 }
 0x737   : > { %v2113_v63 = vmul.f32 %v2112_v62, %v2096_v42  ;;  %2285 = vmatpush.bf16.xpose.msrb.mxu2 %v2276_v19 }
 0x739   : > { %v2114_v49 = vmul.f32 %v2113_v63, %v2090_v61 }
 0x73b   : > { %v2115_v2 = vadd.f32 %v2114_v49, %v2091_v1 }
 0x73d   : > { %v2116_v3 = vpack.c.bf16 %v2115_v2, %v2115_v2 }
 0x73f   : > { %4219 = vmatmul.msk.bf16.vlgmr.msra.gmra.mxu2 %vm1774_vm5, %v2116_v3 }
 0x7c2   : > { %v2146_v13 = vpop.f32.mrf.mxu2 }
 0x7c3   : > { %v2147_v14 = vadd.f32 %v2146_v13, %v2121_v12 }
 0x7c5   : > { %v2196_v15 = vmul.f32 0.35355338, %v2147_v14 }
 0x7c7   : > { %v6321_v16 = vpack.c.bf16 %v2196_v15, %v2196_v15 }
 0x7c9   : > { %2375 = vrot.lane.b32.xlu1 %v6321_v16, %s5615_s28  ;;  %2268 = vrot.lane.b32.xlu0 %v6321_v16, %s5616_s8 }
 0x7ca   : > { %4229 = vmatmul.msk.bf16.vlgmr.msra.gmra.mxu0 %vm1909_vm15, %v6321_v16  ;;  %v2148_v17 = vpop.f32.mrf.mxu2 }
 0x7d1   : > { %2377 = vrot.lane.b32.xlu0 %v6315_v10, %s5615_s28 }
 0x83b   : > { %v2269_v20 = vpop.permute.xlu0 %2268  ;;  %v2376_v27 = vpop.permute.xlu1 %2375 }
 0x83c   : > { %4231 = vmatmul.msk.bf16.vlgmr.msrb.gmra.mxu2 %vm1909_vm15, %v2269_v20 }
 0x843   : > { %v2378_v22 = vpop.permute.xlu0 %2377 }
 0x844   : > { %v2383_v23 = vsel %vm1909_vm15, %v2378_v22, 0 }
 0x845   : > { %2392 = vmatpush.bf16.xpose.msra.mxu2 %v2383_v23 }
 0x847   : > { %v2214_v24 = vpop.f32.mrf.mxu0 }
 0x848   : > { %v2218_v25 = vsel %vm2191_vm3, -1e+18, %v2214_v24 }
 0x849   : > { %v2220_v26 = vsel %vm2219_vm4, %v2218_v25, -inf }
 0x84a   : > { %2221 = vmax.xlane.f32.xlu2 %v2220_v26 }
 0x84c   : > { %4235 = vmatmul.msk.bf16.vlgmr.msra.gmra.mxu2 %vm1909_vm15, %v2376_v27 }
 0x84f   : > { %v2216_v28 = vpop.f32.mrf.mxu0 }
 0x862   : > { %2246 = vrot.lane.b32.xlu2 %v6315_v10, %s5614_s6 }
 0x8bd   : > { %v2222_v29 = vpop.xlane.xlu2 %2221 }
 0x8be   : > { %v2223_v30 = vsub.f32 %v2218_v25, %v2222_v29 }
 0x8bf   : > { %v2287_v31 = vpop.f32.mrf.mxu2 }
 0x8c0   : > { %v2224_v32 = vmul.f32 1.442695, %v2223_v30  ;;  %v2291_v33 = vsel %vm2191_vm3, -1e+18, %v2287_v31 }
 0x8c1   : > { %v2292_v34 = vsel %vm2219_vm4, %v2291_v33, -inf }
 0x8c2   : > { %4632 = vpow2.f32 %v2224_v32  ;;  %2293 = vmax.xlane.f32.xlu1 %v2292_v34 }
 0x8c5   : > { %v2247_v35 = vpop.permute.xlu2 %2246 }
 0x8c6   : > { %2260 = vmatpush.bf16.msrb.mxu1 %v2247_v35 }
 0x8c7   : > { %v2289_v36 = vpop.f32.mrf.mxu2 }
 0x8c8   : > { %v4633_v38 = vpop.eup %4632 }
 0x8c9   : > { %v2226_v39 = vsel %vm2219_vm4, %v4633_v38, 0.0 }
 0x8ca   : > { %2227 = vadd.xlane.f32.xlu0 %v2226_v39  ;;  %2369 = vmatpush.bf16.msra.mxu1 %v2360_v45  ;;  %v2341_v45 = vsel %vm1913_vm10, %v2193_v44, 0 }
 0x8cb   : > { %2350 = vmatpush.bf16.msrb.mxu0 %v2341_v45 }
 0x8cf   : > { %v2394_v40 = vpop.f32.mrf.mxu2 }
 0x8d0   : > { %v2398_v41 = vsel %vm2191_vm3, -1e+18, %v2394_v40 }
 0x8d1   : > { %v2399_v42 = vsel %vm2219_vm4, %v2398_v41, -inf }
 0x8d2   : > { %2400 = vmax.xlane.f32.xlu2 %v2399_v42 }
 0x8d7   : > { %v2396_v43 = vpop.f32.mrf.mxu2 }
 0x8de   : > { %2466 = vrot.lane.b32.xlu0 %v6315_v10, %s5617_s10 }
 0x8e6   : > { %2464 = vrot.lane.b32.xlu0 %v6321_v16, %s5617_s10 }
 0x8ee   : > { %2317 = vrot.lane.b32.xlu0 %v6315_v10, %s5623_s26 }
 0x935   : > { %v2294_v0 = vpop.xlane.xlu1 %2293 }
 0x936   : > { %v2295_v46 = vsub.f32 %v2291_v33, %v2294_v0  ;;  %v2194_v0 = vld [vmem:[#allocation25 + $0x8] sm:$0xf] }
 0x938   : > { %v2296_v47 = vmul.f32 1.442695, %v2295_v46  ;;  %v2448_v46 = vsel %vm1913_vm10, %v2194_v0, 0 }
 0x939   : > { %2457 = vmatpush.bf16.msra.mxu0 %v2448_v46 }
 0x93a   : > { %4634 = vpow2.f32 %v2296_v47 }
 0x93d   : > { %v2228_v48 = vpop.xlane.xlu0 %2227 }
 0x93e   : > { %4636 = vrcp.f32 %v2228_v48  ;;  %v2240_v57 = vand.u32 2147483648, %v2228_v48  ;;  %v2238_v60 = vand.u32 2147483647, %v2228_v48  ;;  %vm2234_vm9 = vweird.f32 %v2228_v48 }
 0x940   : > { %v4635_v50 = vpop.eup %4634  ;;  %v2241_v62 = vor.u32 1.1754944e-38, %v2240_v57  ;;  %vm2239_vm12 = vcmp.eq.f32.partialorder %v2238_v60, 8.507059e+37 }
 0x941   : > { %v2298_v51 = vsel %vm2219_vm4, %v4635_v50, 0.0 }
 0x942   : > { %2299 = vadd.xlane.f32.xlu1 %v2298_v51 }
 0x944   : > { %v4637_v52 = vpop.eup %4636 }
 0x945   : > { %v2230_v53 = vmul.f32 %v4637_v52, %v2228_v48  ;;  %v2401_v54 = vpop.xlane.xlu2 %2400  ;;  %vm2235_vm8 = vweird.f32 %v4637_v52  ;;  %v4321_v48 = vld [vmem:[#allocation19 + $0x8] sm:$0xff] }
 0x946   : > { %v2402_v55 = vsub.f32 %v2398_v41, %v2401_v54  ;;  %vm2236_vm11 = vmor %vm2234_vm9, %vm2235_vm8 }
 0x947   : > { %v2231_v56 = vsub.f32 1.0, %v2230_v53 }
 0x948   : > { %v2403_v58 = vmul.f32 1.442695, %v2402_v55 }
 0x949   : > { %v2232_v59 = vmul.f32 %v4637_v52, %v2231_v56 }
 0x94a   : > { %4638 = vpow2.f32 %v2403_v58 }
 0x94b   : > { %v2233_v61 = vadd.f32 %v4637_v52, %v2232_v59 }
 0x94d   : > { %v2237_v63 = vsel %vm2236_vm11, %v4637_v52, %v2233_v61  ;;  %v4320_v52 = vld [vmem:[#allocation19] sm:$0xff] }
 0x94e   : > { %v2242_v1 = vsel %vm2239_vm12, %v2241_v62, %v2237_v63  ;;  %v2556_v62 = vld [vmem:[%s1705_s2] sm:$0xff]  ;;  %s6740_s2 = sld [smem:[#allocation64_spill]] }
 0x94f   : > { %v2243_v49 = vmul.f32 %v4633_v38, %v2242_v1  ;;  %v2557_v63 = vpack.c.bf16 %v2556_v62, %v2556_v62 }
 0x950   : > { %v4639_v2 = vpop.eup %4638  ;;  %v2467_v3 = vpop.permute.xlu0 %2466 }
 0x951   : > { %v2472_v4 = vsel %vm1909_vm15, %v2467_v3, 0  ;;  %v2244_v5 = vpack.c.bf16 %v2243_v49, %v2243_v49  ;;  %v2405_v6 = vsel %vm2219_vm4, %v4639_v2, 0.0 }
 0x952   : > { %2406 = vadd.xlane.f32.xlu2 %v2405_v6 }
 0x953   : > { %4230 = vmatmul.msk.bf16.vlgmr.msrb.gmra.mxu1 %vm2249_vm7, %v2244_v5 }
 0x954   : > { %2481 = vmatpush.bf16.xpose.msrb.mxu1 %v2472_v4  ;;  %s1708_s14 = scalar_lea.vmem %s6740_s2, %s6241_s15  ;;  %s6741_s2 = smov 64  }
 0x958   : > { %v2465_v7 = vpop.permute.xlu0 %2464 }
 0x95b   : > { %2424 = vrot.lane.b32.xlu1 %v6315_v10, %s5624_s1 }
 0x960   : > { %v2318_v9 = vpop.permute.xlu0 %2317 }
 0x961   : > { %2330 = vmatpush.bf16.msrb.mxu3 %v2318_v9 }
 0x9b5   : > { %v2300_v11 = vpop.xlane.xlu1 %2299 }
 0x9b6   : > { %4640 = vrcp.f32 %v2300_v11  ;;  %v2312_v15 = vand.u32 2147483648, %v2300_v11  ;;  %v2310_v18 = vand.u32 2147483647, %v2300_v11  ;;  %vm2306_vm13 = vweird.f32 %v2300_v11 }
 0x9b8   : > { %v2313_v20 = vor.u32 1.1754944e-38, %v2312_v15  ;;  %vm2311_vm2 = vcmp.eq.f32.partialorder %v2310_v18, 8.507059e+37 }
 0x9bc   : > { %v4641_v12 = vpop.eup %4640 }
 0x9bd   : > { %v2302_v13 = vmul.f32 %v4641_v12, %v2300_v11  ;;  %vm2307_vm14 = vweird.f32 %v4641_v12 }
 0x9be   : > { %vm2308_vm1 = vmor %vm2306_vm13, %vm2307_vm14 }
 0x9bf   : > { %v2303_v14 = vsub.f32 1.0, %v2302_v13  ;;  %v4608_v13 = vld [vmem:[#allocation20] ss:$0 sm:$0xff] }
 0x9c1   : > { %v2304_v17 = vmul.f32 %v4641_v12, %v2303_v14 }
 0x9c3   : > { %v2305_v19 = vadd.f32 %v4641_v12, %v2304_v17 }
 0x9c5   : > { %v2309_v22 = vsel %vm2308_vm1, %v4641_v12, %v2305_v19  ;;  %v2407_v23 = vpop.xlane.xlu2 %2406 }
 0x9c6   : > { %v2314_v24 = vsel %vm2311_vm2, %v2313_v20, %v2309_v22  ;;  %4642 = vrcp.f32 %v2407_v23  ;;  %v2419_v31 = vand.u32 2147483648, %v2407_v23  ;;  %v2417_v34 = vand.u32 2147483647, %v2407_v23 }
 0x9c7   : > { %v2315_v25 = vmul.f32 %v4635_v50, %v2314_v24  ;;  %vm2413_vm9 = vweird.f32 %v2407_v23 }
 0x9c8   : > { %v2420_v38 = vor.u32 1.1754944e-38, %v2419_v31  ;;  %vm2418_vm12 = vcmp.eq.f32.partialorder %v2417_v34, 8.507059e+37 }
 0x9c9   : > { %v2316_v26 = vpack.c.bf16 %v2315_v25, %v2315_v25 }
 0x9cb   : > { %4232 = vmatmul.msk.bf16.vlgmr.msrb.gmra.mxu3 %vm2249_vm7, %v2316_v26 }
 0x9cc   : > { %v4643_v27 = vpop.eup %4642 }
 0x9cd   : > { %v2409_v28 = vmul.f32 %v4643_v27, %v2407_v23  ;;  %v2425_v29 = vpop.permute.xlu1 %2424  ;;  %vm2414_vm8 = vweird.f32 %v4643_v27 }
 0x9ce   : > { %2437 = vmatpush.bf16.msra.mxu3 %v2425_v29  ;;  %vm2415_vm11 = vmor %vm2413_vm9, %vm2414_vm8 }
 0x9cf   : > { %v2410_v30 = vsub.f32 1.0, %v2409_v28 }
 0x9d0   : > { %v2262_v32 = vpop.f32.mrf.mxu1 }
 0x9d1   : > { %v2411_v33 = vmul.f32 %v4643_v27, %v2410_v30  ;;  %v2266_v35 = vpack.c.bf16 %v2262_v32, %v2262_v32 }
 0x9d3   : > { %v2412_v36 = vadd.f32 %v4643_v27, %v2411_v33  ;;  %4234 = vmatmul.msk.bf16.vlgmr.msra.gmra.mxu1 %vm1909_vm15, %v2266_v35 }
 0x9d5   : > { %v2416_v39 = vsel %vm2415_vm11, %v4643_v27, %v2412_v36 }
 0x9d6   : > { %v2421_v40 = vsel %vm2418_vm12, %v2420_v38, %v2416_v39  ;;  %v2195_v38 = vld [vmem:[#allocation25 + $0xc] sm:$0xf] }
 0x9d7   : > { %v2422_v41 = vmul.f32 %v4639_v2, %v2421_v40  ;;  %v2537_v39 = vsel %vm1913_vm10, %v2195_v38, 0 }
 0x9d8   : > { %v2264_v42 = vpop.f32.mrf.mxu1  ;;  %2546 = vmatpush.bf16.msrb.mxu3 %v2537_v39 }
 0x9d9   : > { %v2423_v43 = vpack.c.bf16 %v2422_v41, %v2422_v41 }
 0x9db   : > { %4236 = vmatmul.msk.bf16.vlgmr.msra.gmra.mxu3 %vm2249_vm7, %v2423_v43 }
 0x9e3   : > { %4238 = vmatmul.msk.bf16.vlgmr.msrb.gmra.mxu1 %vm1909_vm15, %v2465_v7 }
 0xa4e   : > { %v2332_v47 = vpop.f32.mrf.mxu3 }
 0xa4f   : > { %v2336_v50 = vpack.c.bf16 %v2332_v47, %v2332_v47 }
 0xa50   : > { %v2371_v51 = vpop.f32.mrf.mxu1 }
 0xa51   : > { %4233 = vmatmul.msk.bf16.vlgmr.msrb.gmra.mxu0 %vm1909_vm15, %v2336_v50 }
 0xa52   : > { %2587 = vmatpush.bf16.msrb.mxu0 %v4321_v48 }
 0xa56   : > { %v2334_v53 = vpop.f32.mrf.mxu3  ;;  %2588 = vmatpush.bf16.msrb.mxu0 %v4320_v52 }
 0xa58   : > { %v2373_v54 = vpop.f32.mrf.mxu1 }
 0xa5e   : > { %v2439_v55 = vpop.f32.mrf.mxu3 }
 0xa5f   : > { %v2443_v56 = vpack.c.bf16 %v2439_v55, %v2439_v55 }
 0xa60   : > { %v2483_v57 = vpop.f32.mrf.mxu1 }
 0xa61   : > { %v2487_v58 = vsel %vm2191_vm3, -1e+18, %v2483_v57  ;;  %4237 = vmatmul.msk.bf16.vlgmr.msra.gmra.mxu0 %vm1909_vm15, %v2443_v56 }
 0xa62   : > { %v2488_v59 = vsel %vm2219_vm4, %v2487_v58, -inf }
 0xa63   : > { %2489 = vmax.xlane.f32.xlu2 %v2488_v59 }
 0xa66   : > { %v2441_v60 = vpop.f32.mrf.mxu3 }
 0xa68   : > { %v2485_v61 = vpop.f32.mrf.mxu1 }
 0xa71   : > { %4249 = vmatmul.msk.bf16.vlgmr.msrb.gmra.mxu0 %vm1774_vm5, %v2557_v63 }
 0xa7b   : > { %2513 = vrot.lane.b32.xlu2 %v6315_v10, %s5625_s18 }
 0xace   : > { %v2352_v21 = vpop.f32.mrf.mxu0 }
 0xacf   : > { %v2372_v4 = vadd.f32 %v2371_v51, %v2352_v21  ;;  %v6410_v51 = vld [vmem:[%s1708_s14] sm:$0x1]  ;;  %s6742_s14 = sld [smem:[#allocation65_spill]] }
 0xad6   : > { %v2490_v1 = vpop.xlane.xlu2 %2489  ;;  %v2354_v49 = vpop.f32.mrf.mxu0 }
 0xad7   : > { %v2491_v2 = vsub.f32 %v2487_v58, %v2490_v1 }
 0xad9   : > { %v2492_v3 = vmul.f32 1.442695, %v2491_v2 }
 0xadb   : > { %4644 = vpow2.f32 %v2492_v3 }
 0xade   : > { %v2514_v5 = vpop.permute.xlu2 %2513  ;;  %v2459_v6 = vpop.f32.mrf.mxu0 }
 0xadf   : > { %v2463_v7 = vadd.f32 %v2459_v6, %v2372_v4  ;;  %2526 = vmatpush.bf16.msrb.mxu2 %v2514_v5 }
 0xae1   : > { %v4645_v9 = vpop.eup %4644 }
 0xae2   : > { %v2494_v11 = vsel %vm2219_vm4, %v4645_v9, 0.0 }
 0xae3   : > { %2495 = vadd.xlane.f32.xlu0 %v2494_v11 }
 0xae6   : > { %v2461_v12 = vpop.f32.mrf.mxu0 }
 0xaee   : > { %v2590_v14 = vpop.f32.mrf.mxu0 }
 0xaef   : > { %v2591_v15 = vadd.f32 %v4608_v13, %v2590_v14 }
 0xaf1   : > { %v6384_v10 = vpack.c.bf16 %v2591_v15, %v2591_v15 }
 0xaf3   : > { %2822 = vrot.lane.b32.xlu2 %v6384_v10, %s5615_s28  ;;  %2693 = vrot.lane.b32.xlu1 %v6384_v10, %s5616_s8  ;;  %v2607_v18 = vsel %vm1909_vm15, %v6384_v10, 0 }
 0xaf4   : > { %2616 = vmatpush.bf16.xpose.msra.mxu1 %v2607_v18 }
 0xaf6   : > { %v2592_v17 = vpop.f32.mrf.mxu0 }
 0xafb   : > { %2601 = vrot.lane.b32.xlu2 %v6321_v16, %s5614_s6  ;;  %2691 = vrot.lane.b32.xlu1 %v6321_v16, %s5623_s26 }
 0xb03   : > { %2820 = vrot.lane.b32.xlu1 %v6321_v16, %s5624_s1 }
 0xb4d   : > { %v2823_v19 = vpop.permute.xlu2 %2822 }
 0xb4e   : > { %v2828_v44 = vsel %vm1909_vm15, %v2823_v19, 0 }
 0xb55   : > { %v2602_v20 = vpop.permute.xlu2 %2601 }
 0xb56   : > { %v2496_v22 = vpop.xlane.xlu0 %2495  ;;  %4250 = vmatmul.msk.bf16.vlgmr.msra.gmra.mxu1 %vm1909_vm15, %v2602_v20 }
 0xb57   : > { %4646 = vrcp.f32 %v2496_v22  ;;  %v2508_v26 = vand.u32 2147483648, %v2496_v22  ;;  %v2506_v28 = vand.u32 2147483647, %v2496_v22  ;;  %vm2502_vm4 = vweird.f32 %v2496_v22 }
 0xb59   : > { %v2509_v30 = vor.u32 1.1754944e-38, %v2508_v26  ;;  %vm2507_vm13 = vcmp.eq.f32.partialorder %v2506_v28, 8.507059e+37 }
 0xb5d   : > { %v4647_v23 = vpop.eup %4646 }
 0xb5e   : > { %v2498_v24 = vmul.f32 %v4647_v23, %v2496_v22  ;;  %vm2503_vm3 = vweird.f32 %v4647_v23 }
 0xb5f   : > { %vm2504_vm14 = vmor %vm2502_vm4, %vm2503_vm3 }
 0xb60   : > { %v2499_v25 = vsub.f32 1.0, %v2498_v24 }
 0xb62   : > { %v2500_v27 = vmul.f32 %v4647_v23, %v2499_v25 }
 0xb64   : > { %v2501_v29 = vadd.f32 %v4647_v23, %v2500_v27 }
 0xb65   : > { %v2694_v35 = vpop.permute.xlu1 %2693 }
 0xb66   : > { %v2505_v31 = vsel %vm2504_vm14, %v4647_v23, %v2501_v29  ;;  %v2699_v36 = vsel %vm1909_vm15, %v2694_v35, 0 }
 0xb67   : > { %v2510_v32 = vsel %vm2507_vm13, %v2509_v30, %v2505_v31  ;;  %2708 = vmatpush.bf16.xpose.msra.mxu3 %v2699_v36 }
 0xb68   : > { %v2511_v33 = vmul.f32 %v4645_v9, %v2510_v32 }
 0xb6a   : > { %v2512_v34 = vpack.c.bf16 %v2511_v33, %v2511_v33 }
 0xb6c   : > { %4239 = vmatmul.msk.bf16.vlgmr.msrb.gmra.mxu2 %vm2249_vm7, %v2512_v34  ;;  %vm2595_vm7 = vcmp.gt.s32.totalorder %v6410_v51, 0 }
 0xb6d   : > { %v2692_v0 = vpop.permute.xlu1 %2691 }
 0xb75   : > { %v2821_v46 = vpop.permute.xlu1 %2820 }
 0xbd3   : > { %v2618_v40 = vpop.f32.mrf.mxu1 }
 0xbd4   : > { %v2622_v59 = vsel %vm2595_vm7, -1e+18, %v2618_v40 }
 0xbd5   : > { %v2623_v61 = vsel %vm1807_vm6, %v2622_v59, -inf }
 0xbdb   : > { %v2620_v41 = vpop.f32.mrf.mxu1 }
 0xbef   : > { %v2528_v42 = vpop.f32.mrf.mxu2 }
 0xbf0   : > { %v2532_v43 = vpack.c.bf16 %v2528_v42, %v2528_v42 }
 0xbf2   : > { %4240 = vmatmul.msk.bf16.vlgmr.msrb.gmra.mxu3 %vm1909_vm15, %v2532_v43 }
 0xbf3   : > { %2837 = vmatpush.bf16.xpose.msrb.mxu3 %v2828_v44 }
 0xbf7   : > { %v2530_v45 = vpop.f32.mrf.mxu2 }
 0xc02   : > { %4252 = vmatmul.msk.bf16.vlgmr.msra.gmra.mxu3 %vm1909_vm15, %v2692_v0 }
 0xc12   : > { %4256 = vmatmul.msk.bf16.vlgmr.msrb.gmra.mxu3 %vm1909_vm15, %v2821_v46 }
 0xc75   : > { %v2548_v47 = vpop.f32.mrf.mxu3 }
 0xc76   : > { %v6406_v48 = vadd.f32 %v2548_v47, %v2463_v7 }
 0xc7d   : > { %v2550_v50 = vpop.f32.mrf.mxu3 }
 0xc85   : > { %v2710_v52 = vpop.f32.mrf.mxu3 }
 0xc86   : > { %v2714_v53 = vsel %vm2595_vm7, -1e+18, %v2710_v52 }
 0xc87   : > { %v2715_v54 = vsel %vm1807_vm6, %v2714_v53, -inf }
 0xc88   : > { %2716 = vmax.xlane.f32.xlu1 %v2715_v54 }
 0xc8d   : > { %v2712_v55 = vpop.f32.mrf.mxu3 }
 0xc95   : > { %v2839_v56 = vpop.f32.mrf.mxu3 }
 0xc96   : > { %v2843_v57 = vsel %vm2595_vm7, -1e+18, %v2839_v56 }
 0xc97   : > { %v2844_v58 = vsel %vm1807_vm6, %v2843_v57, -inf }
 0xc98   : > { %2845 = vmax.xlane.f32.xlu0 %v2844_v58 }
 0xc9d   : > { %v2841_v60 = vpop.f32.mrf.mxu3 }
 0xca0   : > { %2624 = vmax.xlane.f32.xlu0 %v2623_v61 }
 0xca1   : > { %2760 = vrot.lane.b32.xlu1 %v6384_v10, %s5623_s26 }
 0xca9   : > { %2933 = vrot.lane.b32.xlu1 %v6384_v10, %s5617_s10 }
 0xcb1   : > { %3089 = vrot.lane.b32.xlu1 %v6321_v16, %s6741_s2  ;;  %s1711_s2 = scalar_lea.vmem %s6742_s14, %s6241_s15  ;;  %s6743_s14 = sld [smem:[#allocation66_spill]] }
 0xcb2   : > { %v6438_v29 = vld [vmem:[%s1711_s2] sm:$0x1] }
 0xcb7   : > { %s1715_s2 = scalar_lea.vmem %s6743_s14, %s4192_s5  ;;  %s6744_s5 = sld [smem:[#allocation67_spill]] }
 0xcbd   : > { %s1718_s14 = scalar_lea.vmem %s6744_s5, %s6241_s15  ;;  %s6745_s15 = smov 56  }
 0xcbe   : > { %s3670_s5 = scalar_lea.sflag [#allocation43], %s6257_s3 }
 0xcfb   : > { %v2717_v62 = vpop.xlane.xlu1 %2716 }
 0xcfc   : > { %v2718_v63 = vsub.f32 %v2714_v53, %v2717_v62 }
 0xcfe   : > { %v2719_v21 = vmul.f32 1.442695, %v2718_v63 }
 0xd00   : > { %4648 = vpow2.f32 %v2719_v21 }
 0xd06   : > { %v4649_v1 = vpop.eup %4648 }
 0xd07   : > { %v2721_v49 = vsel %vm1807_vm6, %v4649_v1, 0.0 }
 0xd08   : > { %2722 = vadd.xlane.f32.xlu2 %v2721_v49 }
 0xd0b   : > { %v2846_v2 = vpop.xlane.xlu0 %2845 }
 0xd0c   : > { %v2847_v3 = vsub.f32 %v2843_v57, %v2846_v2 }
 0xd0e   : > { %v2848_v4 = vmul.f32 1.442695, %v2847_v3 }
 0xd10   : > { %4650 = vpow2.f32 %v2848_v4 }
 0xd13   : > { %v2761_v5 = vpop.permute.xlu1 %2760  ;;  %v2625_v13 = vpop.xlane.xlu0 %2624 }
 0xd14   : > { %v2766_v6 = vsel %vm1913_vm10, %v2761_v5, 0  ;;  %v2626_v23 = vsub.f32 %v2622_v59, %v2625_v13 }
 0xd15   : > { %2775 = vmatpush.bf16.msra.mxu0 %v2766_v6 }
 0xd16   : > { %v4651_v7 = vpop.eup %4650  ;;  %v2627_v28 = vmul.f32 1.442695, %v2626_v23 }
 0xd17   : > { %v2850_v9 = vsel %vm1807_vm6, %v4651_v7, 0.0 }
 0xd18   : > { %2851 = vadd.xlane.f32.xlu0 %v2850_v9 }
 0xd20   : > { %2889 = vrot.lane.b32.xlu2 %v6384_v10, %s5624_s1 }
 0xd28   : > { %2931 = vrot.lane.b32.xlu2 %v6321_v16, %s5625_s18 }
 0xd7b   : > { %v2723_v11 = vpop.xlane.xlu2 %2722 }
 0xd7c   : > { %4652 = vrcp.f32 %v2723_v11  ;;  %v2735_v19 = vand.u32 2147483648, %v2723_v11  ;;  %v2733_v22 = vand.u32 2147483647, %v2723_v11  ;;  %vm2729_vm2 = vweird.f32 %v2723_v11 }
 0xd7e   : > { %v2736_v25 = vor.u32 1.1754944e-38, %v2735_v19  ;;  %vm2734_vm9 = vcmp.eq.f32.partialorder %v2733_v22, 8.507059e+37 }
 0xd82   : > { %v4653_v12 = vpop.eup %4652 }
 0xd83   : > { %v2725_v14 = vmul.f32 %v4653_v12, %v2723_v11  ;;  %v2890_v15 = vpop.permute.xlu2 %2889  ;;  %vm2730_vm1 = vweird.f32 %v4653_v12 }
 0xd84   : > { %v2895_v17 = vsel %vm1913_vm10, %v2890_v15, 0  ;;  %vm2731_vm8 = vmor %vm2729_vm2, %vm2730_vm1 }
 0xd85   : > { %v2726_v18 = vsub.f32 1.0, %v2725_v14  ;;  %2904 = vmatpush.bf16.msrb.mxu0 %v2895_v17 }
 0xd87   : > { %v2727_v20 = vmul.f32 %v4653_v12, %v2726_v18 }
 0xd89   : > { %v2728_v24 = vadd.f32 %v4653_v12, %v2727_v20 }
 0xd8b   : > { %v2852_v26 = vpop.xlane.xlu0 %2851  ;;  %v2732_v27 = vsel %vm2731_vm8, %v4653_v12, %v2728_v24 }
 0xd8c   : > { %4654 = vrcp.f32 %v2852_v26  ;;  %v2737_v30 = vsel %vm2734_vm9, %v2736_v25, %v2732_v27  ;;  %v2864_v39 = vand.u32 2147483648, %v2852_v26  ;;  %v2862_v41 = vand.u32 2147483647, %v2852_v26 }
 0xd8d   : > { %v2738_v31 = vmul.f32 %v4649_v1, %v2737_v30  ;;  %4656 = vpow2.f32 %v2627_v28  ;;  %vm2858_vm12 = vweird.f32 %v2852_v26 }
 0xd8e   : > { %v2865_v44 = vor.u32 1.1754944e-38, %v2864_v39  ;;  %vm2863_vm4 = vcmp.eq.f32.partialorder %v2862_v41, 8.507059e+37 }
 0xd8f   : > { %v2739_v32 = vmul.f32 %v2738_v31, %v6438_v29 }
 0xd91   : > { %v2740_v33 = vsel %vm1807_vm6, %v2739_v32, 0.0 }
 0xd92   : > { %v4655_v34 = vpop.eup %4654  ;;  %2741 = vadd.xlane.f32.xlu0 %v2740_v33 }
 0xd93   : > { %v2854_v35 = vmul.f32 %v4655_v34, %v2852_v26  ;;  %v4657_v38 = vpop.eup %4656  ;;  %vm2859_vm11 = vweird.f32 %v4655_v34 }
 0xd94   : > { %v2629_v42 = vsel %vm1807_vm6, %v4657_v38, 0.0  ;;  %vm2860_vm3 = vmor %vm2858_vm12, %vm2859_vm11 }
 0xd95   : > { %v2855_v36 = vsub.f32 1.0, %v2854_v35 }
 0xd97   : > { %v2856_v40 = vmul.f32 %v4655_v34, %v2855_v36  ;;  %v2598_v36 = vld [vmem:[#allocation28 + $0x8] sm:$0xf] }
 0xd99   : > { %v2857_v43 = vadd.f32 %v4655_v34, %v2856_v40 }
 0xd9a   : > { %2630 = vadd.xlane.f32.xlu0 %v2629_v42  ;;  %v4323_v42 = vld [vmem:[#allocation22 + $0x8] sm:$0xff] }
 0xd9b   : > { %v2861_v45 = vsel %vm2860_vm3, %v4655_v34, %v2857_v43  ;;  %v2597_v34 = vld [vmem:[#allocation28 + $0x4] sm:$0xf] }
 0xd9c   : > { %v2866_v0 = vsel %vm2863_vm4, %v2865_v44, %v2861_v45  ;;  %v2786_v35 = vsel %vm1913_vm10, %v2597_v34, 0  ;;  %v4322_v44 = vld [vmem:[#allocation22] sm:$0xff] }
 0xd9d   : > { %v2867_v46 = vmul.f32 %v4651_v7, %v2866_v0  ;;  %2795 = vmatpush.bf16.msrb.mxu1 %v2786_v35 }
 0xd9f   : > { %v2868_v47 = vmul.f32 %v2867_v46, %v6438_v29 }
 0xda1   : > { %v2869_v50 = vsel %vm1807_vm6, %v2868_v47, 0.0 }
 0xda2   : > { %2870 = vadd.xlane.f32.xlu0 %v2869_v50 }
 0xe05   : > { %v2742_v52 = vpop.xlane.xlu0 %2741 }
 0xe06   : > { %v2743_v53 = vadd.f32 1e-18, %v2742_v52 }
 0xe08   : > { %4658 = vrcp.f32 %v2743_v53  ;;  %v2755_v59 = vand.u32 2147483648, %v2743_v53  ;;  %v2753_v61 = vand.u32 2147483647, %v2743_v53  ;;  %vm2749_vm13 = vweird.f32 %v2743_v53 }
 0xe0a   : > { %v2756_v49 = vor.u32 1.1754944e-38, %v2755_v59  ;;  %vm2754_vm2 = vcmp.eq.f32.partialorder %v2753_v61, 8.507059e+37 }
 0xe0d   : > { %v2631_v54 = vpop.xlane.xlu0 %2630 }
 0xe0e   : > { %v4659_v55 = vpop.eup %4658  ;;  %4660 = vrcp.f32 %v2631_v54  ;;  %v2643_v4 = vand.u32 2147483648, %v2631_v54  ;;  %v2641_v7 = vand.u32 2147483647, %v2631_v54  ;;  %vm2637_vm9 = vweird.f32 %v2631_v54 }
 0xe0f   : > { %v2745_v56 = vmul.f32 %v4659_v55, %v2743_v53  ;;  %vm2750_vm14 = vweird.f32 %v4659_v55 }
 0xe10   : > { %vm2751_vm1 = vmor %vm2749_vm13, %vm2750_vm14  ;;  %v2644_v12 = vor.u32 1.1754944e-38, %v2643_v4  ;;  %vm2642_vm12 = vcmp.eq.f32.partialorder %v2641_v7, 8.507059e+37  ;;  %v3044_v4 = vld [vmem:[%s1715_s2] sm:$0xff] }
 0xe11   : > { %v2746_v57 = vsub.f32 1.0, %v2745_v56 }
 0xe13   : > { %v2747_v58 = vmul.f32 %v4659_v55, %v2746_v57 }
 0xe14   : > { %v4661_v60 = vpop.eup %4660 }
 0xe15   : > { %v2748_v62 = vadd.f32 %v4659_v55, %v2747_v58  ;;  %v2633_v63 = vmul.f32 %v4661_v60, %v2631_v54  ;;  %v2871_v21 = vpop.xlane.xlu0 %2870  ;;  %vm2638_vm8 = vweird.f32 %v4661_v60 }
 0xe16   : > { %v2872_v1 = vadd.f32 1e-18, %v2871_v21  ;;  %vm2639_vm11 = vmor %vm2637_vm9, %vm2638_vm8  ;;  %v2934_v21 = vpop.permute.xlu1 %2933 }
 0xe17   : > { %v2634_v2 = vsub.f32 1.0, %v2633_v63  ;;  %v2752_v3 = vsel %vm2751_vm1, %v4659_v55, %v2748_v62  ;;  %v2596_v55 = vld [vmem:[#allocation28] sm:$0xf] }
 0xe18   : > { %4662 = vrcp.f32 %v2872_v1  ;;  %v2757_v6 = vsel %vm2754_vm2, %v2756_v49, %v2752_v3  ;;  %v2884_v23 = vand.u32 2147483648, %v2872_v1  ;;  %v2882_v25 = vand.u32 2147483647, %v2872_v1 }
 0xe19   : > { %v2635_v5 = vmul.f32 %v4661_v60, %v2634_v2  ;;  %v2758_v9 = vmul.f32 %v2757_v6, %v2739_v32  ;;  %vm2878_vm4 = vweird.f32 %v2872_v1  ;;  %v2939_v2 = vsel %vm1909_vm15, %v2934_v21, 0 }
 0xe1a   : > { %v2885_v28 = vor.u32 1.1754944e-38, %v2884_v23  ;;  %vm2883_vm13 = vcmp.eq.f32.partialorder %v2882_v25, 8.507059e+37  ;;  %v2932_v23 = vpop.permute.xlu2 %2931 }
 0xe1b   : > { %v2636_v11 = vadd.f32 %v4661_v60, %v2635_v5  ;;  %v2759_v13 = vpack.c.bf16 %v2758_v9, %v2758_v9  ;;  %v3045_v5 = vpack.c.bf16 %v3044_v4, %v3044_v4 }
 0xe1d   : > { %v2640_v14 = vsel %vm2639_vm11, %v4661_v60, %v2636_v11  ;;  %4253 = vmatmul.msk.bf16.vlgmr.msra.gmra.mxu0 %vm1909_vm15, %v2759_v13  ;;  %v2805_v60 = vsel %vm1913_vm10, %v2596_v55, 0 }
 0xe1e   : > { %v4663_v15 = vpop.eup %4662  ;;  %v2645_v17 = vsel %vm2642_vm12, %v2644_v12, %v2640_v14  ;;  %v4609_v14 = vld [vmem:[#allocation23] ss:$0 sm:$0xff] }
 0xe1f   : > { %v2874_v18 = vmul.f32 %v4663_v15, %v2872_v1  ;;  %v2646_v19 = vmul.f32 %v4657_v38, %v2645_v17  ;;  %vm2879_vm3 = vweird.f32 %v4663_v15  ;;  %v2915_v38 = vsel %vm1913_vm10, %v2598_v36, 0 }
 0xe20   : > { %vm2880_vm14 = vmor %vm2878_vm4, %vm2879_vm3  ;;  %2924 = vmatpush.bf16.msra.mxu1 %v2915_v38 }
 0xe21   : > { %v2875_v20 = vsub.f32 1.0, %v2874_v18  ;;  %v2647_v22 = vmul.f32 %v2646_v19, %v6438_v29 }
 0xe23   : > { %v2876_v24 = vmul.f32 %v4663_v15, %v2875_v20  ;;  %v2648_v26 = vsel %vm1807_vm6, %v2647_v22, 0.0 }
 0xe24   : > { %2649 = vadd.xlane.f32.xlu0 %v2648_v26 }
 0xe25   : > { %v2877_v27 = vadd.f32 %v4663_v15, %v2876_v24  ;;  %v3090_v24 = vpop.permute.xlu1 %3089 }
 0xe27   : > { %v2881_v30 = vsel %vm2880_vm14, %v4663_v15, %v2877_v27 }
 0xe28   : > { %v2886_v31 = vsel %vm2883_vm13, %v2885_v28, %v2881_v30 }
 0xe29   : > { %v2887_v32 = vmul.f32 %v2886_v31, %v2868_v47 }
 0xe2b   : > { %v2888_v33 = vpack.c.bf16 %v2887_v32, %v2887_v32  ;;  %v6481_v32 = vld [vmem:[%s1718_s14] sm:$0x1] }
 0xe2c   : > { %vm3083_vm11 = vcmp.gt.s32.totalorder %v6481_v32, 0 }
 0xe2d   : > { %4257 = vmatmul.msk.bf16.vlgmr.msrb.gmra.mxu0 %vm1909_vm15, %v2888_v33 }
 0xe38   : > { %2669 = vrot.lane.b32.xlu0 %v6384_v10, %s5614_s6 }
 0xe97   : > { %v2650_v39 = vpop.xlane.xlu0 %2649 }
 0xe98   : > { %v2651_v40 = vadd.f32 1e-18, %v2650_v39 }
 0xe9a   : > { %4664 = vrcp.f32 %v2651_v40  ;;  %v2777_v41 = vpop.f32.mrf.mxu0  ;;  %v2663_v50 = vand.u32 2147483648, %v2651_v40  ;;  %v2661_v53 = vand.u32 2147483647, %v2651_v40  ;;  %vm2657_vm2 = vweird.f32 %v2651_v40 }
 0xe9b   : > { %v2781_v43 = vpack.c.bf16 %v2777_v41, %v2777_v41 }
 0xe9c   : > { %v2664_v56 = vor.u32 1.1754944e-38, %v2663_v50  ;;  %vm2662_vm9 = vcmp.eq.f32.partialorder %v2661_v53, 8.507059e+37 }
 0xe9d   : > { %4254 = vmatmul.msk.bf16.vlgmr.msrb.gmra.mxu1 %vm1909_vm15, %v2781_v43 }
 0xe9e   : > { %3075 = vmatpush.bf16.msrb.mxu1 %v4323_v42 }
 0xea0   : > { %v4665_v45 = vpop.eup %4664 }
 0xea1   : > { %v2653_v0 = vmul.f32 %v4665_v45, %v2651_v40  ;;  %vm2658_vm1 = vweird.f32 %v4665_v45 }
 0xea2   : > { %v2779_v47 = vpop.f32.mrf.mxu0  ;;  %3076 = vmatpush.bf16.msrb.mxu1 %v4322_v44  ;;  %vm2659_vm8 = vmor %vm2657_vm2, %vm2658_vm1 }
 0xea3   : > { %v2654_v46 = vsub.f32 1.0, %v2653_v0 }
 0xea5   : > { %v2655_v52 = vmul.f32 %v4665_v45, %v2654_v46 }
 0xea7   : > { %v2656_v54 = vadd.f32 %v4665_v45, %v2655_v52 }
 0xea9   : > { %v2660_v57 = vsel %vm2659_vm8, %v4665_v45, %v2656_v54 }
 0xeaa   : > { %v2670_v58 = vpop.permute.xlu0 %2669  ;;  %v2665_v59 = vsel %vm2662_vm9, %v2664_v56, %v2660_v57  ;;  %v2906_v61 = vpop.f32.mrf.mxu0 }
 0xeab   : > { %v2675_v62 = vsel %vm1913_vm10, %v2670_v58, 0  ;;  %v2666_v63 = vmul.f32 %v2665_v59, %v2647_v22  ;;  %v2910_v1 = vpack.c.bf16 %v2906_v61, %v2906_v61 }
 0xeac   : > { %2684 = vmatpush.bf16.msra.mxu2 %v2675_v62 }
 0xead   : > { %v2667_v49 = vpack.c.bf16 %v2666_v63, %v2666_v63  ;;  %4258 = vmatmul.msk.bf16.vlgmr.msra.gmra.mxu1 %vm1909_vm15, %v2910_v1 }
 0xeaf   : > { %4251 = vmatmul.msk.bf16.vlgmr.msra.gmra.mxu2 %vm1909_vm15, %v2667_v49  ;;  %v2599_v49 = vld [vmem:[#allocation28 + $0xc] sm:$0xf] }
 0xeb0   : > { %2814 = vmatpush.bf16.msrb.mxu2 %v2805_v60 }
 0xeb2   : > { %v2908_v3 = vpop.f32.mrf.mxu0 }
 0xeb4   : > { %2948 = vmatpush.bf16.xpose.msra.mxu2 %v2939_v2 }
 0xebd   : > { %4270 = vmatmul.msk.bf16.vlgmr.msrb.gmra.mxu1 %vm1774_vm5, %v3045_v5 }
 0xf1a   : > { %v6463_v6 = vpop.f32.mrf.mxu1 }
 0xf22   : > { %v2799_v7 = vpop.f32.mrf.mxu1 }
 0xf2a   : > { %v6465_v9 = vpop.f32.mrf.mxu1 }
 0xf32   : > { %v2686_v11 = vpop.f32.mrf.mxu2  ;;  %v2928_v13 = vpop.f32.mrf.mxu1 }
 0xf33   : > { %v2690_v12 = vpack.c.bf16 %v2686_v11, %v2686_v11 }
 0xf35   : > { %4255 = vmatmul.msk.bf16.vlgmr.msrb.gmra.mxu2 %vm1909_vm15, %v2690_v12 }
 0xf3a   : > { %v2688_v15 = vpop.f32.mrf.mxu2  ;;  %v3078_v17 = vpop.f32.mrf.mxu1 }
 0xf3b   : > { %v3079_v18 = vadd.f32 %v4609_v14, %v3078_v17 }
 0xf3d   : > { %v6468_v19 = vpack.c.bf16 %v3079_v18, %v3079_v18 }
 0xf3f   : > { %v3095_v20 = vsel %vm1909_vm15, %v6468_v19, 0 }
 0xf40   : > { %3104 = vmatpush.bf16.xpose.msrb.mxu2 %v3095_v20 }
 0xf42   : > { %v3080_v22 = vpop.f32.mrf.mxu1 }
 0xf45   : > { %4259 = vmatmul.msk.bf16.vlgmr.msra.gmra.mxu2 %vm1909_vm15, %v2932_v23 }
 0xf55   : > { %4271 = vmatmul.msk.bf16.vlgmr.msrb.gmra.mxu2 %vm1909_vm15, %v3090_v24 }
 0xfb8   : > { %v6474_v25 = vpop.f32.mrf.mxu2 }
 0xfc0   : > { %v2818_v26 = vpop.f32.mrf.mxu2 }
 0xfc8   : > { %v2950_v27 = vpop.f32.mrf.mxu2 }
 0xfc9   : > { %v2954_v28 = vsel %vm2595_vm7, -1e+18, %v2950_v27  ;;  %v3084_v27 = vld [vmem:[#allocation31] sm:$0xf] }
 0xfca   : > { %v2955_v30 = vsel %vm1807_vm6, %v2954_v28, -inf }
 0xfcb   : > { %2956 = vmax.xlane.f32.xlu2 %v2955_v30 }
 0xfd0   : > { %v2952_v31 = vpop.f32.mrf.mxu2 }
 0xfd8   : > { %v3106_v33 = vpop.f32.mrf.mxu2 }
 0xfd9   : > { %v3110_v34 = vsel %vm3083_vm11, -1e+18, %v3106_v33  ;;  %v3253_v33 = vsel %vm1913_vm10, %v3084_v27, 0 }
 0xfda   : > { %v3111_v35 = vsel %vm1807_vm6, %v3110_v34, -inf }
 0xfdb   : > { %3112 = vmax.xlane.f32.xlu1 %v3111_v35 }
 0xfe0   : > { %v3108_v36 = vpop.f32.mrf.mxu2 }
 0xff4   : > { %3137 = vrot.lane.b32.xlu1 %v6468_v19, %s5614_s6  ;;  %s6746_s6 = smov 48  }
 0xffc   : > { %3361 = vrot.lane.b32.xlu1 %v6468_v19, %s5617_s10  ;;  %s6749_s10 = sld [smem:[#allocation84_spill]] }
0x103e   : > { %v2957_v51 = vpop.xlane.xlu2 %2956 }
0x103f   : > { %v2958_v38 = vsub.f32 %v2954_v28, %v2957_v51 }
0x1041   : > { %v2959_v39 = vmul.f32 1.442695, %v2958_v38 }
0x1043   : > { %4666 = vpow2.f32 %v2959_v39 }
0x1049   : > { %v4667_v40 = vpop.eup %4666 }
0x104a   : > { %v2961_v41 = vsel %vm1807_vm6, %v4667_v40, 0.0 }
0x104b   : > { %2962 = vadd.xlane.f32.xlu0 %v2961_v41 }
0x104e   : > { %v3113_v45 = vpop.xlane.xlu1 %3112 }
0x105f   : > { %3000 = vrot.lane.b32.xlu0 %v6384_v10, %s5625_s18  ;;  %v3114_v10 = vsub.f32 %v3110_v34, %v3113_v45 }
0x1061   : > { %v3115_v55 = vmul.f32 1.442695, %v3114_v10 }
0x1066   : > { %v3138_v57 = vpop.permute.xlu1 %3137 }
0x1067   : > { %3159 = vrot.lane.b32.xlu0 %v6321_v16, %s6745_s15  ;;  %v3143_v62 = vsel %vm1913_vm10, %v3138_v57, 0 }
0x106e   : > { %v3362_v41 = vpop.permute.xlu1 %3361 }
0x106f   : > { %3270 = vrot.lane.b32.xlu0 %v6468_v19, %s5615_s28  ;;  %s6747_s28 = smov 40  }
0x1077   : > { %3268 = vrot.lane.b32.xlu0 %v6321_v16, %s6746_s6  ;;  %s5418_s6 = scalar_lea.hbm %s5834_s20, 2 }
0x10be   : > { %v2963_v42 = vpop.xlane.xlu0 %2962 }
0x10bf   : > { %4668 = vrcp.f32 %v2963_v42  ;;  %v2975_v46 = vand.u32 2147483648, %v2963_v42  ;;  %v2973_v50 = vand.u32 2147483647, %v2963_v42  ;;  %vm2969_vm12 = vweird.f32 %v2963_v42 }
0x10c0   : > { %4670 = vpow2.f32 %v3115_v55 }
0x10c1   : > { %v2976_v53 = vor.u32 1.1754944e-38, %v2975_v46  ;;  %vm2974_vm4 = vcmp.eq.f32.partialorder %v2973_v50, 8.507059e+37 }
0x10c5   : > { %v4669_v43 = vpop.eup %4668 }
0x10c6   : > { %v2965_v44 = vmul.f32 %v4669_v43, %v2963_v42  ;;  %vm2970_vm7 = vweird.f32 %v4669_v43  ;;  %v4671_v21 = vpop.eup %4670 }
0x10c7   : > { %vm2971_vm3 = vmor %vm2969_vm12, %vm2970_vm7  ;;  %v3117_v1 = vsel %vm1807_vm6, %v4671_v21, 0.0 }
0x10c8   : > { %v2966_v0 = vsub.f32 1.0, %v2965_v44 }
0x10ca   : > { %v2967_v47 = vmul.f32 %v4669_v43, %v2966_v0 }
0x10cc   : > { %v2968_v52 = vadd.f32 %v4669_v43, %v2967_v47 }
0x10ce   : > { %v2972_v54 = vsel %vm2971_vm3, %v4669_v43, %v2968_v52  ;;  %v3367_v43 = vsel %vm1909_vm15, %v3362_v41, 0 }
0x10cf   : > { %v2977_v56 = vsel %vm2974_vm4, %v2976_v53, %v2972_v54 }
0x10d0   : > { %v2978_v58 = vmul.f32 %v4667_v40, %v2977_v56  ;;  %v2817_v56 = vadd.f32 %v6474_v25, %v6463_v6 }
0x10d1   : > { %v3001_v59 = vpop.permute.xlu0 %3000 }
0x10d2   : > { %v3006_v60 = vsel %vm1913_vm10, %v3001_v59, 0  ;;  %v2979_v61 = vmul.f32 %v2978_v58, %v6438_v29  ;;  %v3026_v29 = vsel %vm1913_vm10, %v2599_v49, 0  ;;  %v2930_v57 = vadd.f32 %v6465_v9, %v2817_v56 }
0x10d3   : > { %3015 = vmatpush.bf16.msra.mxu3 %v3006_v60  ;;  %3035 = vmatpush.bf16.msra.mxu0 %v3026_v29 }
0x10d4   : > { %v2980_v63 = vsel %vm1807_vm6, %v2979_v61, 0.0 }
0x10d5   : > { %2981 = vadd.xlane.f32.xlu2 %v2980_v63 }
0x10d7   : > { %3152 = vmatpush.bf16.msrb.mxu3 %v3143_v62 }
0x10d9   : > { %v3160_v44 = vpop.permute.xlu0 %3159 }
0x10dd   : > { %3118 = vadd.xlane.f32.xlu2 %v3117_v1 }
0x10e1   : > { %v3271_v45 = vpop.permute.xlu0 %3270 }
0x10e2   : > { %v3276_v47 = vsel %vm1909_vm15, %v3271_v45, 0 }
0x10e9   : > { %v3269_v54 = vpop.permute.xlu0 %3268 }
0x10f5   : > { %3161 = vrot.lane.b32.xlu2 %v6468_v19, %s5616_s8  ;;  %s6748_s8 = sld [smem:[#allocation83_spill]] }
0x10fd   : > { %3359 = vrot.lane.b32.xlu2 %v6321_v16, %s6747_s28 }
0x1148   : > { %v2982_v2 = vpop.xlane.xlu2 %2981 }
0x1149   : > { %v2983_v3 = vadd.f32 1e-18, %v2982_v2 }
0x114b   : > { %4672 = vrcp.f32 %v2983_v3  ;;  %v2995_v12 = vand.u32 2147483648, %v2983_v3  ;;  %v2993_v14 = vand.u32 2147483647, %v2983_v3  ;;  %vm2989_vm13 = vweird.f32 %v2983_v3 }
0x114d   : > { %v2996_v20 = vor.u32 1.1754944e-38, %v2995_v12  ;;  %vm2994_vm2 = vcmp.eq.f32.partialorder %v2993_v14, 8.507059e+37  ;;  %v6541_v12 = vld [vmem:[%s6748_s8] sm:$0xf] }
0x1150   : > { %v3119_v4 = vpop.xlane.xlu2 %3118 }
0x1151   : > { %v4673_v5 = vpop.eup %4672  ;;  %4674 = vrcp.f32 %v3119_v4  ;;  %v3131_v35 = vand.u32 2147483648, %v3119_v4  ;;  %vm3125_vm9 = vweird.f32 %v3119_v4  ;;  %v3129_v36 = vand.u32 2147483647, %v3119_v4 }
0x1152   : > { %v2985_v7 = vmul.f32 %v4673_v5, %v2983_v3  ;;  %vm2990_vm14 = vweird.f32 %v4673_v5 }
0x1153   : > { %vm2991_vm1 = vmor %vm2989_vm13, %vm2990_vm14  ;;  %v3132_v38 = vor.u32 1.1754944e-38, %v3131_v35  ;;  %vm3130_vm12 = vcmp.eq.f32.partialorder %v3129_v36, 8.507059e+37  ;;  %v3042_v35 = vld [vmem:[#allocation29] sm:$0x1] }
0x1154   : > { %v2986_v11 = vsub.f32 1.0, %v2985_v7  ;;  %v2553_v7 = vld [vmem:[#allocation26] sm:$0x1] }
0x1156   : > { %v2987_v13 = vmul.f32 %v4673_v5, %v2986_v11  ;;  %v6538_v11 = vadd.f32 %v2553_v7, %v6406_v48 }
0x1157   : > { %v4675_v15 = vpop.eup %4674 }
0x1158   : > { %v2988_v17 = vadd.f32 %v4673_v5, %v2987_v13  ;;  %v3121_v16 = vmul.f32 %v4675_v15, %v3119_v4  ;;  %v3162_v18 = vpop.permute.xlu2 %3161  ;;  %vm3126_vm8 = vweird.f32 %v4675_v15  ;;  %v3454_v13 = vmul.f32 %v6541_v12, %v6538_v11 }
0x1159   : > { %v3167_v22 = vsel %vm1909_vm15, %v3162_v18, 0  ;;  %vm3127_vm7 = vmor %vm3125_vm9, %vm3126_vm8 }
0x115a   : > { %v3122_v23 = vsub.f32 1.0, %v3121_v16  ;;  %3176 = vmatpush.bf16.xpose.msrb.mxu0 %v3167_v22  ;;  %v2992_v24 = vsel %vm2991_vm1, %v4673_v5, %v2988_v17  ;;  %v3455_v32 = vsel %vm1723_vm0, %v3454_v13, 0.0 }
0x115b   : > { %v2997_v26 = vsel %vm2994_vm2, %v2996_v20, %v2992_v24 }
0x115c   : > { %v3123_v28 = vmul.f32 %v4675_v15, %v3122_v23  ;;  %v2998_v30 = vmul.f32 %v2997_v26, %v2979_v61 }
0x115e   : > { %v2999_v31 = vpack.c.bf16 %v2998_v30, %v2998_v30  ;;  %v3124_v34 = vadd.f32 %v4675_v15, %v3123_v28 }
0x1160   : > { %4260 = vmatmul.msk.bf16.vlgmr.msra.gmra.mxu3 %vm1909_vm15, %v2999_v31  ;;  %v3128_v51 = vsel %vm3127_vm7, %v4675_v15, %v3124_v34  ;;  %v3360_v55 = vpop.permute.xlu2 %3359 }
0x1161   : > { %3262 = vmatpush.bf16.msra.mxu3 %v3253_v33  ;;  %v3133_v39 = vsel %vm3130_vm12, %v3132_v38, %v3128_v51  ;;  %v3459_v51 = vrot.slane %v6541_v12, 1 }
0x1162   : > { %v3134_v40 = vmul.f32 %v4671_v21, %v3133_v39 }
0x1164   : > { %v3135_v42 = vpack.c.bf16 %v3134_v40, %v3134_v40 }
0x1170   : > { %4272 = vmatmul.msk.bf16.vlgmr.msrb.gmra.mxu3 %vm1909_vm15, %v3135_v42 }
0x1171   : > { %3376 = vmatpush.bf16.xpose.msrb.mxu3 %v3367_v43 }
0x11e3   : > { %v3017_v0 = vpop.f32.mrf.mxu3 }
0x11e4   : > { %v3021_v46 = vpack.c.bf16 %v3017_v0, %v3017_v0 }
0x11e6   : > { %4261 = vmatmul.msk.bf16.vlgmr.msra.gmra.mxu0 %vm1909_vm15, %v3021_v46 }
0x11e7   : > { %3285 = vmatpush.bf16.xpose.msra.mxu0 %v3276_v47 }
0x11eb   : > { %v3019_v50 = vpop.f32.mrf.mxu3 }
0x11f3   : > { %v3154_v10 = vpop.f32.mrf.mxu3 }
0x11f4   : > { %v3158_v52 = vpack.c.bf16 %v3154_v10, %v3154_v10 }
0x11f6   : > { %4273 = vmatmul.msk.bf16.vlgmr.msrb.gmra.mxu0 %vm1909_vm15, %v3160_v44  ;;  %4276 = vmatmul.msk.bf16.vlgmr.msra.gmra.mxu3 %vm1909_vm15, %v3158_v52 }
0x11fb   : > { %v3156_v53 = vpop.f32.mrf.mxu3 }
0x1206   : > { %4277 = vmatmul.msk.bf16.vlgmr.msra.gmra.mxu0 %vm1909_vm15, %v3269_v54  ;;  %4280 = vmatmul.msk.bf16.vlgmr.msrb.gmra.mxu3 %vm1909_vm15, %v3360_v55 }
0x1263   : > { %v3037_v58 = vpop.f32.mrf.mxu0 }
0x1264   : > { %v3041_v59 = vadd.f32 %v3037_v58, %v2930_v57 }
0x1266   : > { %v6557_v36 = vadd.f32 %v3042_v35, %v3041_v59 }
0x1268   : > { %v3461_v38 = vmul.f32 %v3459_v51, %v6557_v36 }
0x126a   : > { %v3462_v39 = vsel %vm1723_vm0, %v3461_v38, 0.0 }
0x126b   : > { %v3039_v60 = vpop.f32.mrf.mxu0 }
0x1273   : > { %v3178_v61 = vpop.f32.mrf.mxu0 }
0x1274   : > { %v3182_v62 = vsel %vm3083_vm11, -1e+18, %v3178_v61 }
0x1275   : > { %v3183_v63 = vsel %vm1807_vm6, %v3182_v62, -inf }
0x1276   : > { %3184 = vmax.xlane.f32.xlu1 %v3183_v63 }
0x1279   : > { %v6527_v21 = vpop.f32.mrf.mxu3 }
0x127b   : > { %v3180_v1 = vpop.f32.mrf.mxu0 }
0x1281   : > { %v3266_v49 = vpop.f32.mrf.mxu3 }
0x1283   : > { %v3287_v29 = vpop.f32.mrf.mxu0 }
0x1284   : > { %v3291_v6 = vsel %vm3083_vm11, -1e+18, %v3287_v29 }
0x1285   : > { %v3292_v9 = vsel %vm1807_vm6, %v3291_v6, -inf }
0x1286   : > { %3293 = vmax.xlane.f32.xlu0 %v3292_v9 }
0x1289   : > { %v3378_v25 = vpop.f32.mrf.mxu3 }
0x128a   : > { %v3382_v2 = vsel %vm3083_vm11, -1e+18, %v3378_v25 }
0x128b   : > { %v3289_v3 = vpop.f32.mrf.mxu0  ;;  %v3383_v4 = vsel %vm1807_vm6, %v3382_v2, -inf }
0x128c   : > { %3384 = vmax.xlane.f32.xlu2 %v3383_v4 }
0x1291   : > { %v3380_v5 = vpop.f32.mrf.mxu3 }
0x12a4   : > { %3208 = vrot.lane.b32.xlu2 %v6468_v19, %s5623_s26  ;;  %s6750_s26 = scalar_lea.vmem [#allocation42], %s6257_s3 }
0x12cd   : > { %3456 = vadd.xlane.f32.xlu2 %v3455_v32 }
0x12e9   : > { %v3185_v14 = vpop.xlane.xlu1 %3184 }
0x12ea   : > { %v3186_v15 = vsub.f32 %v3182_v62, %v3185_v14 }
0x12ec   : > { %v3187_v17 = vmul.f32 1.442695, %v3186_v15 }
0x12ee   : > { %4676 = vpow2.f32 %v3187_v17 }
0x12f4   : > { %v4677_v16 = vpop.eup %4676 }
0x12f5   : > { %v3189_v18 = vsel %vm1807_vm6, %v4677_v16, 0.0 }
0x12f6   : > { %3190 = vadd.xlane.f32.xlu1 %v3189_v18 }
0x12f9   : > { %v3294_v20 = vpop.xlane.xlu0 %3293 }
0x12fa   : > { %v3295_v22 = vsub.f32 %v3291_v6, %v3294_v20 }
0x12fc   : > { %v3296_v48 = vmul.f32 1.442695, %v3295_v22 }
0x12fe   : > { %4678 = vpow2.f32 %v3296_v48  ;;  %v6569_v48 = vld [vmem:[%s6749_s10] sm:$0x3] }
0x12ff   : > { %v3385_v23 = vpop.xlane.xlu2 %3384 }
0x1300   : > { %v3386_v24 = vsub.f32 %v3382_v2, %v3385_v23 }
0x1302   : > { %v3387_v26 = vmul.f32 1.442695, %v3386_v24 }
0x1304   : > { %v4679_v27 = vpop.eup %4678  ;;  %4680 = vpow2.f32 %v3387_v26 }
0x1305   : > { %v3298_v28 = vsel %vm1807_vm6, %v4679_v27, 0.0 }
0x1306   : > { %3299 = vadd.xlane.f32.xlu0 %v3298_v28 }
0x1307   : > { %v3209_v30 = vpop.permute.xlu2 %3208 }
0x1308   : > { %v3214_v31 = vsel %vm1913_vm10, %v3209_v30, 0 }
0x1309   : > { %3223 = vmatpush.bf16.msra.mxu1 %v3214_v31 }
0x130a   : > { %v6549_v33 = vpop.eup %4680 }
0x130b   : > { %v3389_v34 = vsel %vm1807_vm6, %v6549_v33, 0.0 }
0x130c   : > { %3390 = vadd.xlane.f32.xlu1 %v3389_v34 }
0x131a   : > { %3317 = vrot.lane.b32.xlu0 %v6468_v19, %s5624_s1  ;;  %s3693_s1 = sshll.u32 %s6750_s26, 4  ;;  %s3694_s1 = int_to_ptr.vmem [resolvable:$true] %s3693_s1 }
0x1325   : > { %3408 = vrot.lane.b32.xlu1 %v6468_v19, %s5625_s18  ;;  %s3691_s18 = scalar_lea.hbm %s5834_s20, %s5857_s7 }
0x1326   : > { %s3695_s2 = sshll.u32 %s3691_s18, 4  ;;  %s3696_s2 = int_to_ptr.hbm [resolvable:$true] %s3695_s2 }
0x1327   : > { %s5412_s14 = sshra.s32 %s3696_s2, 4  ;;  %s5413_s14 = int_to_ptr.hbm [resolvable:$true] %s5412_s14 }
0x1328   : > { %s5414_s15 = scalar_lea.hbm %s5413_s14, 1  ;;  %p5419_p7 = scmp.lt.s32.totalorder %s5413_s14, %s5834_s20 }
0x1329   : > { %p5415_p10 = scmp.ne.s32.totalorder %s5413_s14, %s5414_s15  ;;  %p5420_p8 = scmp.lt.s32.totalorder %s5418_s6, %s5414_s15 }
0x132b   : > { %p5416_p3 = pnand %p5415_p10, %p5874_p5  ;;  %p5421_p11 = por %p5420_p8, %p5419_p7 }
0x132d   : > { %p5417_p4 = pneg %p5416_p3 }
0x132f   : > { %p5422_p12 = pnand %p5421_p11, %p5417_p4 }
0x1340   : > { %v3457_v22 = vpop.xlane.xlu2 %3456 }
0x1344   : > { %3463 = vadd.xlane.f32.xlu0 %v3462_v39 }
0x1369   : > { %v3191_v40 = vpop.xlane.xlu1 %3190 }
0x136a   : > { %4682 = vrcp.f32 %v3191_v40  ;;  %v3203_v44 = vand.u32 2147483648, %v3191_v40  ;;  %v3201_v0 = vand.u32 2147483647, %v3191_v40  ;;  %vm3197_vm11 = vweird.f32 %v3191_v40 }
0x136c   : > { %v3204_v46 = vor.u32 1.1754944e-38, %v3203_v44  ;;  %vm3202_vm4 = vcmp.eq.f32.partialorder %v3201_v0, 8.507059e+37  ;;  %v3086_v0 = vld [vmem:[#allocation31 + $0x8] sm:$0xf] }
0x1370   : > { %v4683_v41 = vpop.eup %4682 }
0x1371   : > { %v3193_v42 = vmul.f32 %v4683_v41, %v3191_v40  ;;  %vm3198_vm6 = vweird.f32 %v4683_v41 }
0x1372   : > { %vm3199_vm3 = vmor %vm3197_vm11, %vm3198_vm6 }
0x1373   : > { %v3194_v43 = vsub.f32 1.0, %v3193_v42 }
0x1375   : > { %v3195_v45 = vmul.f32 %v4683_v41, %v3194_v43  ;;  %v3085_v43 = vld [vmem:[#allocation31 + $0x4] sm:$0xf] }
0x1376   : > { %v3234_v44 = vsel %vm1913_vm10, %v3085_v43, 0 }
0x1377   : > { %v3196_v19 = vadd.f32 %v4683_v41, %v3195_v45  ;;  %3243 = vmatpush.bf16.msra.mxu2 %v3234_v44 }
0x1379   : > { %v3200_v47 = vsel %vm3199_vm3, %v4683_v41, %v3196_v19  ;;  %v3300_v50 = vpop.xlane.xlu0 %3299  ;;  %v3343_v19 = vsel %vm1913_vm10, %v3086_v0, 0 }
0x137a   : > { %v3205_v10 = vsel %vm3202_vm4, %v3204_v46, %v3200_v47  ;;  %4684 = vrcp.f32 %v3300_v50  ;;  %v3312_v58 = vand.u32 2147483648, %v3300_v50  ;;  %v3310_v60 = vand.u32 2147483647, %v3300_v50  ;;  %v3087_v46 = vld [vmem:[#allocation31 + $0xc] sm:$0xf] }
0x137b   : > { %v3206_v52 = vmul.f32 %v4677_v16, %v3205_v10  ;;  %vm3306_vm13 = vweird.f32 %v3300_v50  ;;  %3352 = vmatpush.bf16.msrb.mxu2 %v3343_v19  ;;  %v3434_v47 = vsel %vm1913_vm10, %v3087_v46, 0 }
0x137c   : > { %v3313_v1 = vor.u32 1.1754944e-38, %v3312_v58  ;;  %vm3311_vm2 = vcmp.eq.f32.partialorder %v3310_v60, 8.507059e+37 }
0x137d   : > { %v3207_v53 = vpack.c.bf16 %v3206_v52, %v3206_v52 }
0x137f   : > { %4274 = vmatmul.msk.bf16.vlgmr.msra.gmra.mxu1 %vm1909_vm15, %v3207_v53  ;;  %v3391_v54 = vpop.xlane.xlu1 %3390 }
0x1380   : > { %v4685_v55 = vpop.eup %4684  ;;  %4686 = vrcp.f32 %v3391_v54  ;;  %v3403_v4 = vand.u32 2147483648, %v3391_v54  ;;  %vm3397_vm9 = vweird.f32 %v3391_v54  ;;  %v3401_v7 = vand.u32 2147483647, %v3391_v54 }
0x1381   : > { %v3302_v56 = vmul.f32 %v4685_v55, %v3300_v50  ;;  %vm3307_vm14 = vweird.f32 %v4685_v55 }
0x1382   : > { %vm3308_vm1 = vmor %vm3306_vm13, %vm3307_vm14  ;;  %v3404_v14 = vor.u32 1.1754944e-38, %v3403_v4  ;;  %vm3402_vm12 = vcmp.eq.f32.partialorder %v3401_v7, 8.507059e+37 }
0x1383   : > { %v3303_v57 = vsub.f32 1.0, %v3302_v56 }
0x1385   : > { %v3304_v59 = vmul.f32 %v4685_v55, %v3303_v57 }
0x1386   : > { %v4687_v61 = vpop.eup %4686 }
0x1387   : > { %v3305_v62 = vadd.f32 %v4685_v55, %v3304_v59  ;;  %v3393_v63 = vmul.f32 %v4687_v61, %v3391_v54  ;;  %vm3398_vm8 = vweird.f32 %v4687_v61 }
0x1388   : > { %vm3399_vm7 = vmor %vm3397_vm9, %vm3398_vm8  ;;  %vm3646_vm9 = vcmask 523264  }
0x1389   : > { %v3309_v49 = vsel %vm3308_vm1, %v4685_v55, %v3305_v62  ;;  %v3394_v29 = vsub.f32 1.0, %v3393_v63  ;;  %v3500_v63 = vrot.slane %v6541_v12, 2 }
0x138a   : > { %v3314_v6 = vsel %vm3311_vm2, %v3313_v1, %v3309_v49 }
0x138b   : > { %v3315_v9 = vmul.f32 %v4679_v27, %v3314_v6  ;;  %v3395_v25 = vmul.f32 %v4687_v61, %v3394_v29 }
0x138c   : > { %v3318_v2 = vpop.permute.xlu0 %3317 }
0x138d   : > { %v3396_v3 = vadd.f32 %v4687_v61, %v3395_v25  ;;  %v3323_v5 = vsel %vm1913_vm10, %v3318_v2, 0  ;;  %v3316_v13 = vpack.c.bf16 %v3315_v9, %v3315_v9 }
0x138e   : > { %3332 = vmatpush.bf16.msrb.mxu1 %v3323_v5  ;;  %v3450_v5 = vld [vmem:[#allocation32] sm:$0x1] }
0x138f   : > { %v3400_v32 = vsel %vm3399_vm7, %v4687_v61, %v3396_v3 }
0x1390   : > { %v3405_v15 = vsel %vm3402_vm12, %v3404_v14, %v3400_v32 }
0x1391   : > { %4278 = vmatmul.msk.bf16.vlgmr.msrb.gmra.mxu1 %vm1909_vm15, %v3316_v13  ;;  %v3406_v17 = vmul.f32 %v6549_v33, %v3405_v15 }
0x1392   : > { %3443 = vmatpush.bf16.msra.mxu1 %v3434_v47 }
0x1393   : > { %v3407_v20 = vpack.c.bf16 %v3406_v17, %v3406_v17  ;;  %v3514_v17 = vrot.slane %v6569_v48, 1 }
0x1397   : > { %v3409_v16 = vpop.permute.xlu1 %3408 }
0x1398   : > { %v3414_v18 = vsel %vm1913_vm10, %v3409_v16, 0 }
0x1399   : > { %3423 = vmatpush.bf16.msrb.mxu0 %v3414_v18 }
0x139c   : > { %4281 = vmatmul.msk.bf16.vlgmr.msrb.gmra.mxu0 %vm1909_vm15, %v3407_v20 }
0x13b7   : > { %v3464_v23 = vpop.xlane.xlu0 %3463 }
0x13b8   : > { %v3465_v24 = vadd.f32 %v3464_v23, %v3457_v22 }
0x13ba   : > { %v3466_v26 = vadd.f32 %v3465_v24, %v6569_v48 }
0x13bc   : > { %v4283_v27 = vmul.f32 -1.442695, %v3466_v26 }
0x13be   : > { %4688 = vpow2.f32 %v4283_v27 }
0x13c4   : > { %v4689_v28 = vpop.eup %4688 }
0x13c5   : > { %v3470_v30 = vadd.f32 1.0, %v4689_v28 }
0x13c7   : > { %4690 = vrcp.f32 %v3470_v30  ;;  %v3482_v35 = vand.u32 2147483648, %v3470_v30  ;;  %v3480_v38 = vand.u32 2147483647, %v3470_v30  ;;  %vm3476_vm11 = vweird.f32 %v3470_v30 }
0x13c9   : > { %v3483_v40 = vor.u32 1.1754944e-38, %v3482_v35  ;;  %vm3481_vm4 = vcmp.eq.f32.partialorder %v3480_v38, 8.507059e+37 }
0x13cd   : > { %v4691_v31 = vpop.eup %4690 }
0x13ce   : > { %v3472_v33 = vmul.f32 %v4691_v31, %v3470_v30  ;;  %vm3477_vm6 = vweird.f32 %v4691_v31 }
0x13cf   : > { %vm3478_vm3 = vmor %vm3476_vm11, %vm3477_vm6 }
0x13d0   : > { %v3473_v34 = vsub.f32 1.0, %v3472_v33 }
0x13d2   : > { %v3474_v51 = vmul.f32 %v4691_v31, %v3473_v34 }
0x13d4   : > { %v3475_v39 = vadd.f32 %v4691_v31, %v3474_v51 }
0x13d6   : > { %v3479_v41 = vsel %vm3478_vm3, %v4691_v31, %v3475_v39 }
0x13d7   : > { %v3484_v42 = vsel %vm3481_vm4, %v3483_v40, %v3479_v41 }
0x13d8   : > { %3488 = vperm.xlu1 %4604, %v3484_v42   ;;  %v3492_v45 = vsub.f32 1.0, %v3484_v42 }
0x13e0   : > { %3495 = vperm.xlu1 %4604, %v3492_v45  }
0x13fc   : > { %v3225_v50 = vpop.f32.mrf.mxu1 }
0x13fd   : > { %v3229_v10 = vpack.c.bf16 %v3225_v50, %v3225_v50  ;;  %v4325_v50 = vld [vmem:[#allocation37 + $0x8] sm:$0xff] }
0x13ff   : > { %4275 = vmatmul.msk.bf16.vlgmr.msra.gmra.mxu2 %vm1909_vm15, %v3229_v10  ;;  %v4324_v10 = vld [vmem:[#allocation37] sm:$0xff] }
0x1400   : > { %3604 = vmatpush.bf16.msra.mxu2 %v4325_v50 }
0x1404   : > { %v3227_v52 = vpop.f32.mrf.mxu1  ;;  %3605 = vmatpush.bf16.msra.mxu2 %v4324_v10 }
0x140e   : > { %v3334_v53 = vpop.f32.mrf.mxu1 }
0x140f   : > { %v3338_v54 = vpack.c.bf16 %v3334_v53, %v3334_v53 }
0x1411   : > { %4279 = vmatmul.msk.bf16.vlgmr.msrb.gmra.mxu2 %vm1909_vm15, %v3338_v54  ;;  %v4328_v54 = vld [vmem:[%s5819_s9 + $0x10] sm:$0xff] }
0x1416   : > { %v3336_v55 = vpop.f32.mrf.mxu1 }
0x1419   : > { %v3425_v56 = vpop.f32.mrf.mxu0 }
0x141a   : > { %v3429_v57 = vpack.c.bf16 %v3425_v56, %v3425_v56 }
0x141c   : > { %4282 = vmatmul.msk.bf16.vlgmr.msra.gmra.mxu1 %vm1909_vm15, %v3429_v57 }
0x1421   : > { %v3427_v58 = vpop.f32.mrf.mxu0 }
0x144a   : > { %v3489_v59 = vpop.permute.xlu1 %3488 }
0x144b   : > { %v3491_v61 = vmul.f32 %v3489_v59, %v6538_v11  ;;  %v3506_v11 = vrot.slane %v6541_v12, 3 }
0x1452   : > { %v3496_v60 = vpop.permute.xlu1 %3495 }
0x1453   : > { %v3498_v62 = vmul.f32 %v3496_v60, %v6557_v36 }
0x1455   : > { %v3499_v1 = vadd.f32 %v3498_v62, %v3491_v61  ;;  %v3551_v62 = vld [vmem:[#allocation34] sm:$0x1] }
0x1457   : > { %v3502_v49 = vmul.f32 %v3500_v63, %v3499_v1 }
0x1459   : > { %v3503_v29 = vsel %vm1723_vm0, %v3502_v49, 0.0 }
0x145a   : > { %3504 = vadd.xlane.f32.xlu1 %v3503_v29 }
0x1482   : > { %v3245_v6 = vpop.f32.mrf.mxu2 }
0x1483   : > { %v3265_v2 = vadd.f32 %v6527_v21, %v3245_v6 }
0x148a   : > { %v3247_v9 = vpop.f32.mrf.mxu2 }
0x148b   : > { %v4327_v9 = vld [vmem:[%s5819_s9 + $0x8] sm:$0xff] }
0x1494   : > { %v3354_v25 = vpop.f32.mrf.mxu2 }
0x1495   : > { %v3358_v3 = vadd.f32 %v3354_v25, %v3265_v2  ;;  %v4326_v25 = vld [vmem:[%s5819_s9] sm:$0xff]  ;;  %v3582_v2 = vld [vmem:[#allocation38] sm:$0x1] }
0x1499   : > { %v3445_v4 = vpop.f32.mrf.mxu1 }
0x149a   : > { %v3449_v7 = vadd.f32 %v3445_v4, %v3358_v3 }
0x149c   : > { %v3451_v13 = vadd.f32 %v3450_v5, %v3449_v7  ;;  %v3356_v36 = vpop.f32.mrf.mxu2 }
0x149e   : > { %v3508_v32 = vmul.f32 %v3506_v11, %v3451_v13 }
0x14a0   : > { %v3509_v14 = vsel %vm1723_vm0, %v3508_v32, 0.0 }
0x14a1   : > { %v3447_v15 = vpop.f32.mrf.mxu1  ;;  %3510 = vadd.xlane.f32.xlu2 %v3509_v14 }
0x14cd   : > { %v3505_v16 = vpop.xlane.xlu1 %3504 }
0x1514   : > { %v3511_v18 = vpop.xlane.xlu2 %3510 }
0x1515   : > { %v3512_v20 = vadd.f32 %v3511_v18, %v3505_v16 }
0x1517   : > { %v3516_v22 = vadd.f32 %v3514_v17, %v3512_v20 }
0x1519   : > { %v4284_v21 = vmul.f32 -1.442695, %v3516_v22 }
0x151b   : > { %4692 = vpow2.f32 %v4284_v21 }
0x1521   : > { %v4693_v23 = vpop.eup %4692 }
0x1522   : > { %v3520_v24 = vadd.f32 1.0, %v4693_v23 }
0x1524   : > { %4694 = vrcp.f32 %v3520_v24  ;;  %v3532_v28 = vand.u32 2147483648, %v3520_v24  ;;  %v3530_v31 = vand.u32 2147483647, %v3520_v24  ;;  %vm3526_vm15 = vweird.f32 %v3520_v24 }
0x1526   : > { %v3533_v48 = vor.u32 1.1754944e-38, %v3532_v28  ;;  %vm3531_vm13 = vcmp.eq.f32.partialorder %v3530_v31, 8.507059e+37 }
0x152a   : > { %v4695_v26 = vpop.eup %4694 }
0x152b   : > { %v3522_v12 = vmul.f32 %v4695_v26, %v3520_v24  ;;  %vm3527_vm10 = vweird.f32 %v4695_v26 }
0x152c   : > { %vm3528_vm14 = vmor %vm3526_vm15, %vm3527_vm10 }
0x152d   : > { %v3523_v27 = vsub.f32 1.0, %v3522_v12 }
0x152f   : > { %v3524_v30 = vmul.f32 %v4695_v26, %v3523_v27 }
0x1531   : > { %v3525_v33 = vadd.f32 %v4695_v26, %v3524_v30 }
0x1533   : > { %v3529_v34 = vsel %vm3528_vm14, %v4695_v26, %v3525_v33 }
0x1534   : > { %v3534_v35 = vsel %vm3531_vm13, %v3533_v48, %v3529_v34 }
0x1535   : > { %3538 = vperm.xlu0 %4605, %v3534_v35   ;;  %v3542_v51 = vsub.f32 1.0, %v3534_v35 }
0x1537   : > { %3545 = vperm.xlu2 %4606, %v3542_v51  }
0x1591   : > { %v3546_v38 = vpop.permute.xlu2 %3545 }
0x1592   : > { %v3548_v40 = vmul.f32 %v3546_v38, %v3451_v13 }
0x15a7   : > { %v3539_v39 = vpop.permute.xlu0 %3538 }
0x15a8   : > { %v3541_v41 = vmul.f32 %v3539_v39, %v3499_v1 }
0x15aa   : > { %v3549_v42 = vadd.f32 %v3548_v40, %v3541_v41 }
0x15ac   : > { %v6587_v43 = vadd.f32 %v3549_v42, %v6303_v37  ;;  %v4329_v37 = vld [vmem:[%s5819_s9 + $0x18] sm:$0xff] }
0x15ad   : > { %3654 = vmatpush.bf16.msra.mxu3 %v4329_v37 }
0x15ae   : > { %v3553_v44 = vsel %vm1723_vm0, %v6587_v43, 0.0 }
0x15af   : > { %3554 = vadd.xlane.f32.xlu1 %v3553_v44 }
0x15b1   : > { %3655 = vmatpush.bf16.msra.mxu3 %v4328_v54 }
0x15b5   : > { %3656 = vmatpush.bf16.msra.mxu3 %v4327_v9 }
0x15b9   : > { %3657 = vmatpush.bf16.msra.mxu3 %v4326_v25 }
0x1622   : > { %v3555_v45 = vpop.xlane.xlu1 %3554 }
0x1623   : > { %v3556_v0 = vmul.f32 %v3555_v45, %v6249_v8 }
0x1625   : > { %v3557_v19 = vsub.f32 %v6587_v43, %v3556_v0 }
0x1627   : > { %v3558_v46 = vmul.f32 %v3557_v19, %v3557_v19 }
0x1629   : > { %v3559_v47 = vsel %vm1723_vm0, %v3558_v46, 0.0 }
0x162a   : > { %3560 = vadd.xlane.f32.xlu2 %v3559_v47 }
0x169d   : > { %v3561_v52 = vpop.xlane.xlu2 %3560 }
0x169e   : > { %v3562_v53 = vmul.f32 %v3561_v52, %v6249_v8  ;;  %v3552_v8 = vld [vmem:[#allocation35] sm:$0x1] }
0x16a0   : > { %v3563_v55 = vadd.f32 1e-06, %v3562_v53 }
0x16a2   : > { %4696 = vrsqrt.f32 %v3563_v55  ;;  %vm3570_vm2 = vweird.f32 %v3563_v55 }
0x16a8   : > { %v4697_v56 = vpop.eup %4696 }
0x16a9   : > { %v3565_v57 = vmul.f32 %v4697_v56, %v3563_v55  ;;  %vm3571_vm1 = vweird.f32 %v4697_v56 }
0x16aa   : > { %vm3572_vm8 = vmor %vm3570_vm2, %vm3571_vm1 }
0x16ab   : > { %v3566_v58 = vmul.f32 %v4697_v56, %v3565_v57 }
0x16ad   : > { %v3567_v59 = vmul.f32 0.5, %v3566_v58 }
0x16af   : > { %v3568_v60 = vsub.f32 1.5, %v3567_v59 }
0x16b1   : > { %v3569_v61 = vmul.f32 %v4697_v56, %v3568_v60 }
0x16b3   : > { %v3573_v63 = vsel %vm3572_vm8, %v4697_v56, %v3569_v61 }
0x16b4   : > { %v3574_v1 = vmul.f32 %v3573_v63, %v3557_v19 }
0x16b6   : > { %v3575_v49 = vmul.f32 %v3574_v1, %v3551_v62 }
0x16b8   : > { %v3576_v29 = vadd.f32 %v3575_v49, %v3552_v8 }
0x16ba   : > { %v3577_v6 = vpack.c.bf16 %v3576_v29, %v3576_v29 }
0x16bc   : > { %4293 = vmatmul.msk.bf16.vlgmr.msra.gmra.mxu2 %vm1774_vm5, %v3577_v6 }
0x173f   : > { %v3607_v3 = vpop.f32.mrf.mxu2 }
0x1740   : > { %v3608_v4 = vadd.f32 %v3607_v3, %v3582_v2 }
0x1742   : > { %v3611_v5 = vmax.f32 %v3608_v4, 0.0 }
0x1744   : > { %v3612_v7 = vpack.c.bf16 %v3611_v5, %v3611_v5 }
0x1746   : > { %4310 = vmatmul.msk.bf16.vlgmr.msra.gmra.mxu3 %vm3646_vm9, %v3612_v7 }
0x1747   : > { %v3609_v11 = vpop.f32.mrf.mxu2 }
0x1748   : > { %5425 = shalt.err (!%p5422_p12)
}
0x1749   : > { %s6751_s28 = sld [smem:[#allocation88_spill]]  ;;  %v3621_v13 = vld [vmem:[#allocation40] sm:$0x1]  ;;  %s1681_s18 = scalar_lea.vmem [#allocation41], %s6257_s3 }
0x174a   : > { %4431 = dma.vmem_to_hbm [thread:$0]  (%p5874_p5), %s3694_s1, 16, %s3696_s2, %s3670_s5  }
0x174b   : > { %s3680_s26 = sshll.u32 %s1681_s18, 4  ;;  %s3666_s15 = scalar_lea.sflag [#allocation4], %s6257_s3  ;;  %s3681_s26 = int_to_ptr.vmem [resolvable:$true] %s3680_s26 }
0x174f   : > { %s6752_s8 = smov %s6751_s28  ;;  %s3678_s10 = scalar_lea.hbm %s6751_s28, %s5857_s7 }
0x1750   : > { %s3682_s14 = sshll.u32 %s3678_s10, 4  ;;  %s5446_s7 = scalar_lea.hbm %s6752_s8, 2  ;;  %s3683_s14 = int_to_ptr.hbm [resolvable:$true] %s3682_s14 }
0x1751   : > { %s5440_s6 = sshra.s32 %s3683_s14, 4  ;;  %s5441_s6 = int_to_ptr.hbm [resolvable:$true] %s5440_s6 }
0x1752   : > { %s5442_s1 = scalar_lea.hbm %s5441_s6, 1  ;;  %p5447_p2 = scmp.lt.s32.totalorder %s5441_s6, %s6752_s8 }
0x1753   : > { %p5443_p13 = scmp.ne.s32.totalorder %s5441_s6, %s5442_s1  ;;  %p5448_p9 = scmp.lt.s32.totalorder %s5446_s7, %s5442_s1 }
0x1755   : > { %p5444_p0 = pnand %p5443_p13, %p5874_p5  ;;  %p5449_p10 = por %p5448_p9, %p5447_p2 }
0x1757   : > { %p5445_p1 = pneg %p5444_p0 }
0x1759   : > { %p5450_p3 = pnand %p5449_p10, %p5445_p1 }
0x17c9   : > { %v3659_v36 = vpop.f32.mrf.mxu3 }
0x17ca   : > { %v3660_v32 = vadd.f32 %v3659_v36, %v3621_v13 }
0x17cc   : > { %v3663_v14 = vadd.f32 %v3660_v32, %v6587_v43 }
0x17ce   : > { %3664 = vst.msk [vmem:[%s1681_s18] sm:$0x1] %vm1723_vm0, %v3663_v14 }
0x17cf   : > { %5453 = shalt.err (!%p5450_p3)
}
0x17d0   : > { %4430 = dma.vmem_to_hbm [thread:$0]  (%p5874_p5), %s3681_s26, 16, %s3683_s14, %s3666_s15  }
0x17d1   : > { %v3661_v15 = vpop.f32.mrf.mxu3 }
0x17d2 PF: > { %s6753_s2 = sld [smem:[#allocation91_spill]] }
0x17d3   : > { %s6754_s3 = sld [smem:[#allocation89_spill]] }
0x17d8   : > { %p4491_p4 = scmp.ge.s32.totalorder %s6753_s2, 2 }
0x17d9   : > { %s3707_s28 = sand.u32 1, %s6754_s3  }
0x17da   : > { %p4435_p7 = pnand %p4491_p4, %p5878_p6  ;;  %s3708_s10 = scalar_lea.sflag [#allocation4], %s3707_s28 }
0x17dc   : > { %p4436_p8 = pneg %p4435_p7 }
0x17de   : > { %5523 = dma.done.wait (%p4436_p8), %s3708_s10, 16  }
0x17df   : > { %5525 = vsyncadd (%p4436_p8), %s3708_s10, 4294967280  ;;  %s3717_s18 = scalar_lea.sflag [#allocation43], %s3707_s28 }
0x17e0   : > { %5527 = dma.done.wait (%p4436_p8), %s3717_s18, 16  }
0x17e1   : > { %5529 = vsyncadd (%p4436_p8), %s3717_s18, 4294967280  ;;  %s6756_s2 = sld [smem:[#allocation92_spill]]  ;;  %s6759_s28 = smov %s5536_s0 }
0x17e2   : > { %s6757_s22 = sld [smem:[#allocation90_spill]] }
0x17e3   : > { %s6758_s1 = sld [smem:[#allocation93_spill]] }
0x17e7   : > { %p108_p5 = scmp.ge.s32.totalorder %s6756_s2, 4  }
0x17e8   : > { %s6760_s0 = smov %s6757_s22 }
0x17e9   :  { %110 = sbr.rel (!%p108_p5) target bundleno = 94 (0x5e), region = 393 }
0x17ee   :  { %3722 = vsyncpa [#allocation3], 1 }
0x17ef   :  { %3724 = vsyncpa [#allocation3 + $0x1], 1 }
0x17f0   :  { %3725 = vsyncpa [#allocation6], 1 }
0x17f1   :  { %3726 = vsyncpa [#allocation9], 1 }
0x17f2   :  { %3727 = vsyncpa [#allocation12], 1 }
0x17f3   :  { %3728 = vsyncpa [#allocation15], 1 }
0x17f4   :  { %3729 = vsyncpa [#allocation18], 1 }
0x17f5   :  { %3730 = vsyncpa [#allocation21], 1 }
0x17f6   :  { %3731 = vsyncpa [#allocation24], 1 }
0x17f7   :  { %3732 = vsyncpa [#allocation27], 1 }
0x17f8   :  { %3733 = vsyncpa [#allocation30], 1 }
0x17f9   :  { %3734 = vsyncpa [#allocation33], 1 }
0x17fa   :  { %3735 = vsyncpa [#allocation36], 1 }
0x17fb   :  { %3736 = vsyncpa [#allocation39], 1 }
0x17fc   :  { %3737 = vsyncpa [#allocation4], 1 }
0x17fd   :  { %3739 = vsyncpa [#allocation4 + $0x1], 1 }
0x17fe   :  { %3740 = vsyncpa [#allocation43], 1 }
0x17ff   :  { %3742 = vsyncpa [#allocation43 + $0x1], 1 }

</bundles_post_ra>
